<compile_context>
chip_gen: v7x
topology: tpu7x:2x2x1
jax: 0.10.0
libtpu: 0.0.40
codegen_flags: <defaults>
</compile_context>

<pallas_src>
import jax
import jax.numpy as jnp
import numpy as np
from jax.experimental import pallas as pl
from jax.experimental.pallas import tpu as pltpu

Z_DIM = 100
CLASS_NUM = 50
H1 = 1000 + 500          # 1500 (true LayerNorm width)
H2 = 500                 # true LayerNorm width
V_DIM = 2 * 10 * 10      # 200
H1_PAD = 1536            # lane-dense padded hidden widths (multiples of 128)
H2_PAD = 512
V_PAD = 256              # lane-dense padded output width (sliced back to 200)
LN_EPS = 1e-5
LEAKY_SLOPE = 0.01
MAX_B_TILE = 512         # batch-tile cap: safe against v7x 64 MiB VMEM with resident weights


def _round_up(x, m):
    return ((x + m - 1) // m) * m


def _leaky_relu(x):
    return jnp.where(x > 0, x, LEAKY_SLOPE * x)


def _layer_norm(x, gamma, beta, n):
    """One-pass LayerNorm over lane-padded activations. f32 math.

    Padded lanes of x are exactly 0, so the sums over the padded width equal
    the sums over the true width; dividing by the true width n gives the
    correct (biased, PyTorch-style) statistics. gamma/beta are zero in the
    padded lanes, so the output there is exactly 0.
    """
    s = jnp.sum(x, axis=-1, keepdims=True)
    sq = jnp.sum(x * x, axis=-1, keepdims=True)
    inv_n = 1.0 / n
    mean = s * inv_n
    var = jnp.maximum(sq * inv_n - mean * mean, 0.0)   # guard f32 cancellation
    inv = jax.lax.rsqrt(var + LN_EPS)
    # 4-op epilogue (no [B,N] scale/shift temporaries).
    return ((x - mean) * inv) * gamma + beta


def generator_kernel(z_ref, c_ref,
                     w1a_ref, w1b_ref, b1_ref, g1_ref, be1_ref,
                     w2_ref, b2_ref, g2_ref, be2_ref,
                     w3_ref, b3_ref,
                     o_ref):
    # Cast only the MXU operands to bf16; accumulate in f32.
    z16 = z_ref[...].astype(jnp.bfloat16)                          # [B, 100]
    c16 = c_ref[...].astype(jnp.bfloat16)                          # [B, 50]

    # Layer 1: Linear(150 -> 1536pad) (split dot == concat) + LeakyReLU + LayerNorm
    h = (jnp.dot(z16, w1a_ref[...], preferred_element_type=jnp.float32)
         + jnp.dot(c16, w1b_ref[...], preferred_element_type=jnp.float32)
         + b1_ref[...])
    h = _leaky_relu(h)
    h = _layer_norm(h, g1_ref[...], be1_ref[...], H1)              # [B, 1536] f32

    # Layer 2: Linear(1536pad -> 512pad) + LeakyReLU + LayerNorm
    h = (jnp.dot(h.astype(jnp.bfloat16), w2_ref[...],
                 preferred_element_type=jnp.float32) + b2_ref[...])
    h = _leaky_relu(h)
    h = _layer_norm(h, g2_ref[...], be2_ref[...], H2)              # [B, 512] f32

    # Layer 3: Linear(512pad -> 256pad) + Sigmoid (lane-dense store)
    zo = (jnp.dot(h.astype(jnp.bfloat16), w3_ref[...],
                  preferred_element_type=jnp.float32) + b3_ref[...])
    o_ref[...] = jax.nn.sigmoid(zo)                                # [B, 256]


def prepare_kernel_params(p):
    """One-time conversion: zero-pad to lane-dense widths, cast weights to bf16.

    gamma/beta MUST pad with zeros (not ones) so LN output in padded lanes is
    exactly 0; W2/W3 padded input rows are also zero as a second guard.
    """
    def pad2(a, rows, cols):
        out = jnp.zeros((rows, cols), jnp.float32)
        return out.at[: a.shape[0], : a.shape[1]].set(a)

    return {
        "w1a": pad2(p["w1a"], Z_DIM, H1_PAD).astype(jnp.bfloat16),
        "w1b": pad2(p["w1b"], CLASS_NUM, H1_PAD).astype(jnp.bfloat16),
        "b1":  pad2(p["b1"], 1, H1_PAD),
        "g1":  pad2(p["g1"], 1, H1_PAD),
        "be1": pad2(p["be1"], 1, H1_PAD),
        "w2":  pad2(p["w2"], H1_PAD, H2_PAD).astype(jnp.bfloat16),
        "b2":  pad2(p["b2"], 1, H2_PAD),
        "g2":  pad2(p["g2"], 1, H2_PAD),
        "be2": pad2(p["be2"], 1, H2_PAD),
        "w3":  pad2(p["w3"], H2_PAD, V_PAD).astype(jnp.bfloat16),
        "b3":  pad2(p["b3"], 1, V_PAD),
    }


@jax.jit
def generator_forward(inputs, seed_tensor, kp):
    B = inputs.shape[0]

    if B < 16:
        # Single grid step; block shape == full array so no 8-row alignment needed.
        b_tile = B
    else:
        # >= 2 grid steps so the "parallel" batch axis can shard across both v7x
        # TensorCores; capped at MAX_B_TILE (VMEM budget incl. v7x's 64 MiB).
        b_tile = min(MAX_B_TILE, _round_up(pl.cdiv(B, 2), 8))
    b_pad = _round_up(B, b_tile)

    z, c = inputs, seed_tensor
    if b_pad != B:
        z = jnp.pad(z, ((0, b_pad - B), (0, 0)))
        c = jnp.pad(c, ((0, b_pad - B), (0, 0)))

    grid = (b_pad // b_tile,)

    def row_spec(feat):
        # batch-tiled blocks, marched along the grid
        return pl.BlockSpec((b_tile, feat), lambda i: (i, 0))

    def resident_spec(arr):
        # full-extent block, same index every step -> DMA'd once, VMEM-resident
        return pl.BlockSpec(arr.shape, lambda i: (0, 0))

    in_specs = [
        row_spec(Z_DIM), row_spec(CLASS_NUM),
        resident_spec(kp["w1a"]), resident_spec(kp["w1b"]), resident_spec(kp["b1"]),
        resident_spec(kp["g1"]), resident_spec(kp["be1"]),
        resident_spec(kp["w2"]), resident_spec(kp["b2"]),
        resident_spec(kp["g2"]), resident_spec(kp["be2"]),
        resident_spec(kp["w3"]), resident_spec(kp["b3"]),
    ]

    # NOTE: output stays f32 to match the PyTorch module; on v5e a bf16 store
    # would roughly halve the output HBM writeback if downstream tolerates it.
    out = pl.pallas_call(
        generator_kernel,
        out_shape=jax.ShapeDtypeStruct((b_pad, V_PAD), jnp.float32),
        grid=grid,
        in_specs=in_specs,
        out_specs=row_spec(V_PAD),
        compiler_params=pltpu.CompilerParams(
            dimension_semantics=("parallel",),
            vmem_limit_bytes=40 * 1024 * 1024,
        ),
    )(z, c,
      kp["w1a"], kp["w1b"], kp["b1"], kp["g1"], kp["be1"],
      kp["w2"], kp["b2"], kp["g2"], kp["be2"],
      kp["w3"], kp["b3"])

    return out[:B, :V_DIM]


def init_params(key):
    """Deterministic init mirroring PyTorch Linear defaults: U(-1/sqrt(fan_in), +). f32."""
    ks = jax.random.split(key, 6)

    def linear(kw, kb, fan_in, fan_out):
        bound = 1.0 / np.sqrt(fan_in)
        w = jax.random.uniform(kw, (fan_in, fan_out), jnp.float32, -bound, bound)
        b = jax.random.uniform(kb, (1, fan_out), jnp.float32, -bound, bound)
        return w, b

    w1, b1 = linear(ks[0], ks[1], Z_DIM + CLASS_NUM, H1)
    w2, b2 = linear(ks[2], ks[3], H1, H2)
    w3, b3 = linear(ks[4], ks[5], H2, V_DIM)
    return {
        "w1a": w1[:Z_DIM], "w1b": w1[Z_DIM:], "b1": b1,
        "g1": jnp.ones((1, H1), jnp.float32), "be1": jnp.zeros((1, H1), jnp.float32),
        "w2": w2, "b2": b2,
        "g2": jnp.ones((1, H2), jnp.float32), "be2": jnp.zeros((1, H2), jnp.float32),
        "w3": w3, "b3": b3,
    }


def _layer_norm_ref(x, gamma, beta):
    mean = jnp.mean(x, axis=-1, keepdims=True)
    var = jnp.mean((x - mean) ** 2, axis=-1, keepdims=True)
    return (x - mean) * jax.lax.rsqrt(var + LN_EPS) * gamma + beta


def reference_forward(inputs, seed_tensor, p):
    """Pure-JAX f32 reference matching the PyTorch module."""
    x = jnp.concatenate([inputs, seed_tensor], axis=1)
    w1 = jnp.concatenate([p["w1a"], p["w1b"]], axis=0)
    h = _leaky_relu(x @ w1 + p["b1"])
    h = _layer_norm_ref(h, p["g1"], p["be1"])
    h = _leaky_relu(h @ p["w2"] + p["b2"])
    h = _layer_norm_ref(h, p["g2"], p["be2"])
    return jax.nn.sigmoid(h @ p["w3"] + p["b3"])


if __name__ == "__main__":
    key = jax.random.PRNGKey(0)
    k_params, k_in, k_seed = jax.random.split(key, 3)

    B = 8
    params = init_params(k_params)                                  # f32 (reference)
    kparams = prepare_kernel_params(params)                         # bf16 / lane-padded (kernel)

    inputs = jax.random.normal(k_in, (B, Z_DIM), jnp.float32)       # latent z
    seed_tensor = jax.random.normal(k_seed, (B, CLASS_NUM), jnp.float32)  # condition

    out = generator_forward(inputs, seed_tensor, kparams)
    out = jax.block_until_ready(out)

    ref = reference_forward(inputs, seed_tensor, params)
    # bf16 MXU operands vs f32 reference -> loosened tolerance (expected, not a bug).
    np.testing.assert_allclose(np.asarray(out), np.asarray(ref), rtol=3e-2, atol=3e-2)
    assert out.shape == (B, V_DIM)

    print("KERNEL_OK")
</pallas_src>

<mosaic_0001>
module attributes {stable_mosaic.version = 11 : i64} {
  func.func @generator_kernel(%arg0: i32, %arg1: memref<8x100xf32, #tpu.memory_space<vmem>>, %arg2: memref<8x50xf32, #tpu.memory_space<vmem>>, %arg3: memref<100x1536xbf16, #tpu.memory_space<vmem>>, %arg4: memref<50x1536xbf16, #tpu.memory_space<vmem>>, %arg5: memref<1x1536xf32, #tpu.memory_space<vmem>>, %arg6: memref<1x1536xf32, #tpu.memory_space<vmem>>, %arg7: memref<1x1536xf32, #tpu.memory_space<vmem>>, %arg8: memref<1536x512xbf16, #tpu.memory_space<vmem>>, %arg9: memref<1x512xf32, #tpu.memory_space<vmem>>, %arg10: memref<1x512xf32, #tpu.memory_space<vmem>>, %arg11: memref<1x512xf32, #tpu.memory_space<vmem>>, %arg12: memref<512x256xbf16, #tpu.memory_space<vmem>>, %arg13: memref<1x256xf32, #tpu.memory_space<vmem>>, %arg14: memref<8x256xf32, #tpu.memory_space<vmem>>) attributes {dimension_semantics = [#tpu.dimension_semantics<parallel>], iteration_bounds = array<i64: 1>, scalar_prefetch = 0 : i64, scratch_operands = 0 : i64, tpu.core_type = #tpu.core_type<tc>, window_params = [{transform_indices = @transform_0, window_bounds = array<i64: 8, 100>}, {transform_indices = @transform_1, window_bounds = array<i64: 8, 50>}, {pipeline_mode = #tpu.pipeline_mode<synchronous>, transform_indices = @transform_2, window_bounds = array<i64: 100, 1536>}, {pipeline_mode = #tpu.pipeline_mode<synchronous>, transform_indices = @transform_3, window_bounds = array<i64: 50, 1536>}, {pipeline_mode = #tpu.pipeline_mode<synchronous>, transform_indices = @transform_4, window_bounds = array<i64: 1, 1536>}, {pipeline_mode = #tpu.pipeline_mode<synchronous>, transform_indices = @transform_5, window_bounds = array<i64: 1, 1536>}, {pipeline_mode = #tpu.pipeline_mode<synchronous>, transform_indices = @transform_6, window_bounds = array<i64: 1, 1536>}, {pipeline_mode = #tpu.pipeline_mode<synchronous>, transform_indices = @transform_7, window_bounds = array<i64: 1536, 512>}, {pipeline_mode = #tpu.pipeline_mode<synchronous>, transform_indices = @transform_8, window_bounds = array<i64: 1, 512>}, {pipeline_mode = #tpu.pipeline_mode<synchronous>, transform_indices = @transform_9, window_bounds = array<i64: 1, 512>}, {pipeline_mode = #tpu.pipeline_mode<synchronous>, transform_indices = @transform_10, window_bounds = array<i64: 1, 512>}, {pipeline_mode = #tpu.pipeline_mode<synchronous>, transform_indices = @transform_11, window_bounds = array<i64: 512, 256>}, {pipeline_mode = #tpu.pipeline_mode<synchronous>, transform_indices = @transform_12, window_bounds = array<i64: 1, 256>}, {transform_indices = @transform_13, window_bounds = array<i64: 8, 256>}]} {
    %c0 = arith.constant 0 : index
    %c0_0 = arith.constant 0 : index
    %0 = vector.load %arg1[%c0, %c0_0] : memref<8x100xf32, #tpu.memory_space<vmem>>, vector<8x100xf32>
    %1 = arith.truncf %0 : vector<8x100xf32> to vector<8x100xbf16>
    %c0_1 = arith.constant 0 : index
    %c0_2 = arith.constant 0 : index
    %2 = vector.load %arg2[%c0_1, %c0_2] : memref<8x50xf32, #tpu.memory_space<vmem>>, vector<8x50xf32>
    %3 = arith.truncf %2 : vector<8x50xf32> to vector<8x50xbf16>
    %c0_3 = arith.constant 0 : index
    %c0_4 = arith.constant 0 : index
    %4 = vector.load %arg3[%c0_3, %c0_4] : memref<100x1536xbf16, #tpu.memory_space<vmem>>, vector<100x1536xbf16>
    %cst = arith.constant dense<0.000000e+00> : vector<8x1536xf32>
    %5 = tpu.matmul %1, %4, %cst {dimension_numbers = #tpu.dot_dimension_numbers<[1], [0], [0], [1], [0, 0, 1, 1], [], []>} : vector<8x100xbf16>, vector<100x1536xbf16>, vector<8x1536xf32> -> vector<8x1536xf32>
    %c0_5 = arith.constant 0 : index
    %c0_6 = arith.constant 0 : index
    %6 = vector.load %arg4[%c0_5, %c0_6] : memref<50x1536xbf16, #tpu.memory_space<vmem>>, vector<50x1536xbf16>
    %cst_7 = arith.constant dense<0.000000e+00> : vector<8x1536xf32>
    %7 = tpu.matmul %3, %6, %cst_7 {dimension_numbers = #tpu.dot_dimension_numbers<[1], [0], [0], [1], [0, 0, 1, 1], [], []>} : vector<8x50xbf16>, vector<50x1536xbf16>, vector<8x1536xf32> -> vector<8x1536xf32>
    %8 = arith.addf %5, %7 : vector<8x1536xf32>
    %c0_8 = arith.constant 0 : index
    %c0_9 = arith.constant 0 : index
    %9 = vector.load %arg5[%c0_8, %c0_9] : memref<1x1536xf32, #tpu.memory_space<vmem>>, vector<1x1536xf32>
    %10 = vector.broadcast %9 : vector<1x1536xf32> to vector<8x1536xf32>
    %11 = arith.addf %8, %10 : vector<8x1536xf32>
    %cst_10 = arith.constant 0.000000e+00 : f32
    %12 = vector.broadcast %cst_10 : f32 to vector<8x1536xf32>
    %13 = arith.cmpf ogt, %11, %12 : vector<8x1536xf32>
    %cst_11 = arith.constant 0.00999999977 : f32
    %14 = vector.broadcast %cst_11 : f32 to vector<8x1536xf32>
    %15 = arith.mulf %14, %11 : vector<8x1536xf32>
    %16 = arith.select %13, %11, %15 : vector<8x1536xi1>, vector<8x1536xf32>
    %c0_12 = arith.constant 0 : index
    %c0_13 = arith.constant 0 : index
    %17 = vector.load %arg6[%c0_12, %c0_13] : memref<1x1536xf32, #tpu.memory_space<vmem>>, vector<1x1536xf32>
    %c0_14 = arith.constant 0 : index
    %c0_15 = arith.constant 0 : index
    %18 = vector.load %arg7[%c0_14, %c0_15] : memref<1x1536xf32, #tpu.memory_space<vmem>>, vector<1x1536xf32>
    %cst_16 = arith.constant dense<0.000000e+00> : vector<8xf32>
    %19 = vector.multi_reduction <add>, %16, %cst_16 [1] : vector<8x1536xf32> to vector<8xf32>
    %20 = vector.shape_cast %19 : vector<8xf32> to vector<8x1xf32>
    %21 = arith.mulf %16, %16 : vector<8x1536xf32>
    %cst_17 = arith.constant dense<0.000000e+00> : vector<8xf32>
    %22 = vector.multi_reduction <add>, %21, %cst_17 [1] : vector<8x1536xf32> to vector<8xf32>
    %23 = vector.shape_cast %22 : vector<8xf32> to vector<8x1xf32>
    %cst_18 = arith.constant 6.66666659E-4 : f32
    %24 = vector.broadcast %cst_18 : f32 to vector<8x1xf32>
    %25 = arith.mulf %20, %24 : vector<8x1xf32>
    %cst_19 = arith.constant 6.66666659E-4 : f32
    %26 = vector.broadcast %cst_19 : f32 to vector<8x1xf32>
    %27 = arith.mulf %23, %26 : vector<8x1xf32>
    %28 = arith.mulf %25, %25 : vector<8x1xf32>
    %29 = arith.subf %27, %28 : vector<8x1xf32>
    %cst_20 = arith.constant 0.000000e+00 : f32
    %30 = vector.broadcast %cst_20 : f32 to vector<8x1xf32>
    %31 = arith.maximumf %29, %30 : vector<8x1xf32>
    %cst_21 = arith.constant 9.99999974E-6 : f32
    %32 = vector.broadcast %cst_21 : f32 to vector<8x1xf32>
    %33 = arith.addf %31, %32 : vector<8x1xf32>
    %34 = math.rsqrt %33 : vector<8x1xf32>
    %35 = vector.broadcast %25 : vector<8x1xf32> to vector<8x1536xf32>
    %36 = arith.subf %16, %35 : vector<8x1536xf32>
    %37 = vector.broadcast %34 : vector<8x1xf32> to vector<8x1536xf32>
    %38 = arith.mulf %36, %37 : vector<8x1536xf32>
    %39 = vector.broadcast %17 : vector<1x1536xf32> to vector<8x1536xf32>
    %40 = arith.mulf %38, %39 : vector<8x1536xf32>
    %41 = vector.broadcast %18 : vector<1x1536xf32> to vector<8x1536xf32>
    %42 = arith.addf %40, %41 : vector<8x1536xf32>
    %43 = arith.truncf %42 : vector<8x1536xf32> to vector<8x1536xbf16>
    %c0_22 = arith.constant 0 : index
    %c0_23 = arith.constant 0 : index
    %44 = vector.load %arg8[%c0_22, %c0_23] : memref<1536x512xbf16, #tpu.memory_space<vmem>>, vector<1536x512xbf16>
    %cst_24 = arith.constant dense<0.000000e+00> : vector<8x512xf32>
    %45 = tpu.matmul %43, %44, %cst_24 {dimension_numbers = #tpu.dot_dimension_numbers<[1], [0], [0], [1], [0, 0, 1, 1], [], []>} : vector<8x1536xbf16>, vector<1536x512xbf16>, vector<8x512xf32> -> vector<8x512xf32>
    %c0_25 = arith.constant 0 : index
    %c0_26 = arith.constant 0 : index
    %46 = vector.load %arg9[%c0_25, %c0_26] : memref<1x512xf32, #tpu.memory_space<vmem>>, vector<1x512xf32>
    %47 = vector.broadcast %46 : vector<1x512xf32> to vector<8x512xf32>
    %48 = arith.addf %45, %47 : vector<8x512xf32>
    %cst_27 = arith.constant 0.000000e+00 : f32
    %49 = vector.broadcast %cst_27 : f32 to vector<8x512xf32>
    %50 = arith.cmpf ogt, %48, %49 : vector<8x512xf32>
    %cst_28 = arith.constant 0.00999999977 : f32
    %51 = vector.broadcast %cst_28 : f32 to vector<8x512xf32>
    %52 = arith.mulf %51, %48 : vector<8x512xf32>
    %53 = arith.select %50, %48, %52 : vector<8x512xi1>, vector<8x512xf32>
    %c0_29 = arith.constant 0 : index
    %c0_30 = arith.constant 0 : index
    %54 = vector.load %arg10[%c0_29, %c0_30] : memref<1x512xf32, #tpu.memory_space<vmem>>, vector<1x512xf32>
    %c0_31 = arith.constant 0 : index
    %c0_32 = arith.constant 0 : index
    %55 = vector.load %arg11[%c0_31, %c0_32] : memref<1x512xf32, #tpu.memory_space<vmem>>, vector<1x512xf32>
    %cst_33 = arith.constant dense<0.000000e+00> : vector<8xf32>
    %56 = vector.multi_reduction <add>, %53, %cst_33 [1] : vector<8x512xf32> to vector<8xf32>
    %57 = vector.shape_cast %56 : vector<8xf32> to vector<8x1xf32>
    %58 = arith.mulf %53, %53 : vector<8x512xf32>
    %cst_34 = arith.constant dense<0.000000e+00> : vector<8xf32>
    %59 = vector.multi_reduction <add>, %58, %cst_34 [1] : vector<8x512xf32> to vector<8xf32>
    %60 = vector.shape_cast %59 : vector<8xf32> to vector<8x1xf32>
    %cst_35 = arith.constant 2.000000e-03 : f32
    %61 = vector.broadcast %cst_35 : f32 to vector<8x1xf32>
    %62 = arith.mulf %57, %61 : vector<8x1xf32>
    %cst_36 = arith.constant 2.000000e-03 : f32
    %63 = vector.broadcast %cst_36 : f32 to vector<8x1xf32>
    %64 = arith.mulf %60, %63 : vector<8x1xf32>
    %65 = arith.mulf %62, %62 : vector<8x1xf32>
    %66 = arith.subf %64, %65 : vector<8x1xf32>
    %cst_37 = arith.constant 0.000000e+00 : f32
    %67 = vector.broadcast %cst_37 : f32 to vector<8x1xf32>
    %68 = arith.maximumf %66, %67 : vector<8x1xf32>
    %cst_38 = arith.constant 9.99999974E-6 : f32
    %69 = vector.broadcast %cst_38 : f32 to vector<8x1xf32>
    %70 = arith.addf %68, %69 : vector<8x1xf32>
    %71 = math.rsqrt %70 : vector<8x1xf32>
    %72 = vector.broadcast %62 : vector<8x1xf32> to vector<8x512xf32>
    %73 = arith.subf %53, %72 : vector<8x512xf32>
    %74 = vector.broadcast %71 : vector<8x1xf32> to vector<8x512xf32>
    %75 = arith.mulf %73, %74 : vector<8x512xf32>
    %76 = vector.broadcast %54 : vector<1x512xf32> to vector<8x512xf32>
    %77 = arith.mulf %75, %76 : vector<8x512xf32>
    %78 = vector.broadcast %55 : vector<1x512xf32> to vector<8x512xf32>
    %79 = arith.addf %77, %78 : vector<8x512xf32>
    %80 = arith.truncf %79 : vector<8x512xf32> to vector<8x512xbf16>
    %c0_39 = arith.constant 0 : index
    %c0_40 = arith.constant 0 : index
    %81 = vector.load %arg12[%c0_39, %c0_40] : memref<512x256xbf16, #tpu.memory_space<vmem>>, vector<512x256xbf16>
    %cst_41 = arith.constant dense<0.000000e+00> : vector<8x256xf32>
    %82 = tpu.matmul %80, %81, %cst_41 {dimension_numbers = #tpu.dot_dimension_numbers<[1], [0], [0], [1], [0, 0, 1, 1], [], []>} : vector<8x512xbf16>, vector<512x256xbf16>, vector<8x256xf32> -> vector<8x256xf32>
    %c0_42 = arith.constant 0 : index
    %c0_43 = arith.constant 0 : index
    %83 = vector.load %arg13[%c0_42, %c0_43] : memref<1x256xf32, #tpu.memory_space<vmem>>, vector<1x256xf32>
    %84 = vector.broadcast %83 : vector<1x256xf32> to vector<8x256xf32>
    %85 = arith.addf %82, %84 : vector<8x256xf32>
    %86 = arith.negf %85 : vector<8x256xf32>
    %87 = math.exp %86 : vector<8x256xf32>
    %cst_44 = arith.constant 1.000000e+00 : f32
    %88 = vector.broadcast %cst_44 : f32 to vector<8x256xf32>
    %89 = arith.addf %88, %87 : vector<8x256xf32>
    %90 = arith.divf %88, %89 : vector<8x256xf32>
    %c0_45 = arith.constant 0 : index
    %c0_46 = arith.constant 0 : index
    %91 = vector.load %arg14[%c0_45, %c0_46] : memref<8x256xf32, #tpu.memory_space<vmem>>, vector<8x256xf32>
    tpu.vector_store %arg14[%c0_45, %c0_46], %90 {strides = array<i32>} : memref<8x256xf32, #tpu.memory_space<vmem>>, vector<8x256xf32>,
    return
  }
  func.func @transform_0(%arg0: i32) -> (i32, i32) {
    %c0_i32 = arith.constant 0 : i32
    %c0_i32_0 = arith.constant 0 : i32
    return %arg0, %c0_i32 : i32, i32
  }
  func.func @transform_1(%arg0: i32) -> (i32, i32) {
    %c0_i32 = arith.constant 0 : i32
    %c0_i32_0 = arith.constant 0 : i32
    return %arg0, %c0_i32 : i32, i32
  }
  func.func @transform_2(%arg0: i32) -> (i32, i32) {
    %c0_i32 = arith.constant 0 : i32
    %c0_i32_0 = arith.constant 0 : i32
    %c0_i32_1 = arith.constant 0 : i32
    return %c0_i32, %c0_i32_0 : i32, i32
  }
  func.func @transform_3(%arg0: i32) -> (i32, i32) {
    %c0_i32 = arith.constant 0 : i32
    %c0_i32_0 = arith.constant 0 : i32
    %c0_i32_1 = arith.constant 0 : i32
    return %c0_i32, %c0_i32_0 : i32, i32
  }
  func.func @transform_4(%arg0: i32) -> (i32, i32) {
    %c0_i32 = arith.constant 0 : i32
    %c0_i32_0 = arith.constant 0 : i32
    %c0_i32_1 = arith.constant 0 : i32
    return %c0_i32, %c0_i32_0 : i32, i32
  }
  func.func @transform_5(%arg0: i32) -> (i32, i32) {
    %c0_i32 = arith.constant 0 : i32
    %c0_i32_0 = arith.constant 0 : i32
    %c0_i32_1 = arith.constant 0 : i32
    return %c0_i32, %c0_i32_0 : i32, i32
  }
  func.func @transform_6(%arg0: i32) -> (i32, i32) {
    %c0_i32 = arith.constant 0 : i32
    %c0_i32_0 = arith.constant 0 : i32
    %c0_i32_1 = arith.constant 0 : i32
    return %c0_i32, %c0_i32_0 : i32, i32
  }
  func.func @transform_7(%arg0: i32) -> (i32, i32) {
    %c0_i32 = arith.constant 0 : i32
    %c0_i32_0 = arith.constant 0 : i32
    %c0_i32_1 = arith.constant 0 : i32
    return %c0_i32, %c0_i32_0 : i32, i32
  }
  func.func @transform_8(%arg0: i32) -> (i32, i32) {
    %c0_i32 = arith.constant 0 : i32
    %c0_i32_0 = arith.constant 0 : i32
    %c0_i32_1 = arith.constant 0 : i32
    return %c0_i32, %c0_i32_0 : i32, i32
  }
  func.func @transform_9(%arg0: i32) -> (i32, i32) {
    %c0_i32 = arith.constant 0 : i32
    %c0_i32_0 = arith.constant 0 : i32
    %c0_i32_1 = arith.constant 0 : i32
    return %c0_i32, %c0_i32_0 : i32, i32
  }
  func.func @transform_10(%arg0: i32) -> (i32, i32) {
    %c0_i32 = arith.constant 0 : i32
    %c0_i32_0 = arith.constant 0 : i32
    %c0_i32_1 = arith.constant 0 : i32
    return %c0_i32, %c0_i32_0 : i32, i32
  }
  func.func @transform_11(%arg0: i32) -> (i32, i32) {
    %c0_i32 = arith.constant 0 : i32
    %c0_i32_0 = arith.constant 0 : i32
    %c0_i32_1 = arith.constant 0 : i32
    return %c0_i32, %c0_i32_0 : i32, i32
  }
  func.func @transform_12(%arg0: i32) -> (i32, i32) {
    %c0_i32 = arith.constant 0 : i32
    %c0_i32_0 = arith.constant 0 : i32
    %c0_i32_1 = arith.constant 0 : i32
    return %c0_i32, %c0_i32_0 : i32, i32
  }
  func.func @transform_13(%arg0: i32) -> (i32, i32) {
    %c0_i32 = arith.constant 0 : i32
    %c0_i32_0 = arith.constant 0 : i32
    return %arg0, %c0_i32 : i32, i32
  }
}

</mosaic_0001>

<bundles_post_ra>
// kernel: generator_forward.1
= control target key start
LH: loop header
LB: loop body
LE: loop exit
PB: predicated region body
PF: predicated region fallthrough
CT: control target
= control target key end

     0   :  { %18 = vsyncpa [#allocation3], 0  ;;  %s7803_s0 = inlined_call_operand.hbm [shape: f32[8,100], index: 0, kind: input, shape index: {}]   ;;  %s7804_s1 = inlined_call_operand.hbm [shape: f32[8,50], index: 1, kind: input, shape index: {}]   ;;  %s7805_s2 = inlined_call_operand.hbm [shape: bf16[100,1536], index: 2, kind: input, shape index: {}]   ;;  %s7806_s3 = inlined_call_operand.hbm [shape: bf16[50,1536], index: 3, kind: input, shape index: {}]   ;;  %s7807_s4 = inlined_call_operand.hbm [shape: f32[1,1536], index: 4, kind: input, shape index: {}]   ;;  %s7808_s5 = inlined_call_operand.hbm [shape: f32[1,1536], index: 5, kind: input, shape index: {}]   ;;  %s7809_s6 = inlined_call_operand.hbm [shape: f32[1,1536], index: 6, kind: input, shape index: {}]   ;;  %s7810_s7 = inlined_call_operand.hbm [shape: bf16[1536,512], index: 7, kind: input, shape index: {}]   ;;  %s7811_s8 = inlined_call_operand.hbm [shape: f32[1,512], index: 8, kind: input, shape index: {}]   ;;  %s7812_s9 = inlined_call_operand.hbm [shape: f32[1,512], index: 9, kind: input, shape index: {}]   ;;  %s7813_s10 = inlined_call_operand.hbm [shape: f32[1,512], index: 10, kind: input, shape index: {}]   ;;  %s7814_s11 = inlined_call_operand.hbm [shape: bf16[512,256], index: 11, kind: input, shape index: {}]   ;;  %s7815_s12 = inlined_call_operand.hbm [shape: f32[1,256], index: 12, kind: input, shape index: {}]   ;;  %s7816_s13 = inlined_call_operand.hbm [shape: f32[8,256], index: 13, kind: output, shape index: {}]  }
   0x1   :  { %19 = vsyncpa [#allocation6], 0 }
   0x2   :  { %20 = vsyncpa [#allocation9], 0 }
   0x3   :  { %21 = vsyncpa [#allocation12], 0 }
   0x4   :  { %22 = vsyncpa [#allocation15], 0 }
   0x5   :  { %23 = vsyncpa [#allocation18], 0 }
   0x6   :  { %24 = vsyncpa [#allocation21], 0 }
   0x7   :  { %25 = vsyncpa [#allocation4], 0  ;;  %s7144_s25 = smov [#allocation5]   ;;  %s6820_s29 = scalar_lea.hbm %s7804_s1, 128 }
   0x8   :  { %s42_s26 = sshll.u32 %s7144_s25, 4  ;;  %p6821_p0 = scmp.ne.s32.totalorder %s7804_s1, %s6820_s29  ;;  %s43_s26 = int_to_ptr.vmem [resolvable:$true] %s42_s26 }
   0x9   :  { %p6824_p1 = scmp.lt.u32.totalorder %s6820_s29, %s7804_s1 }
   0xb   :  { %p6826_p2 = pnand %p6824_p1, %p6821_p0 }
   0xd   :  { %6829 = shalt.err (!%p6826_p2)
}
   0xe   :  { %s6830_s17 = scalar_lea.vmem %s43_s26, 128  ;;  %p6835_p4 = scmp.lt.s32.totalorder %s43_s26, %s43_s26 }
   0xf   :  { %p6831_p3 = scmp.ne.s32.totalorder %s43_s26, %s6830_s17  ;;  %p6836_p5 = scmp.lt.s32.totalorder %s6830_s17, %s6830_s17 }
  0x11   :  { %p6837_p6 = por %p6836_p5, %p6835_p4 }
  0x13   :  { %p6838_p7 = pnand %p6837_p6, %p6831_p3 }
  0x15   :  { %6841 = shalt.err (!%p6838_p7)
}
  0x16   :  { %45 = dma.hbm_to_vmem [thread:$0]  %s7804_s1, 128, %s43_s26, [#allocation6]  }
  0x17   :  { %s7145_s20 = smov [#allocation8]   ;;  %s7146_s22 = smov [#allocation11]  }
  0x18   :  { %s63_s21 = sshll.u32 %s7145_s20, 4  ;;  %s86_s23 = sshll.u32 %s7146_s22, 4  ;;  %s64_s21 = int_to_ptr.vmem [resolvable:$true] %s63_s21  ;;  %s87_s23 = int_to_ptr.vmem [resolvable:$true] %s86_s23 }
  0x19   :  { %s6842_s27 = scalar_lea.hbm %s7806_s3, 5376 }
  0x1a   :  { %p6843_p8 = scmp.ne.s32.totalorder %s7806_s3, %s6842_s27  ;;  %p6846_p9 = scmp.lt.u32.totalorder %s6842_s27, %s7806_s3 }
  0x1c   :  { %p6848_p10 = pnand %p6846_p9, %p6843_p8 }
  0x1e   :  { %6851 = shalt.err (!%p6848_p10)
}
  0x1f   :  { %s6852_s1 = scalar_lea.vmem %s64_s21, 5376  ;;  %p6857_p12 = scmp.lt.s32.totalorder %s64_s21, %s64_s21 }
  0x20   :  { %p6853_p11 = scmp.ne.s32.totalorder %s64_s21, %s6852_s1  ;;  %p6858_p13 = scmp.lt.s32.totalorder %s6852_s1, %s6852_s1 }
  0x22   :  { %p6859_p0 = por %p6858_p13, %p6857_p12 }
  0x24   :  { %p6860_p1 = pnand %p6859_p0, %p6853_p11 }
  0x26   :  { %6863 = shalt.err (!%p6860_p1)
}
  0x27   :  { %s7147_s26 = smov 768   ;;  %s7148_s15 = smov 48  }
  0x28   :  { %69 = dma.hbm_to_vmem [thread:$0]  %s7806_s3, 5376, %s64_s21, [#allocation9], %s7147_s26, %s7147_s26, %s7148_s15  }
  0x29   :  { %s6864_s20 = scalar_lea.hbm %s7808_s5, 192 }
  0x2a   :  { %p6865_p2 = scmp.ne.s32.totalorder %s7808_s5, %s6864_s20  ;;  %p6868_p3 = scmp.lt.u32.totalorder %s6864_s20, %s7808_s5 }
  0x2c   :  { %p6870_p4 = pnand %p6868_p3, %p6865_p2 }
  0x2e   :  { %6873 = shalt.err (!%p6870_p4)
}
  0x2f   :  { %s6874_s28 = scalar_lea.vmem %s87_s23, 192  ;;  %p6879_p6 = scmp.lt.s32.totalorder %s87_s23, %s87_s23 }
  0x30   :  { %p6875_p5 = scmp.ne.s32.totalorder %s87_s23, %s6874_s28  ;;  %p6880_p7 = scmp.lt.s32.totalorder %s6874_s28, %s6874_s28 }
  0x32   :  { %p6881_p8 = por %p6880_p7, %p6879_p6 }
  0x34   :  { %p6882_p9 = pnand %p6881_p8, %p6875_p5 }
  0x36   :  { %6885 = shalt.err (!%p6882_p9)
}
  0x37   :  { %89 = dma.hbm_to_vmem [thread:$0]  %s7808_s5, 192, %s87_s23, [#allocation12]  }
  0x38   :  { %s7149_s29 = smov [#allocation14]   ;;  %s6886_s16 = scalar_lea.hbm %s7810_s7, 49152 }
  0x39   :  { %s105_s30 = sshll.u32 %s7149_s29, 4  ;;  %p6887_p10 = scmp.ne.s32.totalorder %s7810_s7, %s6886_s16  ;;  %s106_s30 = int_to_ptr.vmem [resolvable:$true] %s105_s30 }
  0x3a   :  { %p6890_p11 = scmp.lt.u32.totalorder %s6886_s16, %s7810_s7 }
  0x3c   :  { %p6892_p12 = pnand %p6890_p11, %p6887_p10 }
  0x3e   :  { %6895 = shalt.err (!%p6892_p12)
}
  0x3f   :  { %s6896_s22 = scalar_lea.vmem %s106_s30, 49152  ;;  %p6901_p0 = scmp.lt.s32.totalorder %s106_s30, %s106_s30 }
  0x40   :  { %p6897_p13 = scmp.ne.s32.totalorder %s106_s30, %s6896_s22  ;;  %p6902_p1 = scmp.lt.s32.totalorder %s6896_s22, %s6896_s22 }
  0x42   :  { %p6903_p2 = por %p6902_p1, %p6901_p0 }
  0x44   :  { %p6904_p3 = pnand %p6903_p2, %p6897_p13 }
  0x46   :  { %6907 = shalt.err (!%p6904_p3)
}
  0x47   :  { %s7150_s5 = smov 256   ;;  %s7151_s23 = smov 16  }
  0x48   :  { %111 = dma.hbm_to_vmem [thread:$0]  %s7810_s7, 49152, %s106_s30, [#allocation15], %s7150_s5, %s7150_s5, %s7151_s23  }
  0x49   :  { %s7152_s27 = smov [#allocation17]   ;;  %s7153_s3 = smov [#allocation20]  }
  0x4a   :  { %s128_s28 = sshll.u32 %s7152_s27, 4  ;;  %s147_s21 = sshll.u32 %s7153_s3, 4  ;;  %s129_s28 = int_to_ptr.vmem [resolvable:$true] %s128_s28  ;;  %s7286_s21 = int_to_ptr.vmem [resolvable:$true] %s147_s21 }
  0x4b   :  { %s6908_s1 = scalar_lea.hbm %s7812_s9, 64 }
  0x4c   :  { %p6909_p4 = scmp.ne.s32.totalorder %s7812_s9, %s6908_s1  ;;  %p6912_p5 = scmp.lt.u32.totalorder %s6908_s1, %s7812_s9 }
  0x4e   :  { %p6914_p6 = pnand %p6912_p5, %p6909_p4 }
  0x50   :  { %6917 = shalt.err (!%p6914_p6)
}
  0x51   :  { %s6918_s7 = scalar_lea.vmem %s129_s28, 64  ;;  %p6923_p8 = scmp.lt.s32.totalorder %s129_s28, %s129_s28 }
  0x52   :  { %p6919_p7 = scmp.ne.s32.totalorder %s129_s28, %s6918_s7  ;;  %p6924_p9 = scmp.lt.s32.totalorder %s6918_s7, %s6918_s7 }
  0x54   :  { %p6925_p10 = por %p6924_p9, %p6923_p8 }
  0x56   :  { %p6926_p11 = pnand %p6925_p10, %p6919_p7 }
  0x58   :  { %6929 = shalt.err (!%p6926_p11)
}
  0x59   :  { %131 = dma.hbm_to_vmem [thread:$0]  %s7812_s9, 64, %s129_s28, [#allocation18]  }
  0x5a   :  { %s6930_s23 = scalar_lea.hbm %s7814_s11, 8192 }
  0x5b   :  { %p6931_p12 = scmp.ne.s32.totalorder %s7814_s11, %s6930_s23  ;;  %p6934_p13 = scmp.lt.u32.totalorder %s6930_s23, %s7814_s11 }
  0x5d   :  { %p6936_p0 = pnand %p6934_p13, %p6931_p12 }
  0x5f   :  { %6939 = shalt.err (!%p6936_p0)
}
  0x60   :  { %s6940_s29 = scalar_lea.vmem %s7286_s21, 8192  ;;  %p6945_p2 = scmp.lt.s32.totalorder %s7286_s21, %s7286_s21 }
  0x61   :  { %p6941_p1 = scmp.ne.s32.totalorder %s7286_s21, %s6940_s29  ;;  %p6946_p3 = scmp.lt.s32.totalorder %s6940_s29, %s6940_s29 }
  0x63   :  { %p6947_p4 = por %p6946_p3, %p6945_p2 }
  0x65   :  { %p6948_p5 = pnand %p6947_p4, %p6941_p1 }
  0x67   :  { %6951 = shalt.err (!%p6948_p5)
}
  0x68   :  { %s7154_s9 = smov 128   ;;  %s7155_s28 = smov 8  }
  0x69   :  { %153 = dma.hbm_to_vmem [thread:$0]  %s7814_s11, 8192, %s7286_s21, [#allocation21], %s7154_s9, %s7154_s9, %s7155_s28  }
  0x6a   :  { %s7156_s16 = smov [#allocation2]   ;;  %s7157_s18 = smov [#allocation7]  }
  0x6b   :  { %s32_s17 = sshll.u32 %s7156_s16, 4  ;;  %s51_s19 = sshll.u32 %s7157_s18, 4  ;;  %s33_s17 = int_to_ptr.vmem [resolvable:$true] %s32_s17  ;;  %s7317_s19 = int_to_ptr.vmem [resolvable:$true] %s51_s19 }
  0x6c   :  { %s6952_s20 = scalar_lea.hbm %s7803_s0, 128 }
  0x6d   :  { %p6953_p6 = scmp.ne.s32.totalorder %s7803_s0, %s6952_s20  ;;  %p6956_p7 = scmp.lt.u32.totalorder %s6952_s20, %s7803_s0 }
  0x6f   :  { %p6958_p8 = pnand %p6956_p7, %p6953_p6 }
  0x71   :  { %6961 = shalt.err (!%p6958_p8)
}
  0x72   :  { %s6962_s11 = scalar_lea.vmem %s33_s17, 128  ;;  %p6967_p10 = scmp.lt.s32.totalorder %s33_s17, %s33_s17 }
  0x73   :  { %p6963_p9 = scmp.ne.s32.totalorder %s33_s17, %s6962_s11  ;;  %p6968_p11 = scmp.lt.s32.totalorder %s6962_s11, %s6962_s11 }
  0x75   :  { %p6969_p12 = por %p6968_p11, %p6967_p10 }
  0x77   :  { %p6970_p13 = pnand %p6969_p12, %p6963_p9 }
  0x79   :  { %6973 = shalt.err (!%p6970_p13)
}
  0x7a   :  { %35 = dma.hbm_to_vmem [thread:$0]  %s7803_s0, 128, %s33_s17, [#allocation3]  }
  0x7b   :  { %s6974_s29 = scalar_lea.hbm %s7805_s2, 9984 }
  0x7c   :  { %p6975_p0 = scmp.ne.s32.totalorder %s7805_s2, %s6974_s29  ;;  %p6978_p1 = scmp.lt.u32.totalorder %s6974_s29, %s7805_s2 }
  0x7e   :  { %p6980_p2 = pnand %p6978_p1, %p6975_p0 }
  0x80   :  { %6983 = shalt.err (!%p6980_p2)
}
  0x81   :  { %s6984_s16 = scalar_lea.vmem %s7317_s19, 9984  ;;  %p6989_p4 = scmp.lt.s32.totalorder %s7317_s19, %s7317_s19 }
  0x82   :  { %p6985_p3 = scmp.ne.s32.totalorder %s7317_s19, %s6984_s16  ;;  %p6990_p5 = scmp.lt.s32.totalorder %s6984_s16, %s6984_s16 }
  0x84   :  { %p6991_p6 = por %p6990_p5, %p6989_p4 }
  0x86   :  { %p6992_p7 = pnand %p6991_p6, %p6985_p3 }
  0x88   :  { %6995 = shalt.err (!%p6992_p7)
}
  0x89   :  { %57 = dma.hbm_to_vmem [thread:$0]  %s7805_s2, 9984, %s7317_s19, [#allocation6], %s7147_s26, %s7147_s26, %s7148_s15  }
  0x8a   :  { %s7158_s18 = smov [#allocation10]   ;;  %s7159_s30 = smov [#allocation13]  }
  0x8b   :  { %s76_s7 = sshll.u32 %s7158_s18, 4  ;;  %s96_s20 = sshll.u32 %s7159_s30, 4  ;;  %s77_s7 = int_to_ptr.vmem [resolvable:$true] %s76_s7  ;;  %s97_s20 = int_to_ptr.vmem [resolvable:$true] %s96_s20 }
  0x8c   :  { %s6996_s23 = scalar_lea.hbm %s7807_s4, 192 }
  0x8d   :  { %p6997_p8 = scmp.ne.s32.totalorder %s7807_s4, %s6996_s23  ;;  %p7000_p9 = scmp.lt.u32.totalorder %s6996_s23, %s7807_s4 }
  0x8f   :  { %p7002_p10 = pnand %p7000_p9, %p6997_p8 }
  0x91   :  { %7005 = shalt.err (!%p7002_p10)
}
  0x92   :  { %s7006_s2 = scalar_lea.vmem %s77_s7, 192  ;;  %p7011_p12 = scmp.lt.s32.totalorder %s77_s7, %s77_s7 }
  0x93   :  { %p7007_p11 = scmp.ne.s32.totalorder %s77_s7, %s7006_s2  ;;  %p7012_p13 = scmp.lt.s32.totalorder %s7006_s2, %s7006_s2 }
  0x95   :  { %p7013_p0 = por %p7012_p13, %p7011_p12 }
  0x97   :  { %p7014_p1 = pnand %p7013_p0, %p7007_p11 }
  0x99   :  { %7017 = shalt.err (!%p7014_p1)
}
  0x9a   :  { %79 = dma.hbm_to_vmem [thread:$0]  %s7807_s4, 192, %s77_s7, [#allocation9]  }
  0x9b   :  { %s7018_s3 = scalar_lea.hbm %s7809_s6, 192 }
  0x9c   :  { %p7019_p2 = scmp.ne.s32.totalorder %s7809_s6, %s7018_s3  ;;  %p7022_p3 = scmp.lt.u32.totalorder %s7018_s3, %s7809_s6 }
  0x9e   :  { %p7024_p4 = pnand %p7022_p3, %p7019_p2 }
  0xa0   :  { %7027 = shalt.err (!%p7024_p4)
}
  0xa1   :  { %s7028_s1 = scalar_lea.vmem %s97_s20, 192  ;;  %p7033_p6 = scmp.lt.s32.totalorder %s97_s20, %s97_s20 }
  0xa2   :  { %p7029_p5 = scmp.ne.s32.totalorder %s97_s20, %s7028_s1  ;;  %p7034_p7 = scmp.lt.s32.totalorder %s7028_s1, %s7028_s1 }
  0xa4   :  { %p7035_p8 = por %p7034_p7, %p7033_p6 }
  0xa6   :  { %p7036_p9 = pnand %p7035_p8, %p7029_p5 }
  0xa8   :  { %7039 = shalt.err (!%p7036_p9)
}
  0xa9   :  { %99 = dma.hbm_to_vmem [thread:$0]  %s7809_s6, 192, %s97_s20, [#allocation12]  }
  0xaa   :  { %s7160_s0 = smov [#allocation16]   ;;  %s7161_s18 = smov [#allocation19]  }
  0xab   :  { %s118_s17 = sshll.u32 %s7160_s0, 4  ;;  %s138_s7 = sshll.u32 %s7161_s18, 4  ;;  %s119_s17 = int_to_ptr.vmem [resolvable:$true] %s118_s17  ;;  %s139_s7 = int_to_ptr.vmem [resolvable:$true] %s138_s7 }
  0xac   :  { %s7040_s5 = scalar_lea.hbm %s7811_s8, 64 }
  0xad   :  { %p7041_p10 = scmp.ne.s32.totalorder %s7811_s8, %s7040_s5  ;;  %p7044_p11 = scmp.lt.u32.totalorder %s7040_s5, %s7811_s8 }
  0xaf   :  { %p7046_p12 = pnand %p7044_p11, %p7041_p10 }
  0xb1   :  { %7049 = shalt.err (!%p7046_p12)
}
  0xb2   :  { %s7050_s6 = scalar_lea.vmem %s119_s17, 64  ;;  %p7055_p0 = scmp.lt.s32.totalorder %s119_s17, %s119_s17 }
  0xb3   :  { %p7051_p13 = scmp.ne.s32.totalorder %s119_s17, %s7050_s6  ;;  %p7056_p1 = scmp.lt.s32.totalorder %s7050_s6, %s7050_s6 }
  0xb5   :  { %p7057_p2 = por %p7056_p1, %p7055_p0 }
  0xb7   :  { %p7058_p3 = pnand %p7057_p2, %p7051_p13 }
  0xb9   :  { %7061 = shalt.err (!%p7058_p3)
}
  0xba   :  { %121 = dma.hbm_to_vmem [thread:$0]  %s7811_s8, 64, %s119_s17, [#allocation15]  }
  0xbb   :  { %s7062_s15 = scalar_lea.hbm %s7813_s10, 64 }
  0xbc   :  { %p7063_p4 = scmp.ne.s32.totalorder %s7813_s10, %s7062_s15  ;;  %p7066_p5 = scmp.lt.u32.totalorder %s7062_s15, %s7813_s10 }
  0xbe   :  { %p7068_p6 = pnand %p7066_p5, %p7063_p4 }
  0xc0   :  { %7071 = shalt.err (!%p7068_p6)
}
  0xc1   :  { %s7072_s9 = scalar_lea.vmem %s139_s7, 64  ;;  %p7077_p8 = scmp.lt.s32.totalorder %s139_s7, %s139_s7 }
  0xc2   :  { %p7073_p7 = scmp.ne.s32.totalorder %s139_s7, %s7072_s9  ;;  %p7078_p9 = scmp.lt.s32.totalorder %s7072_s9, %s7072_s9 }
  0xc4   :  { %p7079_p10 = por %p7078_p9, %p7077_p8 }
  0xc6   :  { %p7080_p11 = pnand %p7079_p10, %p7073_p7 }
  0xc8   :  { %7083 = shalt.err (!%p7080_p11)
}
  0xc9   :  { %141 = dma.hbm_to_vmem [thread:$0]  %s7813_s10, 64, %s139_s7, [#allocation18]  }
  0xca   :  { %s7162_s14 = smov [#allocation22]   ;;  %s7084_s0 = scalar_lea.hbm %s7815_s12, 32 }
  0xcb   :  { %s160_s1 = sshll.u32 %s7162_s14, 4  ;;  %p7085_p12 = scmp.ne.s32.totalorder %s7815_s12, %s7084_s0  ;;  %s161_s1 = int_to_ptr.vmem [resolvable:$true] %s160_s1 }
  0xcc   :  { %p7088_p13 = scmp.lt.u32.totalorder %s7084_s0, %s7815_s12 }
  0xce   :  { %p7090_p0 = pnand %p7088_p13, %p7085_p12 }
  0xd0   :  { %7093 = shalt.err (!%p7090_p0)
}
  0xd1   :  { %s7094_s5 = scalar_lea.vmem %s161_s1, 32  ;;  %p7099_p2 = scmp.lt.s32.totalorder %s161_s1, %s161_s1 }
  0xd2   :  { %p7095_p1 = scmp.ne.s32.totalorder %s161_s1, %s7094_s5  ;;  %p7100_p3 = scmp.lt.s32.totalorder %s7094_s5, %s7094_s5 }
  0xd4   :  { %p7101_p4 = por %p7100_p3, %p7099_p2 }
  0xd6   :  { %p7102_p5 = pnand %p7101_p4, %p7095_p1 }
  0xd8   :  { %7105 = shalt.err (!%p7102_p5)
}
  0xd9   :  { %163 = dma.hbm_to_vmem [thread:$0]  %s7815_s12, 32, %s161_s1, [#allocation21]  }
  0xda   :  { %7128 = dma.done.wait [#allocation3], 128  }
  0xdb   :  { %7129 = vsyncadd [#allocation3], 4294967168 }
  0xdc   :  { %7130 = dma.done.wait [#allocation6], 10112  }
  0xdd   :  { %7131 = vsyncadd [#allocation6], 4294957184 }
  0xde   :  { %7132 = dma.done.wait [#allocation9], 5568  }
  0xdf   :  { %7133 = vsyncadd [#allocation9], 4294961728 }
  0xe0   :  { %7134 = dma.done.wait [#allocation12], 384  }
  0xe1   :  { %7135 = vsyncadd [#allocation12], 4294966912 }
  0xe2   :  { %7136 = dma.done.wait [#allocation15], 49216  }
  0xe3   :  { %7137 = vsyncadd [#allocation15], 4294918080 }
  0xe4   :  { %7138 = dma.done.wait [#allocation18], 128  }
  0xe5   :  { %7139 = vsyncadd [#allocation18], 4294967168 }
  0xe6   :  { %7140 = dma.done.wait [#allocation21], 8224  }
  0xe7   :  { %7141 = vsyncadd [#allocation21], 4294959072  ;;  %v7163_v0 = vmov 0   ;;  %v5950_v1 = vld [vmem:[#allocation8 + $0x4] ss:$48 sps:$4 sm:$0xff]   ;;  %vm542_vm0 = vcmask 1040384  }
  0xe8   :  { %611 = vmatprep.mubr.bf16.mxu0 %v7163_v0  ;;  %652 = vmatprep.mubr.bf16.mxu1 %v7163_v0  ;;  %v5952_v2 = vld [vmem:[#allocation8 + $0xc] ss:$48 sps:$4 sm:$0xff]   ;;  %v5954_v3 = vld [vmem:[#allocation8] ss:$48 sps:$4 sm:$0xff]   ;;  %v5955_v4 = vld [vmem:[#allocation8 + $0x8] ss:$48 sps:$4 sm:$0xff]  }
  0xe9   :  { %579 = vmatprep.subr.bf16.mxu0 %v5950_v1  ;;  %620 = vmatprep.subr.bf16.mxu1 %v5952_v2  ;;  %v5956_v5 = vld [vmem:[#allocation8 + $0x64] ss:$48 sps:$4 sm:$0xff]   ;;  %v5958_v6 = vld [vmem:[#allocation8 + $0x6c] ss:$48 sps:$4 sm:$0xff]   ;;  %v5960_v7 = vld [vmem:[#allocation8 + $0x60] ss:$48 sps:$4 sm:$0xff]  }
  0xea   :  { %580 = vmatpush1.bf16.msra.mxu0 %v5954_v3  ;;  %621 = vmatpush1.bf16.msra.mxu1 %v5955_v4  ;;  %v5961_v8 = vld [vmem:[#allocation8 + $0x68] ss:$48 sps:$4 sm:$0xff]   ;;  %v5962_v9 = vld [vmem:[#allocation8 + $0xc4] ss:$48 sps:$4 sm:$0xff]   ;;  %v5964_v10 = vld [vmem:[#allocation8 + $0xcc] ss:$48 sps:$4 sm:$0xff]  }
  0xeb   :  { %581 = vmatprep.subr.bf16.mxu0 %v5956_v5  ;;  %622 = vmatprep.subr.bf16.mxu1 %v5958_v6  ;;  %v5966_v11 = vld [vmem:[#allocation8 + $0xc0] ss:$48 sps:$4 sm:$0xff]   ;;  %v5967_v12 = vld [vmem:[#allocation8 + $0xc8] ss:$48 sps:$4 sm:$0xff]   ;;  %v5974_v20 = vld [vmem:[#allocation8 + $0x14] ss:$48 sps:$4 sm:$0xff]  }
  0xec   :  { %v322_v13 = vld [vmem:[#allocation8 + $0x120] sm:$0x11]  ;;  %v323_v14 = vld [vmem:[#allocation8 + $0x128] sm:$0x11]  ;;  %vm538_vm1 = vcmask 408576   ;;  %vm1219_vm2 = vcmask 1041408  }
  0xed   :  { %v5312_v15 = vcombine.high %v322_v13, %v322_v13  ;;  %v5314_v16 = vcombine.high %v323_v14, %v323_v14  ;;  %v5311_v17 = vcombine.low %v322_v13, %v322_v13  ;;  %v5313_v18 = vcombine.low %v323_v14, %v323_v14  ;;  %v206_v19 = vld [vmem:[#allocation5] sm:$0xff]  ;;  %v5972_v25 = vld [vmem:[#allocation8 + $0x10] ss:$48 sps:$4 sm:$0xff]   ;;  %v5980_v27 = vld [vmem:[#allocation8 + $0x74] ss:$48 sps:$4 sm:$0xff]   ;;  %s7164_s12 = smov [#allocation23]  }
  0xee   :  { %582 = vmatpush1.bf16.msra.mxu0 %v5960_v7  ;;  %623 = vmatpush1.bf16.msra.mxu1 %v5961_v8  ;;  %v5977_v23 = vld [vmem:[#allocation8 + $0x1c] ss:$48 sps:$4 sm:$0xff]   ;;  %v7417_v24 = vpack.c.bf16 %v206_v19, %v206_v19  ;;  %v5975_v26 = vld [vmem:[#allocation8 + $0x18] ss:$48 sps:$4 sm:$0xff]   ;;  %v5978_v29 = vld [vmem:[#allocation8 + $0x70] ss:$48 sps:$4 sm:$0xff]  }
  0xef   :  { %583 = vmatprep.subr.bf16.mxu0 %v5962_v9  ;;  %624 = vmatprep.subr.bf16.mxu1 %v5964_v10  ;;  %v544_v21 = vsel %vm542_vm0, %v5311_v17, 0  ;;  %v550_v22 = vsel %vm542_vm0, %v5313_v18, 0  ;;  %v5983_v28 = vld [vmem:[#allocation8 + $0x7c] ss:$48 sps:$4 sm:$0xff]   ;;  %v5981_v30 = vld [vmem:[#allocation8 + $0x78] ss:$48 sps:$4 sm:$0xff]  }
  0xf0   :  { %v5986_v31 = vld [vmem:[#allocation8 + $0xd4] ss:$48 sps:$4 sm:$0xff]   ;;  %v5989_v32 = vld [vmem:[#allocation8 + $0xdc] ss:$48 sps:$4 sm:$0xff]   ;;  %v5984_v35 = vld [vmem:[#allocation8 + $0xd0] ss:$48 sps:$4 sm:$0xff]  }
  0xf1   :  { %v324_v33 = vld [vmem:[#allocation8 + $0x130] sm:$0x11]  ;;  %v325_v34 = vld [vmem:[#allocation8 + $0x138] sm:$0x11]  ;;  %v326_v53 = vld [vmem:[#allocation8 + $0x140] sm:$0x11] }
  0xf2   :  { %584 = vmatpush1.bf16.msra.mxu0 %v5966_v11  ;;  %625 = vmatpush1.bf16.msra.mxu1 %v5967_v12  ;;  %v5987_v36 = vld [vmem:[#allocation8 + $0xd8] ss:$48 sps:$4 sm:$0xff]   ;;  %v5316_v37 = vcombine.high %v324_v33, %v324_v33  ;;  %v5318_v38 = vcombine.high %v325_v34, %v325_v34  ;;  %v5315_v39 = vcombine.low %v324_v33, %v324_v33  ;;  %v5996_v41 = vld [vmem:[#allocation8 + $0x24] ss:$48 sps:$4 sm:$0xff]   ;;  %v5999_v44 = vld [vmem:[#allocation8 + $0x2c] ss:$48 sps:$4 sm:$0xff]  }
  0xf3   :  { %5323 = vmatprep.subr.msk.bf16.mxu0 %vm542_vm0, %v5312_v15  ;;  %5325 = vmatprep.subr.msk.bf16.mxu1 %vm542_vm0, %v5314_v16  ;;  %v5317_v40 = vcombine.low %v325_v34, %v325_v34  ;;  %v5994_v45 = vld [vmem:[#allocation8 + $0x20] ss:$48 sps:$4 sm:$0xff]   ;;  %v5997_v46 = vld [vmem:[#allocation8 + $0x28] ss:$48 sps:$4 sm:$0xff]   ;;  %v6002_v47 = vld [vmem:[#allocation8 + $0x84] ss:$48 sps:$4 sm:$0xff]   ;;  %v5320_v57 = vcombine.high %v326_v53, %v326_v53  ;;  %v5319_v59 = vcombine.low %v326_v53, %v326_v53 }
  0xf4   :  { %v556_v42 = vsel %vm542_vm0, %v5315_v39, 0  ;;  %v6005_v48 = vld [vmem:[#allocation8 + $0x8c] ss:$48 sps:$4 sm:$0xff]   ;;  %v6000_v49 = vld [vmem:[#allocation8 + $0x80] ss:$48 sps:$4 sm:$0xff]   ;;  %vm1215_vm3 = vcmask 818176  }
  0xf5   :  { %v562_v43 = vsel %vm542_vm0, %v5317_v40, 0  ;;  %v6003_v50 = vld [vmem:[#allocation8 + $0x88] ss:$48 sps:$4 sm:$0xff]   ;;  %v6008_v51 = vld [vmem:[#allocation8 + $0xe4] ss:$48 sps:$4 sm:$0xff]   ;;  %v568_v62 = vsel %vm542_vm0, %v5319_v59, 0 }
  0xf6   :  { %586 = vmatpush1.bf16.msra.mxu0 %v544_v21  ;;  %627 = vmatpush1.bf16.msra.mxu1 %v550_v22  ;;  %v6011_v52 = vld [vmem:[#allocation8 + $0xec] ss:$48 sps:$4 sm:$0xff]   ;;  %v6006_v55 = vld [vmem:[#allocation8 + $0xe0] ss:$48 sps:$4 sm:$0xff]   ;;  %v6009_v56 = vld [vmem:[#allocation8 + $0xe8] ss:$48 sps:$4 sm:$0xff]  }
  0xf7   :  { %661 = vmatprep.subr.bf16.mxu0 %v5974_v20  ;;  %702 = vmatprep.subr.bf16.mxu1 %v5977_v23  ;;  %v327_v54 = vld [vmem:[#allocation8 + $0x148] sm:$0x11]  ;;  %v6018_v61 = vld [vmem:[#allocation7 + $0x4] ss:$48 sps:$4 sm:$0xff]   ;;  %v6016_v2 = vld [vmem:[#allocation7] ss:$48 sps:$4 sm:$0xff]  }
  0xf8   :  { %v5322_v58 = vcombine.high %v327_v54, %v327_v54  ;;  %v5321_v60 = vcombine.low %v327_v54, %v327_v54  ;;  %v6021_v1 = vld [vmem:[#allocation7 + $0xc] ss:$48 sps:$4 sm:$0xff]   ;;  %v6019_v3 = vld [vmem:[#allocation7 + $0x8] ss:$48 sps:$4 sm:$0xff]   ;;  %v6024_v4 = vld [vmem:[#allocation7 + $0x64] ss:$48 sps:$4 sm:$0xff]  }
  0xf9   :  { %5324 = vmatmul.mubr.msk.bf16.vlgmr.msra.gmra.mrb[0].mxu0 %vm538_vm1, %v7417_v24  ;;  %5326 = vmatmul.mubr.msk.bf16.vlgmr.msra.gmra.mrb[0].mxu1 %vm538_vm1, %v7417_v24  ;;  %v6027_v5 = vld [vmem:[#allocation7 + $0x6c] ss:$48 sps:$4 sm:$0xff]   ;;  %v6022_v6 = vld [vmem:[#allocation7 + $0x60] ss:$48 sps:$4 sm:$0xff]   ;;  %v6025_v7 = vld [vmem:[#allocation7 + $0x68] ss:$48 sps:$4 sm:$0xff]  }
  0xfa   :  { %662 = vmatpush1.bf16.msra.mxu0 %v5972_v25  ;;  %703 = vmatpush1.bf16.msra.mxu1 %v5975_v26  ;;  %v574_v63 = vsel %vm542_vm0, %v5321_v60, 0  ;;  %v6030_v8 = vld [vmem:[#allocation7 + $0xc4] ss:$48 sps:$4 sm:$0xff]   ;;  %v6033_v9 = vld [vmem:[#allocation7 + $0xcc] ss:$48 sps:$4 sm:$0xff]   ;;  %s5260_s23 = sshll.u32 %s7164_s12, 4  ;;  %s5261_s23 = int_to_ptr.vmem [resolvable:$true] %s5260_s23 }
  0xfb   :  { %663 = vmatprep.subr.bf16.mxu0 %v5980_v27  ;;  %704 = vmatprep.subr.bf16.mxu1 %v5983_v28  ;;  %v6028_v10 = vld [vmem:[#allocation7 + $0xc0] ss:$48 sps:$4 sm:$0xff]   ;;  %v6031_v11 = vld [vmem:[#allocation7 + $0xc8] ss:$48 sps:$4 sm:$0xff]   ;;  %v6036_v12 = vld [vmem:[#allocation7 + $0x124] ss:$48 sps:$4 sm:$0xff]   ;;  %p7111_p7 = scmp.lt.s32.totalorder %s5261_s23, %s5261_s23 }
  0xfc   :  { %693 = vmatprep.mubr.bf16.mxu0 %v7163_v0  ;;  %734 = vmatprep.mubr.bf16.mxu1 %v7163_v0  ;;  %v6039_v13 = vld [vmem:[#allocation7 + $0x12c] ss:$48 sps:$4 sm:$0xff]   ;;  %v6034_v14 = vld [vmem:[#allocation7 + $0x120] ss:$48 sps:$4 sm:$0xff]   ;;  %v6037_v15 = vld [vmem:[#allocation7 + $0x128] ss:$48 sps:$4 sm:$0xff]  }
  0xfd   :  { %v6042_v16 = vld [vmem:[#allocation7 + $0x184] ss:$48 sps:$4 sm:$0xff]   ;;  %v6045_v17 = vld [vmem:[#allocation7 + $0x18c] ss:$48 sps:$4 sm:$0xff]   ;;  %v6040_v18 = vld [vmem:[#allocation7 + $0x180] ss:$48 sps:$4 sm:$0xff]  }
  0xfe   :  { %664 = vmatpush1.bf16.msra.mxu0 %v5978_v29  ;;  %705 = vmatpush1.bf16.msra.mxu1 %v5981_v30  ;;  %v6043_v19 = vld [vmem:[#allocation7 + $0x188] ss:$48 sps:$4 sm:$0xff]   ;;  %v6048_v20 = vld [vmem:[#allocation7 + $0x1e4] ss:$48 sps:$4 sm:$0xff]   ;;  %v6051_v21 = vld [vmem:[#allocation7 + $0x1ec] ss:$48 sps:$4 sm:$0xff]  }
  0xff   :  { %665 = vmatprep.subr.bf16.mxu0 %v5986_v31  ;;  %706 = vmatprep.subr.bf16.mxu1 %v5989_v32  ;;  %v280_v22 = vld [vmem:[#allocation7 + $0x240] sm:$0x33]  ;;  %v281_v23 = vld [vmem:[#allocation7 + $0x248] sm:$0x33]  ;;  %v204_v30 = vld [vmem:[#allocation2] sm:$0xff]  ;;  %s7106_s24 = scalar_lea.vmem %s5261_s23, 256 }
 0x100   :  { %v6049_v25 = vld [vmem:[#allocation7 + $0x1e8] ss:$48 sps:$4 sm:$0xff]   ;;  %v5408_v26 = vcombine.high %v280_v22, %v280_v22  ;;  %v5410_v27 = vcombine.high %v281_v23, %v281_v23  ;;  %v5407_v28 = vcombine.low %v280_v22, %v280_v22  ;;  %v5409_v29 = vcombine.low %v281_v23, %v281_v23  ;;  %v6058_v31 = vld [vmem:[#allocation7 + $0x14] ss:$48 sps:$4 sm:$0xff]   ;;  %v6061_v34 = vld [vmem:[#allocation7 + $0x1c] ss:$48 sps:$4 sm:$0xff]   ;;  %p7107_p6 = scmp.ne.s32.totalorder %s5261_s23, %s7106_s24  ;;  %p7112_p8 = scmp.lt.s32.totalorder %s7106_s24, %s7106_s24 }
 0x101   :  { %v6067_v39 = vld [vmem:[#allocation7 + $0x7c] ss:$48 sps:$4 sm:$0xff]   ;;  %v6062_v40 = vld [vmem:[#allocation7 + $0x70] ss:$48 sps:$4 sm:$0xff]   ;;  %v6083_v53 = vld [vmem:[#allocation7 + $0x198] ss:$48 sps:$4 sm:$0xff]  }
 0x102   :  { %666 = vmatpush1.bf16.msra.mxu0 %v5984_v35  ;;  %707 = vmatpush1.bf16.msra.mxu1 %v5987_v36  ;;  %v1221_v32 = vsel %vm1219_vm2, %v5407_v28, 0  ;;  %v1227_v33 = vsel %vm1219_vm2, %v5409_v29, 0  ;;  %v7449_v35 = vpack.c.bf16 %v204_v30, %v204_v30  ;;  %v6056_v36 = vld [vmem:[#allocation7 + $0x10] ss:$48 sps:$4 sm:$0xff]   ;;  %v6088_v54 = vld [vmem:[#allocation7 + $0x1f4] ss:$48 sps:$4 sm:$0xff]   ;;  %p7113_p9 = por %p7112_p8, %p7111_p7 }
 0x103   :  { %5327 = vmatprep.subr.msk.bf16.mxu0 %vm542_vm0, %v5316_v37  ;;  %5329 = vmatprep.subr.msk.bf16.mxu1 %vm542_vm0, %v5318_v38  ;;  %v6059_v37 = vld [vmem:[#allocation7 + $0x18] ss:$48 sps:$4 sm:$0xff]   ;;  %v6064_v38 = vld [vmem:[#allocation7 + $0x74] ss:$48 sps:$4 sm:$0xff]  }
 0x104   :  { %v6089_v59 = vld [vmem:[#allocation7 + $0x1f8] ss:$48 sps:$4 sm:$0xff]   ;;  %v6128_v23 = vld [vmem:[#allocation7 + $0x204] ss:$48 sps:$4 sm:$0xff]   ;;  %p7114_p10 = pnand %p7113_p9, %p7107_p6 }
 0x105   :  { %v6123_v22 = vld [vmem:[#allocation7 + $0x1a8] ss:$48 sps:$4 sm:$0xff]  }
 0x106   :  { %668 = vmatpush1.bf16.msra.mxu0 %v556_v42  ;;  %709 = vmatpush1.bf16.msra.mxu1 %v562_v43  ;;  %v6070_v42 = vld [vmem:[#allocation7 + $0xd4] ss:$48 sps:$4 sm:$0xff]   ;;  %v6073_v43 = vld [vmem:[#allocation7 + $0xdc] ss:$48 sps:$4 sm:$0xff]  }
 0x107   :  { %743 = vmatprep.subr.bf16.mxu0 %v5996_v41  ;;  %784 = vmatprep.subr.bf16.mxu1 %v5999_v44  ;;  %v6065_v41 = vld [vmem:[#allocation7 + $0x78] ss:$48 sps:$4 sm:$0xff]   ;;  %v6068_v44 = vld [vmem:[#allocation7 + $0xd0] ss:$48 sps:$4 sm:$0xff]  }
 0x109   :  { %5328 = vmatmul.mubr.msk.bf16.vlgmr.msra.gmra.mrb[4].mxu0 %vm538_vm1, %v7417_v24  ;;  %5330 = vmatmul.mubr.msk.bf16.vlgmr.msra.gmra.mrb[4].mxu1 %vm538_vm1, %v7417_v24 }
 0x10a   :  { %744 = vmatpush1.bf16.msra.mxu0 %v5994_v45  ;;  %785 = vmatpush1.bf16.msra.mxu1 %v5997_v46  ;;  %v6071_v45 = vld [vmem:[#allocation7 + $0xd8] ss:$48 sps:$4 sm:$0xff]   ;;  %v6076_v46 = vld [vmem:[#allocation7 + $0x134] ss:$48 sps:$4 sm:$0xff]  }
 0x10b   :  { %745 = vmatprep.subr.bf16.mxu0 %v6002_v47  ;;  %786 = vmatprep.subr.bf16.mxu1 %v6005_v48  ;;  %v6079_v47 = vld [vmem:[#allocation7 + $0x13c] ss:$48 sps:$4 sm:$0xff]   ;;  %v6074_v48 = vld [vmem:[#allocation7 + $0x130] ss:$48 sps:$4 sm:$0xff]  }
 0x10c   :  { %775 = vmatprep.mubr.bf16.mxu0 %v7163_v0  ;;  %816 = vmatprep.mubr.bf16.mxu1 %v7163_v0 }
 0x10e   :  { %746 = vmatpush1.bf16.msra.mxu0 %v6000_v49  ;;  %787 = vmatpush1.bf16.msra.mxu1 %v6003_v50  ;;  %v6077_v49 = vld [vmem:[#allocation7 + $0x138] ss:$48 sps:$4 sm:$0xff]   ;;  %v6082_v50 = vld [vmem:[#allocation7 + $0x194] ss:$48 sps:$4 sm:$0xff]  }
 0x10f   :  { %747 = vmatprep.subr.bf16.mxu0 %v6008_v51  ;;  %788 = vmatprep.subr.bf16.mxu1 %v6011_v52  ;;  %v6085_v51 = vld [vmem:[#allocation7 + $0x19c] ss:$48 sps:$4 sm:$0xff]   ;;  %v6080_v52 = vld [vmem:[#allocation7 + $0x190] ss:$48 sps:$4 sm:$0xff]  }
 0x112   :  { %748 = vmatpush1.bf16.msra.mxu0 %v6006_v55  ;;  %789 = vmatpush1.bf16.msra.mxu1 %v6009_v56  ;;  %v6091_v55 = vld [vmem:[#allocation7 + $0x1fc] ss:$48 sps:$4 sm:$0xff]   ;;  %v282_v56 = vld [vmem:[#allocation7 + $0x250] sm:$0x33] }
 0x113   :  { %5331 = vmatprep.subr.msk.bf16.mxu0 %vm542_vm0, %v5320_v57  ;;  %5333 = vmatprep.subr.msk.bf16.mxu1 %vm542_vm0, %v5322_v58  ;;  %v283_v57 = vld [vmem:[#allocation7 + $0x258] sm:$0x33]  ;;  %v6086_v58 = vld [vmem:[#allocation7 + $0x1f0] ss:$48 sps:$4 sm:$0xff]   ;;  %v5412_v60 = vcombine.high %v282_v56, %v282_v56 }
 0x116   :  { %750 = vmatpush1.bf16.msra.mxu0 %v568_v62  ;;  %791 = vmatpush1.bf16.msra.mxu1 %v574_v63  ;;  %v5411_v62 = vcombine.low %v282_v56, %v282_v56  ;;  %v5413_v63 = vcombine.low %v283_v57, %v283_v57  ;;  %v6156_v56 = vld [vmem:[#allocation14 + $0x64] ss:$16 sps:$4 sm:$0xff]  }
 0x117   :  { %1256 = vmatprep.subr.bf16.mxu0 %v6018_v61  ;;  %1297 = vmatprep.subr.bf16.mxu1 %v6021_v1  ;;  %v5414_v61 = vcombine.high %v283_v57, %v283_v57  ;;  %v6098_v1 = vld [vmem:[#allocation7 + $0x24] ss:$48 sps:$4 sm:$0xff]  }
 0x119   :  { %5332 = vmatmul.mubr.msk.bf16.vlgmr.msra.gmra.mrb[8].mxu0 %vm538_vm1, %v7417_v24  ;;  %5334 = vmatmul.mubr.msk.bf16.vlgmr.msra.gmra.mrb[8].mxu1 %vm538_vm1, %v7417_v24  ;;  %v6046_v24 = vld [vmem:[#allocation7 + $0x1e0] ss:$48 sps:$4 sm:$0xff]  }
 0x11a   :  { %1257 = vmatpush1.bf16.msra.mxu0 %v6016_v2  ;;  %1298 = vmatpush1.bf16.msra.mxu1 %v6019_v3  ;;  %v6101_v2 = vld [vmem:[#allocation7 + $0x2c] ss:$48 sps:$4 sm:$0xff]   ;;  %v1233_v3 = vsel %vm1219_vm2, %v5411_v62, 0 }
 0x11b   :  { %1258 = vmatprep.subr.bf16.mxu0 %v6024_v4  ;;  %1299 = vmatprep.subr.bf16.mxu1 %v6027_v5  ;;  %v1239_v4 = vsel %vm1219_vm2, %v5413_v63, 0  ;;  %v6096_v5 = vld [vmem:[#allocation7 + $0x20] ss:$48 sps:$4 sm:$0xff]  }
 0x11c   :  { %1288 = vmatprep.mubr.bf16.mxu0 %v7163_v0  ;;  %1329 = vmatprep.mubr.bf16.mxu1 %v7163_v0 }
 0x11e   :  { %1259 = vmatpush1.bf16.msra.mxu0 %v6022_v6  ;;  %1300 = vmatpush1.bf16.msra.mxu1 %v6025_v7  ;;  %v6099_v6 = vld [vmem:[#allocation7 + $0x28] ss:$48 sps:$4 sm:$0xff]   ;;  %v6104_v7 = vld [vmem:[#allocation7 + $0x84] ss:$48 sps:$4 sm:$0xff]  }
 0x11f   :  { %1260 = vmatprep.subr.bf16.mxu0 %v6030_v8  ;;  %1301 = vmatprep.subr.bf16.mxu1 %v6033_v9  ;;  %v6107_v8 = vld [vmem:[#allocation7 + $0x8c] ss:$48 sps:$4 sm:$0xff]   ;;  %v6102_v9 = vld [vmem:[#allocation7 + $0x80] ss:$48 sps:$4 sm:$0xff]  }
 0x122   :  { %1261 = vmatpush1.bf16.msra.mxu0 %v6028_v10  ;;  %1302 = vmatpush1.bf16.msra.mxu1 %v6031_v11  ;;  %v6105_v10 = vld [vmem:[#allocation7 + $0x88] ss:$48 sps:$4 sm:$0xff]   ;;  %v6110_v11 = vld [vmem:[#allocation7 + $0xe4] ss:$48 sps:$4 sm:$0xff]  }
 0x123   :  { %1262 = vmatprep.subr.bf16.mxu0 %v6036_v12  ;;  %1303 = vmatprep.subr.bf16.mxu1 %v6039_v13  ;;  %v6113_v12 = vld [vmem:[#allocation7 + $0xec] ss:$48 sps:$4 sm:$0xff]   ;;  %v6108_v13 = vld [vmem:[#allocation7 + $0xe0] ss:$48 sps:$4 sm:$0xff]  }
 0x126   :  { %1263 = vmatpush1.bf16.msra.mxu0 %v6034_v14  ;;  %1304 = vmatpush1.bf16.msra.mxu1 %v6037_v15  ;;  %v6111_v14 = vld [vmem:[#allocation7 + $0xe8] ss:$48 sps:$4 sm:$0xff]   ;;  %v6116_v15 = vld [vmem:[#allocation7 + $0x144] ss:$48 sps:$4 sm:$0xff]  }
 0x127   :  { %1264 = vmatprep.subr.bf16.mxu0 %v6042_v16  ;;  %1305 = vmatprep.subr.bf16.mxu1 %v6045_v17  ;;  %v6119_v16 = vld [vmem:[#allocation7 + $0x14c] ss:$48 sps:$4 sm:$0xff]   ;;  %v6114_v17 = vld [vmem:[#allocation7 + $0x140] ss:$48 sps:$4 sm:$0xff]  }
 0x12a   :  { %1265 = vmatpush1.bf16.msra.mxu0 %v6040_v18  ;;  %1306 = vmatpush1.bf16.msra.mxu1 %v6043_v19  ;;  %v6117_v18 = vld [vmem:[#allocation7 + $0x148] ss:$48 sps:$4 sm:$0xff]   ;;  %v6122_v19 = vld [vmem:[#allocation7 + $0x1a4] ss:$48 sps:$4 sm:$0xff]  }
 0x12b   :  { %1266 = vmatprep.subr.bf16.mxu0 %v6048_v20  ;;  %1307 = vmatprep.subr.bf16.mxu1 %v6051_v21  ;;  %v6125_v20 = vld [vmem:[#allocation7 + $0x1ac] ss:$48 sps:$4 sm:$0xff]   ;;  %v6120_v21 = vld [vmem:[#allocation7 + $0x1a0] ss:$48 sps:$4 sm:$0xff]  }
 0x12e   :  { %1267 = vmatpush1.bf16.msra.mxu0 %v6046_v24  ;;  %1308 = vmatpush1.bf16.msra.mxu1 %v6049_v25  ;;  %v6131_v24 = vld [vmem:[#allocation7 + $0x20c] ss:$48 sps:$4 sm:$0xff]   ;;  %v284_v25 = vld [vmem:[#allocation7 + $0x260] sm:$0x33] }
 0x12f   :  { %5419 = vmatprep.subr.msk.bf16.mxu0 %vm1219_vm2, %v5408_v26  ;;  %5421 = vmatprep.subr.msk.bf16.mxu1 %vm1219_vm2, %v5410_v27  ;;  %v6126_v26 = vld [vmem:[#allocation7 + $0x200] ss:$48 sps:$4 sm:$0xff]   ;;  %v6129_v27 = vld [vmem:[#allocation7 + $0x208] ss:$48 sps:$4 sm:$0xff]   ;;  %v5416_v28 = vcombine.high %v284_v25, %v284_v25  ;;  %v5415_v30 = vcombine.low %v284_v25, %v284_v25  ;;  %v6178_v25 = vld [vmem:[#allocation14 + $0xe0] ss:$16 sps:$4 sm:$0xff]  }
 0x132   :  { %1269 = vmatpush1.bf16.msra.mxu0 %v1221_v32  ;;  %1310 = vmatpush1.bf16.msra.mxu1 %v1227_v33  ;;  %v1245_v32 = vsel %vm1219_vm2, %v5415_v30, 0 }
 0x133   :  { %1338 = vmatprep.subr.bf16.mxu0 %v6058_v31  ;;  %1379 = vmatprep.subr.bf16.mxu1 %v6061_v34 }
 0x135   :  { %5420 = vmatmul.mubr.msk.bf16.vlgmr.msra.gmra.mrb[12].mxu0 %vm1215_vm3, %v7449_v35  ;;  %5422 = vmatmul.mubr.msk.bf16.vlgmr.msra.gmra.mrb[12].mxu1 %vm1215_vm3, %v7449_v35 }
 0x136   :  { %1339 = vmatpush1.bf16.msra.mxu0 %v6056_v36  ;;  %1380 = vmatpush1.bf16.msra.mxu1 %v6059_v37 }
 0x137   :  { %1340 = vmatprep.subr.bf16.mxu0 %v6064_v38  ;;  %1381 = vmatprep.subr.bf16.mxu1 %v6067_v39 }
 0x138   :  { %1370 = vmatprep.mubr.bf16.mxu0 %v7163_v0  ;;  %1411 = vmatprep.mubr.bf16.mxu1 %v7163_v0 }
 0x13a   :  { %1341 = vmatpush1.bf16.msra.mxu0 %v6062_v40  ;;  %1382 = vmatpush1.bf16.msra.mxu1 %v6065_v41 }
 0x13b   :  { %1342 = vmatprep.subr.bf16.mxu0 %v6070_v42  ;;  %1383 = vmatprep.subr.bf16.mxu1 %v6073_v43  ;;  %v6136_v43 = vld [vmem:[#allocation14] ss:$16 sps:$4 sm:$0xff]  }
 0x13e   :  { %1343 = vmatpush1.bf16.msra.mxu0 %v6068_v44  ;;  %1384 = vmatpush1.bf16.msra.mxu1 %v6071_v45  ;;  %v6138_v44 = vld [vmem:[#allocation14 + $0x4] ss:$16 sps:$4 sm:$0xff]   ;;  %v6139_v45 = vld [vmem:[#allocation14 + $0x200] ss:$16 sps:$4 sm:$0xff]  }
 0x13f   :  { %1344 = vmatprep.subr.bf16.mxu0 %v6076_v46  ;;  %1385 = vmatprep.subr.bf16.mxu1 %v6079_v47  ;;  %v6141_v46 = vld [vmem:[#allocation14 + $0x204] ss:$16 sps:$4 sm:$0xff]  }
 0x140   :  { %v6144_v47 = vld [vmem:[#allocation14 + $0x24] ss:$16 sps:$4 sm:$0xff]  }
 0x142   :  { %1345 = vmatpush1.bf16.msra.mxu0 %v6074_v48  ;;  %1386 = vmatpush1.bf16.msra.mxu1 %v6077_v49  ;;  %v6147_v48 = vld [vmem:[#allocation14 + $0x224] ss:$16 sps:$4 sm:$0xff]   ;;  %v6145_v49 = vld [vmem:[#allocation14 + $0x220] ss:$16 sps:$4 sm:$0xff]  }
 0x143   :  { %1346 = vmatprep.subr.bf16.mxu0 %v6082_v50  ;;  %1387 = vmatprep.subr.bf16.mxu1 %v6085_v51  ;;  %v6150_v50 = vld [vmem:[#allocation14 + $0x44] ss:$16 sps:$4 sm:$0xff]  }
 0x144   :  { %v6153_v51 = vld [vmem:[#allocation14 + $0x244] ss:$16 sps:$4 sm:$0xff]  }
 0x146   :  { %1347 = vmatpush1.bf16.msra.mxu0 %v6080_v52  ;;  %1388 = vmatpush1.bf16.msra.mxu1 %v6083_v53  ;;  %v6148_v52 = vld [vmem:[#allocation14 + $0x40] ss:$16 sps:$4 sm:$0xff]  }
 0x147   :  { %1348 = vmatprep.subr.bf16.mxu0 %v6088_v54  ;;  %1389 = vmatprep.subr.bf16.mxu1 %v6091_v55  ;;  %v6151_v55 = vld [vmem:[#allocation14 + $0x240] ss:$16 sps:$4 sm:$0xff]  }
 0x14a   :  { %1349 = vmatpush1.bf16.msra.mxu0 %v6086_v58  ;;  %1390 = vmatpush1.bf16.msra.mxu1 %v6089_v59  ;;  %v6159_v59 = vld [vmem:[#allocation14 + $0x264] ss:$16 sps:$4 sm:$0xff]  }
 0x14b   :  { %5423 = vmatprep.subr.msk.bf16.mxu0 %vm1219_vm2, %v5412_v60  ;;  %5425 = vmatprep.subr.msk.bf16.mxu1 %vm1219_vm2, %v5414_v61 }
 0x14e   :  { %1351 = vmatpush1.bf16.msra.mxu0 %v1233_v3  ;;  %1392 = vmatpush1.bf16.msra.mxu1 %v1239_v4  ;;  %v6162_v3 = vld [vmem:[#allocation14 + $0x84] ss:$16 sps:$4 sm:$0xff]  }
 0x14f   :  { %1420 = vmatprep.subr.bf16.mxu0 %v6098_v1  ;;  %1461 = vmatprep.subr.bf16.mxu1 %v6101_v2  ;;  %v6154_v1 = vld [vmem:[#allocation14 + $0x60] ss:$16 sps:$4 sm:$0xff]   ;;  %v6165_v4 = vld [vmem:[#allocation14 + $0x284] ss:$16 sps:$4 sm:$0xff]  }
 0x150   :  { %v6157_v2 = vld [vmem:[#allocation14 + $0x260] ss:$16 sps:$4 sm:$0xff]  }
 0x151   :  { %5424 = vmatmul.mubr.msk.bf16.vlgmr.msra.gmra.mrb[16].mxu0 %vm1215_vm3, %v7449_v35  ;;  %5426 = vmatmul.mubr.msk.bf16.vlgmr.msra.gmra.mrb[16].mxu1 %vm1215_vm3, %v7449_v35 }
 0x152   :  { %1421 = vmatpush1.bf16.msra.mxu0 %v6096_v5  ;;  %1462 = vmatpush1.bf16.msra.mxu1 %v6099_v6  ;;  %v6160_v5 = vld [vmem:[#allocation14 + $0x80] ss:$16 sps:$4 sm:$0xff]  }
 0x153   :  { %1422 = vmatprep.subr.bf16.mxu0 %v6104_v7  ;;  %1463 = vmatprep.subr.bf16.mxu1 %v6107_v8  ;;  %v6163_v6 = vld [vmem:[#allocation14 + $0x280] ss:$16 sps:$4 sm:$0xff]   ;;  %v6168_v7 = vld [vmem:[#allocation14 + $0xa4] ss:$16 sps:$4 sm:$0xff]  }
 0x154   :  { %1452 = vmatprep.mubr.bf16.mxu0 %v7163_v0  ;;  %1493 = vmatprep.mubr.bf16.mxu1 %v7163_v0  ;;  %v285_v0 = vld [vmem:[#allocation7 + $0x268] sm:$0x33] }
 0x155   :  { %v5418_v29 = vcombine.high %v285_v0, %v285_v0  ;;  %v5417_v31 = vcombine.low %v285_v0, %v285_v0  ;;  %v6171_v8 = vld [vmem:[#allocation14 + $0x2a4] ss:$16 sps:$4 sm:$0xff]   ;;  %v6181_v0 = vld [vmem:[#allocation14 + $0x2e0] ss:$16 sps:$4 sm:$0xff]  }
 0x156   :  { %1423 = vmatpush1.bf16.msra.mxu0 %v6102_v9  ;;  %1464 = vmatpush1.bf16.msra.mxu1 %v6105_v10  ;;  %v6166_v9 = vld [vmem:[#allocation14 + $0xa0] ss:$16 sps:$4 sm:$0xff]  }
 0x157   :  { %1424 = vmatprep.subr.bf16.mxu0 %v6110_v11  ;;  %1465 = vmatprep.subr.bf16.mxu1 %v6113_v12  ;;  %v1251_v33 = vsel %vm1219_vm2, %v5417_v31, 0  ;;  %v6169_v10 = vld [vmem:[#allocation14 + $0x2a0] ss:$16 sps:$4 sm:$0xff]   ;;  %v6174_v11 = vld [vmem:[#allocation14 + $0xc4] ss:$16 sps:$4 sm:$0xff]  }
 0x158   :  { %v6177_v12 = vld [vmem:[#allocation14 + $0x2c4] ss:$16 sps:$4 sm:$0xff]  }
 0x15a   :  { %1425 = vmatpush1.bf16.msra.mxu0 %v6108_v13  ;;  %1466 = vmatpush1.bf16.msra.mxu1 %v6111_v14  ;;  %v6172_v13 = vld [vmem:[#allocation14 + $0xc0] ss:$16 sps:$4 sm:$0xff]  }
 0x15b   :  { %1426 = vmatprep.subr.bf16.mxu0 %v6116_v15  ;;  %1467 = vmatprep.subr.bf16.mxu1 %v6119_v16  ;;  %v6175_v16 = vld [vmem:[#allocation14 + $0x2c0] ss:$16 sps:$4 sm:$0xff]  }
 0x15e   :  { %1427 = vmatpush1.bf16.msra.mxu0 %v6114_v17  ;;  %1468 = vmatpush1.bf16.msra.mxu1 %v6117_v18  ;;  %v6180_v17 = vld [vmem:[#allocation14 + $0xe4] ss:$16 sps:$4 sm:$0xff]  }
 0x15f   :  { %1428 = vmatprep.subr.bf16.mxu0 %v6122_v19  ;;  %1469 = vmatprep.subr.bf16.mxu1 %v6125_v20  ;;  %v6183_v20 = vld [vmem:[#allocation14 + $0x2e4] ss:$16 sps:$4 sm:$0xff]  }
 0x162   :  { %1429 = vmatpush1.bf16.msra.mxu0 %v6120_v21  ;;  %1470 = vmatpush1.bf16.msra.mxu1 %v6123_v22 }
 0x163   :  { %1430 = vmatprep.subr.bf16.mxu0 %v6128_v23  ;;  %1471 = vmatprep.subr.bf16.mxu1 %v6131_v24 }
 0x166   :  { %1431 = vmatpush1.bf16.msra.mxu0 %v6126_v26  ;;  %1472 = vmatpush1.bf16.msra.mxu1 %v6129_v27  ;;  %v6186_v26 = vld [vmem:[#allocation14 + $0x104] ss:$16 sps:$4 sm:$0xff]  }
 0x167   :  { %5427 = vmatprep.subr.msk.bf16.mxu0 %vm1219_vm2, %v5416_v28  ;;  %5429 = vmatprep.subr.msk.bf16.mxu1 %vm1219_vm2, %v5418_v29  ;;  %v6189_v27 = vld [vmem:[#allocation14 + $0x304] ss:$16 sps:$4 sm:$0xff]   ;;  %v6184_v28 = vld [vmem:[#allocation14 + $0x100] ss:$16 sps:$4 sm:$0xff]  }
 0x168   :  { %v6187_v29 = vld [vmem:[#allocation14 + $0x300] ss:$16 sps:$4 sm:$0xff]  }
 0x16a   :  { %1433 = vmatpush1.bf16.msra.mxu0 %v1245_v32  ;;  %1474 = vmatpush1.bf16.msra.mxu1 %v1251_v33 }
 0x16b   :  { %4173 = vmatprep.subr.bf16.mxu1 %v6138_v44  ;;  %4214 = vmatprep.subr.bf16.mxu0 %v6141_v46 }
 0x16d   :  { %5428 = vmatmul.mubr.msk.bf16.vlgmr.msra.gmra.mrb[20].mxu0 %vm1215_vm3, %v7449_v35  ;;  %5430 = vmatmul.mubr.msk.bf16.vlgmr.msra.gmra.mrb[20].mxu1 %vm1215_vm3, %v7449_v35  ;;  %v6142_v35 = vld [vmem:[#allocation14 + $0x20] ss:$16 sps:$4 sm:$0xff]  }
 0x16e   :  { %4174 = vmatpush1.bf16.msra.mxu1 %v6136_v43  ;;  %4215 = vmatpush1.bf16.msra.mxu0 %v6139_v45 }
 0x16f   :  { %4175 = vmatprep.subr.bf16.mxu1 %v6144_v47  ;;  %4216 = vmatprep.subr.bf16.mxu0 %v6147_v48  ;;  %v1506_v47 = vlaneseq }
 0x171   :  { %v1507_v48 = vshrl.u32 %v1506_v47, 7 }
 0x172   :  { %4176 = vmatpush1.bf16.msra.mxu1 %v6142_v35  ;;  %4217 = vmatpush1.bf16.msra.mxu0 %v6145_v49 }
 0x173   :  { %4177 = vmatprep.subr.bf16.mxu1 %v6150_v50  ;;  %4218 = vmatprep.subr.bf16.mxu0 %v6153_v51  ;;  %v7503_v35 = vsub.s32 0, %v1507_v48  ;;  %v7505_v49 = vsub.s32 1, %v1507_v48  ;;  %v7507_v50 = vld [vmem:[#allocation10] sm:$0xff] }
 0x176   :  { %4178 = vmatpush1.bf16.msra.mxu1 %v6148_v52  ;;  %4219 = vmatpush1.bf16.msra.mxu0 %v6151_v55  ;;  %v7515_v52 = vsub.s32 3, %v1507_v48 }
 0x177   :  { %4179 = vmatprep.subr.bf16.mxu1 %v6156_v56  ;;  %4220 = vmatprep.subr.bf16.mxu0 %v6159_v59 }
 0x17a   :  { %4180 = vmatpush1.bf16.msra.mxu1 %v6154_v1  ;;  %4221 = vmatpush1.bf16.msra.mxu0 %v6157_v2 }
 0x17b   :  { %4181 = vmatprep.subr.bf16.mxu1 %v6162_v3  ;;  %4222 = vmatprep.subr.bf16.mxu0 %v6165_v4 }
 0x17e   :  { %4182 = vmatpush1.bf16.msra.mxu1 %v6160_v5  ;;  %4223 = vmatpush1.bf16.msra.mxu0 %v6163_v6 }
 0x17f   :  { %4183 = vmatprep.subr.bf16.mxu1 %v6168_v7  ;;  %4224 = vmatprep.subr.bf16.mxu0 %v6171_v8 }
 0x182   :  { %4184 = vmatpush1.bf16.msra.mxu1 %v6166_v9  ;;  %4225 = vmatpush1.bf16.msra.mxu0 %v6169_v10 }
 0x183   :  { %4185 = vmatprep.subr.bf16.mxu1 %v6174_v11  ;;  %4226 = vmatprep.subr.bf16.mxu0 %v6177_v12  ;;  %v7529_v11 = vsub.s32 5, %v1507_v48 }
 0x186   :  { %4186 = vmatpush1.bf16.msra.mxu1 %v6172_v13  ;;  %4227 = vmatpush1.bf16.msra.mxu0 %v6175_v16 }
 0x187   :  { %4187 = vmatprep.subr.bf16.mxu1 %v6180_v17  ;;  %4228 = vmatprep.subr.bf16.mxu0 %v6183_v20  ;;  %v1529_v17 = vrot.slane %v7507_v50, %v7529_v11 }
 0x18a   :  { %4188 = vmatpush1.bf16.msra.mxu1 %v6178_v25  ;;  %4229 = vmatpush1.bf16.msra.mxu0 %v6181_v0 }
 0x18b   :  { %4189 = vmatprep.subr.bf16.mxu1 %v6186_v26  ;;  %4230 = vmatprep.subr.bf16.mxu0 %v6189_v27 }
 0x18e   :  { %4190 = vmatpush1.bf16.msra.mxu1 %v6184_v28  ;;  %4231 = vmatpush1.bf16.msra.mxu0 %v6187_v29 }
 0x1cc   :  { %v7475_v34 = vpop.f32.mrb[0].mxu0  ;;  %v7477_v36 = vpop.f32.mrb[0].mxu1 }
 0x1cd   :  { %v7479_v37 = vpop.f32.mrb[1].mxu0  ;;  %v7481_v38 = vpop.f32.mrb[1].mxu1 }
 0x1ce   :  { %v617_v39 = vpop.f32.mrb[2].mxu0  ;;  %v658_v40 = vpop.f32.mrb[2].mxu1 }
 0x1cf   :  { %v618_v41 = vpop.f32.mrb[3].mxu0  ;;  %v659_v42 = vpop.f32.mrb[3].mxu1 }
 0x1dc   :  { %v7483_v53 = vpop.f32.mrb[4].mxu0  ;;  %v7485_v54 = vpop.f32.mrb[4].mxu1 }
 0x1dd   :  { %v7487_v57 = vpop.f32.mrb[5].mxu0  ;;  %v7489_v58 = vpop.f32.mrb[5].mxu1 }
 0x1de   :  { %v699_v60 = vpop.f32.mrb[6].mxu0  ;;  %v740_v61 = vpop.f32.mrb[6].mxu1 }
 0x1df   :  { %v700_v62 = vpop.f32.mrb[7].mxu0  ;;  %v741_v63 = vpop.f32.mrb[7].mxu1  ;;  %v7520_v61 = vsub.s32 4, %v1507_v48 }
 0x1ec   :  { %v7491_v14 = vpop.f32.mrb[8].mxu0  ;;  %v7493_v15 = vpop.f32.mrb[8].mxu1 }
 0x1ed   :  { %v7495_v18 = vpop.f32.mrb[9].mxu0  ;;  %v7497_v19 = vpop.f32.mrb[9].mxu1 }
 0x1ee   :  { %v781_v21 = vpop.f32.mrb[10].mxu0  ;;  %v822_v22 = vpop.f32.mrb[10].mxu1 }
 0x1ef   :  { %v782_v23 = vpop.f32.mrb[11].mxu0  ;;  %v823_v24 = vpop.f32.mrb[11].mxu1  ;;  %v7541_v22 = vsub.s32 6, %v1507_v48 }
 0x1f0   :  { %v7545_v24 = vsub.s32 7, %v1507_v48 }
 0x1f1   :  { %v1533_v29 = vrot.slane %v7507_v50, %v7541_v22 }
 0x208   :  { %v1290_v30 = vpop.f32.mrb[12].mxu0  ;;  %v1331_v31 = vpop.f32.mrb[12].mxu1 }
 0x209   :  { %v1291_v32 = vadd.f32 %v1290_v30, %v7475_v34  ;;  %v1332_v33 = vadd.f32 %v1331_v31, %v7477_v36  ;;  %v1292_v39 = vpop.f32.mrb[13].mxu0  ;;  %v1333_v40 = vpop.f32.mrb[13].mxu1  ;;  %v1509_v34 = vrot.slane %v7507_v50, %v7503_v35  ;;  %v1513_v36 = vrot.slane %v7507_v50, %v7505_v49 }
 0x20a   :  { %v1293_v41 = vadd.f32 %v1292_v39, %v7479_v37  ;;  %v1334_v42 = vadd.f32 %v1333_v40, %v7481_v38  ;;  %v1294_v43 = vpop.f32.mrb[14].mxu0  ;;  %v1335_v44 = vpop.f32.mrb[14].mxu1  ;;  %v7513_v37 = vsub.s32 2, %v1507_v48  ;;  %v1537_v40 = vrot.slane %v7507_v50, %v7545_v24 }
 0x20b   :  { %v1295_v45 = vpop.f32.mrb[15].mxu0  ;;  %v1336_v46 = vpop.f32.mrb[15].mxu1  ;;  %v1566_v38 = vadd.f32 %v1509_v34, %v1291_v32 }
 0x20c   :  { %v1567_v51 = vadd.f32 %v1513_v36, %v1293_v41  ;;  %v1517_v59 = vrot.slane %v7507_v50, %v7513_v37 }
 0x20d   :  { %v1590_v6 = vmul.f32 0.01, %v1566_v38  ;;  %vm1578_vm4 = vcmp.gt.f32.partialorder %v1566_v38, 0.0 }
 0x20e   :  { %v1591_v7 = vmul.f32 0.01, %v1567_v51  ;;  %vm1579_vm5 = vcmp.gt.f32.partialorder %v1567_v51, 0.0  ;;  %v1568_v10 = vadd.f32 %v1517_v59, %v1332_v33 }
 0x210   :  { %v1592_v12 = vmul.f32 0.01, %v1568_v10  ;;  %vm1580_vm6 = vcmp.gt.f32.partialorder %v1568_v10, 0.0 }
 0x212   :  { %v7547_v25 = vsel %vm1580_vm6, %v1568_v10, %v1592_v12 }
 0x213   :  { %v1633_v30 = vmul.f32 %v7547_v25, %v7547_v25 }
 0x224   :  { %v1372_v55 = vpop.f32.mrb[16].mxu0  ;;  %v1413_v56 = vpop.f32.mrb[16].mxu1 }
 0x225   :  { %v1373_v60 = vadd.f32 %v1372_v55, %v7483_v53  ;;  %v1414_v62 = vadd.f32 %v1413_v56, %v7485_v54  ;;  %v1374_v63 = vpop.f32.mrb[17].mxu0  ;;  %v1415_v1 = vpop.f32.mrb[17].mxu1  ;;  %v1521_v53 = vrot.slane %v7507_v50, %v7515_v52  ;;  %v1525_v54 = vrot.slane %v7507_v50, %v7520_v61 }
 0x226   :  { %v1375_v2 = vadd.f32 %v1374_v63, %v7487_v57  ;;  %v1416_v3 = vadd.f32 %v1415_v1, %v7489_v58  ;;  %v1376_v4 = vpop.f32.mrb[18].mxu0  ;;  %v1417_v5 = vpop.f32.mrb[18].mxu1  ;;  %v7531_v57 = vsel %vm1578_vm4, %v1566_v38, %v1590_v6  ;;  %v7533_v58 = vsel %vm1579_vm5, %v1567_v51, %v1591_v7  ;;  %v1503_v51 = vld [vmem:[#allocation10 + $0x8] sm:$0xf] }
 0x227   :  { %v1377_v8 = vpop.f32.mrb[19].mxu0  ;;  %v1418_v9 = vpop.f32.mrb[19].mxu1  ;;  %v1569_v13 = vadd.f32 %v1521_v53, %v1334_v42  ;;  %v1570_v16 = vadd.f32 %v1525_v54, %v1373_v60  ;;  %v1631_v20 = vmul.f32 %v7531_v57, %v7531_v57  ;;  %v1632_v21 = vmul.f32 %v7533_v58, %v7533_v58 }
 0x228   :  { %v1618_v23 = vadd.f32 %v7533_v58, %v7531_v57  ;;  %v1571_v27 = vadd.f32 %v1529_v17, %v1375_v2  ;;  %v1572_v42 = vadd.f32 %v1533_v29, %v1414_v62  ;;  %v1573_v47 = vadd.f32 %v1537_v40, %v1416_v3 }
 0x229   :  { %v1593_v0 = vmul.f32 0.01, %v1569_v13  ;;  %v1594_v26 = vmul.f32 0.01, %v1570_v16  ;;  %v1643_v28 = vadd.f32 %v1632_v21, %v1631_v20  ;;  %vm1581_vm7 = vcmp.gt.f32.partialorder %v1569_v13, 0.0 }
 0x22a   :  { %vm1582_vm8 = vcmp.gt.f32.partialorder %v1570_v16, 0.0  ;;  %v1619_v31 = vadd.f32 %v1618_v23, %v7547_v25  ;;  %v1595_v39 = vmul.f32 0.01, %v1571_v27  ;;  %vm1583_vm9 = vcmp.gt.f32.partialorder %v1571_v27, 0.0 }
 0x22b   :  { %v7554_v32 = vsel %vm1581_vm7, %v1569_v13, %v1593_v0  ;;  %v7556_v33 = vsel %vm1582_vm8, %v1570_v16, %v1594_v26  ;;  %v1644_v41 = vadd.f32 %v1643_v28, %v1633_v30  ;;  %v1596_v36 = vmul.f32 0.01, %v1572_v42 }
 0x22c   :  { %v1620_v43 = vadd.f32 %v1619_v31, %v7554_v32  ;;  %v1634_v44 = vmul.f32 %v7554_v32, %v7554_v32  ;;  %v1635_v45 = vmul.f32 %v7556_v33, %v7556_v33  ;;  %v7565_v46 = vsel %vm1583_vm9, %v1571_v27, %v1595_v39 }
 0x22d   :  { %vm1584_vm10 = vcmp.gt.f32.partialorder %v1572_v42, 0.0  ;;  %v1636_v50 = vmul.f32 %v7565_v46, %v7565_v46  ;;  %v1597_v55 = vmul.f32 0.01, %v1573_v47  ;;  %vm1585_vm11 = vcmp.gt.f32.partialorder %v1573_v47, 0.0 }
 0x22e   :  { %v1645_v48 = vadd.f32 %v1644_v41, %v1634_v44  ;;  %v1621_v34 = vadd.f32 %v1620_v43, %v7556_v33  ;;  %v7571_v59 = vsel %vm1584_vm10, %v1572_v42, %v1596_v36  ;;  %v1541_v60 = vrot.slane %v1503_v51, %v7503_v35 }
 0x22f   :  { %v1549_v62 = vrot.slane %v1503_v51, %v7513_v37  ;;  %v1545_v3 = vrot.slane %v1503_v51, %v7505_v49  ;;  %v7576_v4 = vsel %vm1585_vm11, %v1573_v47, %v1597_v55  ;;  %v1553_v9 = vrot.slane %v1503_v51, %v7515_v52 }
 0x230   :  { %v1646_v38 = vadd.f32 %v1645_v48, %v1635_v45  ;;  %v1622_v56 = vadd.f32 %v1621_v34, %v7565_v46  ;;  %v1637_v10 = vmul.f32 %v7571_v59, %v7571_v59 }
 0x232   :  { %v1647_v63 = vadd.f32 %v1646_v38, %v1636_v50  ;;  %v1623_v16 = vadd.f32 %v1622_v56, %v7571_v59  ;;  %v6190_v56 = vld [vmem:[#allocation14 + $0x120] ss:$16 sps:$4 sm:$0xff]  }
 0x234   :  { %v1648_v0 = vadd.f32 %v1647_v63, %v1637_v10  ;;  %v6195_v63 = vld [vmem:[#allocation14 + $0x324] ss:$16 sps:$4 sm:$0xff]  }
 0x235   :  { %4232 = vmatprep.subr.bf16.mxu0 %v6195_v63  ;;  %v6210_v10 = vld [vmem:[#allocation14 + $0x184] ss:$16 sps:$4 sm:$0xff]  }
 0x240   :  { %v1454_v1 = vpop.f32.mrb[20].mxu0  ;;  %v1495_v2 = vpop.f32.mrb[20].mxu1 }
 0x241   :  { %v1455_v5 = vadd.f32 %v1454_v1, %v7491_v14  ;;  %v1496_v6 = vadd.f32 %v1495_v2, %v7493_v15  ;;  %v1456_v7 = vpop.f32.mrb[21].mxu0  ;;  %v1497_v8 = vpop.f32.mrb[21].mxu1  ;;  %v1638_v15 = vmul.f32 %v7576_v4, %v7576_v4  ;;  %v6198_v1 = vld [vmem:[#allocation14 + $0x144] ss:$16 sps:$4 sm:$0xff]  }
 0x242   :  { %v1457_v53 = vadd.f32 %v1456_v7, %v7495_v18  ;;  %v1498_v54 = vadd.f32 %v1497_v8, %v7497_v19  ;;  %v1458_v12 = vpop.f32.mrb[22].mxu0  ;;  %v1499_v13 = vpop.f32.mrb[22].mxu1  ;;  %v1624_v19 = vadd.f32 %v1623_v16, %v7576_v4  ;;  %v6201_v2 = vld [vmem:[#allocation14 + $0x344] ss:$16 sps:$4 sm:$0xff]   ;;  %v6202_v8 = vld [vmem:[#allocation14 + $0x160] ss:$16 sps:$4 sm:$0xff]  }
 0x243   :  { %v1574_v17 = vadd.f32 %v1541_v60, %v1455_v5  ;;  %v1576_v20 = vadd.f32 %v1549_v62, %v1496_v6  ;;  %v1459_v14 = vpop.f32.mrb[23].mxu0  ;;  %v1500_v21 = vpop.f32.mrb[23].mxu1  ;;  %v1649_v40 = vadd.f32 %v1648_v0, %v1638_v15  ;;  %v6192_v60 = vld [vmem:[#allocation14 + $0x124] ss:$16 sps:$4 sm:$0xff]   ;;  %v6193_v62 = vld [vmem:[#allocation14 + $0x320] ss:$16 sps:$4 sm:$0xff]  }
 0x244   :  { %v1575_v23 = vadd.f32 %v1545_v3, %v1457_v53  ;;  %v1577_v28 = vadd.f32 %v1553_v9, %v1498_v54  ;;  %4191 = vmatprep.subr.bf16.mxu1 %v6192_v60  ;;  %4233 = vmatpush1.bf16.msra.mxu0 %v6193_v62  ;;  %v6196_v3 = vld [vmem:[#allocation14 + $0x140] ss:$16 sps:$4 sm:$0xff]   ;;  %v6204_v6 = vld [vmem:[#allocation14 + $0x164] ss:$16 sps:$4 sm:$0xff]  }
 0x245   :  { %vm1586_vm12 = vcmp.gt.f32.partialorder %v1574_v17, 0.0  ;;  %v1598_v26 = vmul.f32 0.01, %v1574_v17  ;;  %v1600_v27 = vmul.f32 0.01, %v1576_v20  ;;  %vm1588_vm14 = vcmp.gt.f32.partialorder %v1576_v20, 0.0  ;;  %4192 = vmatpush1.bf16.msra.mxu1 %v6190_v56  ;;  %4234 = vmatprep.subr.bf16.mxu0 %v6201_v2 }
 0x246   :  { %vm1587_vm13 = vcmp.gt.f32.partialorder %v1575_v23, 0.0  ;;  %v1599_v18 = vmul.f32 0.01, %v1575_v23  ;;  %v1601_v41 = vmul.f32 0.01, %v1577_v28  ;;  %vm1589_vm15 = vcmp.gt.f32.partialorder %v1577_v28, 0.0  ;;  %4193 = vmatprep.subr.bf16.mxu1 %v6198_v1 }
 0x247   :  { %v7589_v29 = vsel %vm1586_vm12, %v1574_v17, %v1598_v26  ;;  %v7596_v42 = vsel %vm1588_vm14, %v1576_v20, %v1600_v27  ;;  %v6199_v5 = vld [vmem:[#allocation14 + $0x340] ss:$16 sps:$4 sm:$0xff]   ;;  %v6207_v7 = vld [vmem:[#allocation14 + $0x364] ss:$16 sps:$4 sm:$0xff]  }
 0x248   :  { %v1639_v30 = vmul.f32 %v7589_v29, %v7589_v29  ;;  %v7593_v31 = vsel %vm1587_vm13, %v1575_v23, %v1599_v18  ;;  %v1625_v39 = vadd.f32 %v1624_v19, %v7589_v29  ;;  %v1641_v48 = vmul.f32 %v7596_v42, %v7596_v42  ;;  %4235 = vmatpush1.bf16.msra.mxu0 %v6199_v5  ;;  %v6205_v9 = vld [vmem:[#allocation14 + $0x360] ss:$16 sps:$4 sm:$0xff]   ;;  %v6213_v12 = vld [vmem:[#allocation14 + $0x384] ss:$16 sps:$4 sm:$0xff]   ;;  %v6237_v19 = vld [vmem:[#allocation14 + $0xc] ss:$16 sps:$4 sm:$0xff]  }
 0x249   :  { %v1640_v43 = vmul.f32 %v7593_v31, %v7593_v31  ;;  %v7604_v36 = vsel %vm1589_vm15, %v1577_v28, %v1601_v41  ;;  %4194 = vmatpush1.bf16.msra.mxu1 %v6196_v3  ;;  %4236 = vmatprep.subr.bf16.mxu0 %v6207_v7  ;;  %v6208_v53 = vld [vmem:[#allocation14 + $0x180] ss:$16 sps:$4 sm:$0xff]   ;;  %v6216_v13 = vld [vmem:[#allocation14 + $0x1a4] ss:$16 sps:$4 sm:$0xff]  }
 0x24a   :  { %v1626_v44 = vadd.f32 %v1625_v39, %v7593_v31  ;;  %v1650_v45 = vadd.f32 %v1649_v40, %v1639_v30  ;;  %v1642_v51 = vmul.f32 %v7604_v36, %v7604_v36  ;;  %4195 = vmatprep.subr.bf16.mxu1 %v6204_v6  ;;  %v6211_v54 = vld [vmem:[#allocation14 + $0x380] ss:$16 sps:$4 sm:$0xff]   ;;  %v6219_v16 = vld [vmem:[#allocation14 + $0x3a4] ss:$16 sps:$4 sm:$0xff]  }
 0x24b   :  { %v6214_v17 = vld [vmem:[#allocation14 + $0x1a0] ss:$16 sps:$4 sm:$0xff]   ;;  %v6222_v14 = vld [vmem:[#allocation14 + $0x1c4] ss:$16 sps:$4 sm:$0xff]  }
 0x24c   :  { %v1627_v47 = vadd.f32 %v1626_v44, %v7596_v42  ;;  %v1651_v34 = vadd.f32 %v1650_v45, %v1640_v43  ;;  %4237 = vmatpush1.bf16.msra.mxu0 %v6205_v9  ;;  %v6217_v20 = vld [vmem:[#allocation14 + $0x3a0] ss:$16 sps:$4 sm:$0xff]   ;;  %v6225_v21 = vld [vmem:[#allocation14 + $0x3c4] ss:$16 sps:$4 sm:$0xff]  }
 0x24d   :  { %4196 = vmatpush1.bf16.msra.mxu1 %v6202_v8  ;;  %4238 = vmatprep.subr.bf16.mxu0 %v6213_v12  ;;  %v6220_v15 = vld [vmem:[#allocation14 + $0x1c0] ss:$16 sps:$4 sm:$0xff]   ;;  %v6228_v0 = vld [vmem:[#allocation14 + $0x1e4] ss:$16 sps:$4 sm:$0xff]  }
 0x24e   :  { %v1628_v38 = vadd.f32 %v1627_v47, %v7604_v36  ;;  %v1652_v50 = vadd.f32 %v1651_v34, %v1641_v48  ;;  %4197 = vmatprep.subr.bf16.mxu1 %v6210_v10  ;;  %v6223_v23 = vld [vmem:[#allocation14 + $0x3c0] ss:$16 sps:$4 sm:$0xff]   ;;  %v6231_v26 = vld [vmem:[#allocation14 + $0x3e4] ss:$16 sps:$4 sm:$0xff]   ;;  %v1614_v48 = vld [vmem:[#allocation11] sm:$0xff] }
 0x24f   :  { %v6226_v27 = vld [vmem:[#allocation14 + $0x1e0] ss:$16 sps:$4 sm:$0xff]   ;;  %v6234_v18 = vld [vmem:[#allocation14 + $0x404] ss:$16 sps:$4 sm:$0xff]   ;;  %v1712_v60 = vrot.slane %v1614_v48, %v7529_v11  ;;  %v1708_v62 = vrot.slane %v1614_v48, %v7520_v61  ;;  %v1720_v63 = vrot.slane %v1614_v48, %v7545_v24  ;;  %v1716_v9 = vrot.slane %v1614_v48, %v7541_v22 }
 0x250   :  { %1629 = vadd.xlane.f32.xlu0 %v1628_v38  ;;  %v1653_v55 = vadd.f32 %v1652_v50, %v1642_v51  ;;  %4239 = vmatpush1.bf16.msra.mxu0 %v6211_v54  ;;  %v6229_v28 = vld [vmem:[#allocation14 + $0x3e0] ss:$16 sps:$4 sm:$0xff]   ;;  %v1616_v34 = vld [vmem:[#allocation13] sm:$0xff]  ;;  %v1696_v38 = vrot.slane %v1614_v48, %v7505_v49  ;;  %v1704_v50 = vrot.slane %v1614_v48, %v7515_v52 }
 0x251   :  { %4198 = vmatpush1.bf16.msra.mxu1 %v6208_v53  ;;  %4240 = vmatprep.subr.bf16.mxu0 %v6219_v16  ;;  %v1692_v51 = vrot.slane %v1614_v48, %v7503_v35  ;;  %v1770_v56 = vrot.slane %v1616_v34, %v7505_v49  ;;  %v7621_v1 = vld [vmem:[#allocation11 + $0x8] sm:$0xf]  ;;  %v1778_v2 = vrot.slane %v1616_v34, %v7515_v52 }
 0x252   :  { %4199 = vmatprep.subr.bf16.mxu1 %v6216_v13  ;;  %v1766_v3 = vrot.slane %v1616_v34, %v7503_v35  ;;  %v1774_v5 = vrot.slane %v1616_v34, %v7513_v37  ;;  %v1786_v6 = vrot.slane %v1616_v34, %v7529_v11  ;;  %v1782_v7 = vrot.slane %v1616_v34, %v7520_v61 }
 0x253   :  { %v1794_v8 = vrot.slane %v1616_v34, %v7545_v24  ;;  %v1790_v10 = vrot.slane %v1616_v34, %v7541_v22  ;;  %v1736_v11 = vrot.slane %v7621_v1, %v7515_v52  ;;  %v6232_v34 = vld [vmem:[#allocation14 + $0x400] ss:$16 sps:$4 sm:$0xff]  }
 0x254   :  { %1654 = vadd.xlane.f32.xlu0 %v1653_v55  ;;  %4241 = vmatpush1.bf16.msra.mxu0 %v6217_v20  ;;  %v1700_v55 = vrot.slane %v1614_v48, %v7513_v37 }
 0x255   :  { %4200 = vmatpush1.bf16.msra.mxu1 %v6214_v17  ;;  %4242 = vmatprep.subr.bf16.mxu0 %v6225_v21 }
 0x256   :  { %4201 = vmatprep.subr.bf16.mxu1 %v6222_v14 }
 0x258   :  { %4243 = vmatpush1.bf16.msra.mxu0 %v6223_v23 }
 0x259   :  { %4202 = vmatpush1.bf16.msra.mxu1 %v6220_v15  ;;  %4244 = vmatprep.subr.bf16.mxu0 %v6231_v26 }
 0x25a   :  { %4203 = vmatprep.subr.bf16.mxu1 %v6228_v0 }
 0x25c   :  { %4245 = vmatpush1.bf16.msra.mxu0 %v6229_v28 }
 0x25d   :  { %4204 = vmatpush1.bf16.msra.mxu1 %v6226_v27  ;;  %4255 = vmatprep.subr.bf16.mxu0 %v6234_v18 }
 0x25e   :  { %4419 = vmatprep.subr.bf16.mxu1 %v6237_v19 }
 0x2dd   :  { %v1630_v30 = vpop.xlane.xlu0 %1629 }
 0x2de   :  { %v7609_v39 = vmul.f32 0.00066666666, %v1630_v30 }
 0x2e0   :  { %v1658_v41 = vmul.f32 %v7609_v39, %v7609_v39  ;;  %v1664_v53 = vsub.f32 %v7533_v58, %v7609_v39  ;;  %v1666_v54 = vsub.f32 %v7554_v32, %v7609_v39  ;;  %v1663_v12 = vsub.f32 %v7531_v57, %v7609_v39 }
 0x2e1   :  { %v1655_v40 = vpop.xlane.xlu0 %1654  ;;  %v1665_v61 = vsub.f32 %v7547_v25, %v7609_v39  ;;  %v1668_v24 = vsub.f32 %v7565_v46, %v7609_v39  ;;  %v1667_v22 = vsub.f32 %v7556_v33, %v7609_v39  ;;  %v1670_v58 = vsub.f32 %v7576_v4, %v7609_v39 }
 0x2e2   :  { %v1657_v43 = vmul.f32 0.00066666666, %v1655_v40  ;;  %v1669_v32 = vsub.f32 %v7571_v59, %v7609_v39  ;;  %v1672_v57 = vsub.f32 %v7593_v31, %v7609_v39  ;;  %v1671_v16 = vsub.f32 %v7589_v29, %v7609_v39  ;;  %v7655_v40 = vld [vmem:[#allocation13 + $0x8] sm:$0xf] }
 0x2e3   :  { %v1674_v25 = vsub.f32 %v7604_v36, %v7609_v39 }
 0x2e4   :  { %v1659_v44 = vsub.f32 %v1657_v43, %v1658_v41 }
 0x2e6   :  { %v1660_v45 = vmax.f32 %v1659_v44, 0.0 }
 0x2e8   :  { %v1661_v47 = vadd.f32 1e-05, %v1660_v45 }
 0x2ea   :  { %6808 = vrsqrt.f32 %v1661_v47 }
 0x2f4   :  { %v6809_v13 = vpop.eup %6808 }
 0x2f5   :  { %v1676_v46 = vmul.f32 %v6809_v13, %v1664_v53  ;;  %v1678_v17 = vmul.f32 %v6809_v13, %v1666_v54  ;;  %v1675_v20 = vmul.f32 %v6809_v13, %v1663_v12  ;;  %v1677_v33 = vmul.f32 %v6809_v13, %v1665_v61  ;;  %v6249_v53 = vld [vmem:[#allocation14 + $0x4c] ss:$16 sps:$4 sm:$0xff]  }
 0x2f6   :  { %v1680_v14 = vmul.f32 %v6809_v13, %v1668_v24  ;;  %v1679_v21 = vmul.f32 %v6809_v13, %v1667_v22  ;;  %v1682_v4 = vmul.f32 %v6809_v13, %v1670_v58  ;;  %v1681_v15 = vmul.f32 %v6809_v13, %v1669_v32  ;;  %v6244_v24 = vld [vmem:[#allocation14 + $0x440] ss:$16 sps:$4 sm:$0xff]   ;;  %v6247_v22 = vld [vmem:[#allocation14 + $0x48] ss:$16 sps:$4 sm:$0xff]   ;;  %v6252_v58 = vld [vmem:[#allocation14 + $0x464] ss:$16 sps:$4 sm:$0xff]  }
 0x2f7   :  { %v1750_v23 = vmul.f32 %v1696_v38, %v1676_v46  ;;  %v1752_v0 = vmul.f32 %v1704_v50, %v1678_v17  ;;  %v1749_v59 = vmul.f32 %v1692_v51, %v1675_v20  ;;  %v1751_v26 = vmul.f32 %v1700_v55, %v1677_v33  ;;  %v6235_v38 = vld [vmem:[#allocation14 + $0x8] ss:$16 sps:$4 sm:$0xff]   ;;  %v6264_v17 = vld [vmem:[#allocation14 + $0x4a4] ss:$16 sps:$4 sm:$0xff]   ;;  %v6267_v20 = vld [vmem:[#allocation14 + $0xac] ss:$16 sps:$4 sm:$0xff]  }
 0x2f8   :  { %v1754_v27 = vmul.f32 %v1712_v60, %v1680_v14  ;;  %v1753_v31 = vmul.f32 %v1708_v62, %v1679_v21  ;;  %v1756_v28 = vmul.f32 %v1720_v63, %v1682_v4  ;;  %v1755_v18 = vmul.f32 %v1716_v9, %v1681_v15  ;;  %v6240_v62 = vld [vmem:[#allocation14 + $0x424] ss:$16 sps:$4 sm:$0xff]   ;;  %v6243_v63 = vld [vmem:[#allocation14 + $0x2c] ss:$16 sps:$4 sm:$0xff]   ;;  %v6253_v32 = vld [vmem:[#allocation14 + $0x68] ss:$16 sps:$4 sm:$0xff]  }
 0x2f9   :  { %v1824_v29 = vadd.f32 %v1770_v56, %v1750_v23  ;;  %v1826_v19 = vadd.f32 %v1778_v2, %v1752_v0  ;;  %v1823_v30 = vadd.f32 %v1766_v3, %v1749_v59  ;;  %v1825_v36 = vadd.f32 %v1774_v5, %v1751_v26  ;;  %v6259_v46 = vld [vmem:[#allocation14 + $0x88] ss:$16 sps:$4 sm:$0xff]   ;;  %v6262_v33 = vld [vmem:[#allocation14 + $0x4a0] ss:$16 sps:$4 sm:$0xff]   ;;  %v6270_v21 = vld [vmem:[#allocation14 + $0x4c4] ss:$16 sps:$4 sm:$0xff]  }
 0x2fa   :  { %v1828_v41 = vadd.f32 %v1786_v6, %v1754_v27  ;;  %v7657_v43 = vadd.f32 %v1782_v7, %v1753_v31  ;;  %v7659_v44 = vadd.f32 %v1794_v8, %v1756_v28  ;;  %v7661_v45 = vadd.f32 %v1790_v10, %v1755_v18  ;;  %v6238_v7 = vld [vmem:[#allocation14 + $0x420] ss:$16 sps:$4 sm:$0xff]   ;;  %v6241_v8 = vld [vmem:[#allocation14 + $0x28] ss:$16 sps:$4 sm:$0xff]   ;;  %v6246_v10 = vld [vmem:[#allocation14 + $0x444] ss:$16 sps:$4 sm:$0xff]  }
 0x2fb   :  { %v1836_v47 = vpack.c.bf16 %v1824_v29, %v1824_v29  ;;  %v7663_v48 = vpack.c.bf16 %v1826_v19, %v1826_v19  ;;  %v7665_v50 = vpack.c.bf16 %v1823_v30, %v1823_v30  ;;  %v7667_v51 = vpack.c.bf16 %v1825_v36, %v1825_v36  ;;  %v6265_v14 = vld [vmem:[#allocation14 + $0xa8] ss:$16 sps:$4 sm:$0xff]   ;;  %v6273_v4 = vld [vmem:[#allocation14 + $0xcc] ss:$16 sps:$4 sm:$0xff]   ;;  %v6268_v15 = vld [vmem:[#allocation14 + $0x4c0] ss:$16 sps:$4 sm:$0xff]  }
 0x2fc   :  { %v1810_v55 = vrot.slane %v7655_v40, %v7515_v52  ;;  %v1673_v56 = vsub.f32 %v7596_v42, %v7609_v39  ;;  %v1732_v60 = vrot.slane %v7621_v1, %v7513_v37  ;;  %v7676_v2 = vmul.f32 %v6809_v13, %v1672_v57  ;;  %v6258_v57 = vld [vmem:[#allocation14 + $0x484] ss:$16 sps:$4 sm:$0xff]   ;;  %v6271_v23 = vld [vmem:[#allocation14 + $0xc8] ss:$16 sps:$4 sm:$0xff]   ;;  %v6279_v59 = vld [vmem:[#allocation14 + $0xec] ss:$16 sps:$4 sm:$0xff]  }
 0x2fd   :  { %4205 = vmatprep.mubr.bf16.mxu1 %v1836_v47  ;;  %4246 = vmatprep.mubr.bf16.mxu0 %v7663_v48  ;;  %v7678_v3 = vmul.f32 %v6809_v13, %v1671_v16  ;;  %v1686_v5 = vmul.f32 %v6809_v13, %v1674_v25  ;;  %v7682_v6 = vpack.c.bf16 %v1828_v41, %v1828_v41  ;;  %v6261_v16 = vld [vmem:[#allocation14 + $0x8c] ss:$16 sps:$4 sm:$0xff]   ;;  %v6256_v25 = vld [vmem:[#allocation14 + $0x480] ss:$16 sps:$4 sm:$0xff]   ;;  %v6276_v0 = vld [vmem:[#allocation14 + $0x4e4] ss:$16 sps:$4 sm:$0xff]  }
 0x2fe   :  { %4206 = vmatmul.mubr.bf16.vlgmr.msra.gmra.mrb[24].mxu1 %v7665_v50  ;;  %4247 = vmatmul.mubr.bf16.vlgmr.msra.gmra.mrb[24].mxu0 %v7667_v51  ;;  %v1685_v42 = vmul.f32 %v6809_v13, %v1673_v56  ;;  %v1806_v39 = vrot.slane %v7655_v40, %v7513_v37  ;;  %v6250_v13 = vld [vmem:[#allocation14 + $0x460] ss:$16 sps:$4 sm:$0xff]   ;;  %v6277_v27 = vld [vmem:[#allocation14 + $0xe8] ss:$16 sps:$4 sm:$0xff]   ;;  %v6282_v31 = vld [vmem:[#allocation14 + $0x504] ss:$16 sps:$4 sm:$0xff]  }
 0x2ff   :  { %4256 = vmatpush1.bf16.msra.mxu0 %v6232_v34  ;;  %4420 = vmatpush1.bf16.msra.mxu1 %v6235_v38  ;;  %v1760_v9 = vmul.f32 %v1736_v11, %v1686_v5  ;;  %v6255_v11 = vld [vmem:[#allocation14 + $0x6c] ss:$16 sps:$4 sm:$0xff]   ;;  %v6274_v26 = vld [vmem:[#allocation14 + $0x4e0] ss:$16 sps:$4 sm:$0xff]   ;;  %v6283_v29 = vld [vmem:[#allocation14 + $0x108] ss:$16 sps:$4 sm:$0xff]  }
 0x300   :  { %4287 = vmatprep.mubr.bf16.mxu0 %v7682_v6  ;;  %4451 = vmatprep.mubr.bf16.mxu1 %v1836_v47  ;;  %v1759_v54 = vmul.f32 %v1732_v60, %v1685_v42  ;;  %v6285_v28 = vld [vmem:[#allocation14 + $0x10c] ss:$16 sps:$4 sm:$0xff]   ;;  %v6280_v18 = vld [vmem:[#allocation14 + $0x500] ss:$16 sps:$4 sm:$0xff]   ;;  %v6288_v19 = vld [vmem:[#allocation14 + $0x524] ss:$16 sps:$4 sm:$0xff]  }
 0x301   :  { %4257 = vmatprep.subr.bf16.mxu0 %v6240_v62  ;;  %4421 = vmatprep.subr.bf16.mxu1 %v6243_v63  ;;  %v7687_v12 = vadd.f32 %v1810_v55, %v1760_v9  ;;  %v6291_v30 = vld [vmem:[#allocation14 + $0x12c] ss:$16 sps:$4 sm:$0xff]   ;;  %v6286_v36 = vld [vmem:[#allocation14 + $0x520] ss:$16 sps:$4 sm:$0xff]   ;;  %v6289_v41 = vld [vmem:[#allocation14 + $0x128] ss:$16 sps:$4 sm:$0xff]  }
 0x302   :  { %v7689_v61 = vadd.f32 %v1806_v39, %v1759_v54  ;;  %v6294_v47 = vld [vmem:[#allocation14 + $0x544] ss:$16 sps:$4 sm:$0xff]   ;;  %v6297_v34 = vld [vmem:[#allocation14 + $0x14c] ss:$16 sps:$4 sm:$0xff]   ;;  %v6292_v38 = vld [vmem:[#allocation14 + $0x540] ss:$16 sps:$4 sm:$0xff]  }
 0x303   :  { %4258 = vmatpush1.bf16.msra.mxu0 %v6238_v7  ;;  %4422 = vmatpush1.bf16.msra.mxu1 %v6241_v8  ;;  %v6295_v55 = vld [vmem:[#allocation14 + $0x148] ss:$16 sps:$4 sm:$0xff]   ;;  %v6300_v56 = vld [vmem:[#allocation14 + $0x564] ss:$16 sps:$4 sm:$0xff]   ;;  %v6303_v60 = vld [vmem:[#allocation14 + $0x16c] ss:$16 sps:$4 sm:$0xff]  }
 0x304   :  { %4259 = vmatprep.subr.bf16.mxu0 %v6246_v10  ;;  %4423 = vmatprep.subr.bf16.mxu1 %v6249_v53  ;;  %v6298_v62 = vld [vmem:[#allocation14 + $0x560] ss:$16 sps:$4 sm:$0xff]   ;;  %v6301_v63 = vld [vmem:[#allocation14 + $0x168] ss:$16 sps:$4 sm:$0xff]   ;;  %v6306_v5 = vld [vmem:[#allocation14 + $0x584] ss:$16 sps:$4 sm:$0xff]  }
 0x305   :  { %v6309_v42 = vld [vmem:[#allocation14 + $0x18c] ss:$16 sps:$4 sm:$0xff]   ;;  %v6304_v39 = vld [vmem:[#allocation14 + $0x580] ss:$16 sps:$4 sm:$0xff]   ;;  %v6307_v7 = vld [vmem:[#allocation14 + $0x188] ss:$16 sps:$4 sm:$0xff]  }
 0x306   :  { %v6312_v8 = vld [vmem:[#allocation14 + $0x5a4] ss:$16 sps:$4 sm:$0xff]   ;;  %v6315_v9 = vld [vmem:[#allocation14 + $0x1ac] ss:$16 sps:$4 sm:$0xff]   ;;  %v6310_v10 = vld [vmem:[#allocation14 + $0x5a0] ss:$16 sps:$4 sm:$0xff]  }
 0x307   :  { %4260 = vmatpush1.bf16.msra.mxu0 %v6244_v24  ;;  %4424 = vmatpush1.bf16.msra.mxu1 %v6247_v22  ;;  %v6313_v53 = vld [vmem:[#allocation14 + $0x1a8] ss:$16 sps:$4 sm:$0xff]   ;;  %v6318_v54 = vld [vmem:[#allocation14 + $0x5c4] ss:$16 sps:$4 sm:$0xff]   ;;  %v6321_v24 = vld [vmem:[#allocation14 + $0x1cc] ss:$16 sps:$4 sm:$0xff]  }
 0x308   :  { %4261 = vmatprep.subr.bf16.mxu0 %v6252_v58  ;;  %4425 = vmatprep.subr.bf16.mxu1 %v6255_v11  ;;  %v6316_v22 = vld [vmem:[#allocation14 + $0x5c0] ss:$16 sps:$4 sm:$0xff]   ;;  %v6319_v58 = vld [vmem:[#allocation14 + $0x1c8] ss:$16 sps:$4 sm:$0xff]   ;;  %v6324_v11 = vld [vmem:[#allocation14 + $0x5e4] ss:$16 sps:$4 sm:$0xff]  }
 0x30b   :  { %4262 = vmatpush1.bf16.msra.mxu0 %v6250_v13  ;;  %4426 = vmatpush1.bf16.msra.mxu1 %v6253_v32  ;;  %v6327_v13 = vld [vmem:[#allocation14 + $0x1ec] ss:$16 sps:$4 sm:$0xff]   ;;  %v6322_v32 = vld [vmem:[#allocation14 + $0x5e0] ss:$16 sps:$4 sm:$0xff]  }
 0x30c   :  { %4263 = vmatprep.subr.bf16.mxu0 %v6258_v57  ;;  %4427 = vmatprep.subr.bf16.mxu1 %v6261_v16  ;;  %v6325_v57 = vld [vmem:[#allocation14 + $0x1e8] ss:$16 sps:$4 sm:$0xff]   ;;  %v6330_v16 = vld [vmem:[#allocation14 + $0x604] ss:$16 sps:$4 sm:$0xff]  }
 0x30f   :  { %4264 = vmatpush1.bf16.msra.mxu0 %v6256_v25  ;;  %4428 = vmatpush1.bf16.msra.mxu1 %v6259_v46  ;;  %v6333_v25 = vld [vmem:[#allocation14 + $0x20c] ss:$16 sps:$4 sm:$0xff]   ;;  %v6328_v46 = vld [vmem:[#allocation14 + $0x600] ss:$16 sps:$4 sm:$0xff]  }
 0x310   :  { %4265 = vmatprep.subr.bf16.mxu0 %v6264_v17  ;;  %4429 = vmatprep.subr.bf16.mxu1 %v6267_v20  ;;  %v7693_v17 = vpack.c.bf16 %v7657_v43, %v7657_v43  ;;  %v6331_v20 = vld [vmem:[#allocation14 + $0x208] ss:$16 sps:$4 sm:$0xff]  }
 0x311   :  { %v6337_v43 = vld [vmem:[#allocation14 + $0x228] ss:$16 sps:$4 sm:$0xff]  }
 0x313   :  { %4266 = vmatpush1.bf16.msra.mxu0 %v6262_v33  ;;  %4430 = vmatpush1.bf16.msra.mxu1 %v6265_v14  ;;  %v7697_v33 = vpack.c.bf16 %v7659_v44, %v7659_v44  ;;  %v6336_v14 = vld [vmem:[#allocation14 + $0x624] ss:$16 sps:$4 sm:$0xff]   ;;  %v6340_v44 = vld [vmem:[#allocation14 + $0x640] ss:$16 sps:$4 sm:$0xff]  }
 0x314   :  { %4267 = vmatprep.subr.bf16.mxu0 %v6270_v21  ;;  %4431 = vmatprep.subr.bf16.mxu1 %v6273_v4  ;;  %v6339_v21 = vld [vmem:[#allocation14 + $0x22c] ss:$16 sps:$4 sm:$0xff]   ;;  %v6334_v4 = vld [vmem:[#allocation14 + $0x620] ss:$16 sps:$4 sm:$0xff]  }
 0x317   :  { %4268 = vmatpush1.bf16.msra.mxu0 %v6268_v15  ;;  %4432 = vmatpush1.bf16.msra.mxu1 %v6271_v23  ;;  %v6342_v15 = vld [vmem:[#allocation14 + $0x644] ss:$16 sps:$4 sm:$0xff]   ;;  %v6345_v23 = vld [vmem:[#allocation14 + $0x24c] ss:$16 sps:$4 sm:$0xff]  }
 0x318   :  { %4269 = vmatprep.subr.bf16.mxu0 %v6276_v0  ;;  %4433 = vmatprep.subr.bf16.mxu1 %v6279_v59  ;;  %v6343_v0 = vld [vmem:[#allocation14 + $0x248] ss:$16 sps:$4 sm:$0xff]   ;;  %v6348_v59 = vld [vmem:[#allocation14 + $0x664] ss:$16 sps:$4 sm:$0xff]  }
 0x31b   :  { %4270 = vmatpush1.bf16.msra.mxu0 %v6274_v26  ;;  %4434 = vmatpush1.bf16.msra.mxu1 %v6277_v27  ;;  %v6346_v26 = vld [vmem:[#allocation14 + $0x660] ss:$16 sps:$4 sm:$0xff]   ;;  %v6349_v27 = vld [vmem:[#allocation14 + $0x268] ss:$16 sps:$4 sm:$0xff]  }
 0x31c   :  { %4271 = vmatprep.subr.bf16.mxu0 %v6282_v31  ;;  %4435 = vmatprep.subr.bf16.mxu1 %v6285_v28  ;;  %v6354_v31 = vld [vmem:[#allocation14 + $0x684] ss:$16 sps:$4 sm:$0xff]   ;;  %v6352_v28 = vld [vmem:[#allocation14 + $0x680] ss:$16 sps:$4 sm:$0xff]  }
 0x31f   :  { %4272 = vmatpush1.bf16.msra.mxu0 %v6280_v18  ;;  %4436 = vmatpush1.bf16.msra.mxu1 %v6283_v29  ;;  %v6355_v18 = vld [vmem:[#allocation14 + $0x288] ss:$16 sps:$4 sm:$0xff]   ;;  %v6360_v29 = vld [vmem:[#allocation14 + $0x6a4] ss:$16 sps:$4 sm:$0xff]  }
 0x320   :  { %4273 = vmatprep.subr.bf16.mxu0 %v6288_v19  ;;  %4437 = vmatprep.subr.bf16.mxu1 %v6291_v30  ;;  %v6363_v19 = vld [vmem:[#allocation14 + $0x2ac] ss:$16 sps:$4 sm:$0xff]   ;;  %v6358_v30 = vld [vmem:[#allocation14 + $0x6a0] ss:$16 sps:$4 sm:$0xff]  }
 0x323   :  { %4274 = vmatpush1.bf16.msra.mxu0 %v6286_v36  ;;  %4438 = vmatpush1.bf16.msra.mxu1 %v6289_v41  ;;  %v6361_v36 = vld [vmem:[#allocation14 + $0x2a8] ss:$16 sps:$4 sm:$0xff]   ;;  %v6366_v41 = vld [vmem:[#allocation14 + $0x6c4] ss:$16 sps:$4 sm:$0xff]  }
 0x324   :  { %4275 = vmatprep.subr.bf16.mxu0 %v6294_v47  ;;  %4439 = vmatprep.subr.bf16.mxu1 %v6297_v34  ;;  %v6369_v47 = vld [vmem:[#allocation14 + $0x2cc] ss:$16 sps:$4 sm:$0xff]   ;;  %v6364_v34 = vld [vmem:[#allocation14 + $0x6c0] ss:$16 sps:$4 sm:$0xff]  }
 0x327   :  { %4276 = vmatpush1.bf16.msra.mxu0 %v6292_v38  ;;  %4440 = vmatpush1.bf16.msra.mxu1 %v6295_v55  ;;  %v6367_v38 = vld [vmem:[#allocation14 + $0x2c8] ss:$16 sps:$4 sm:$0xff]   ;;  %v6372_v55 = vld [vmem:[#allocation14 + $0x6e4] ss:$16 sps:$4 sm:$0xff]  }
 0x328   :  { %4277 = vmatprep.subr.bf16.mxu0 %v6300_v56  ;;  %4441 = vmatprep.subr.bf16.mxu1 %v6303_v60  ;;  %v6375_v56 = vld [vmem:[#allocation14 + $0x2ec] ss:$16 sps:$4 sm:$0xff]   ;;  %v6370_v60 = vld [vmem:[#allocation14 + $0x6e0] ss:$16 sps:$4 sm:$0xff]  }
 0x32b   :  { %4278 = vmatpush1.bf16.msra.mxu0 %v6298_v62  ;;  %4442 = vmatpush1.bf16.msra.mxu1 %v6301_v63  ;;  %v6373_v62 = vld [vmem:[#allocation14 + $0x2e8] ss:$16 sps:$4 sm:$0xff]   ;;  %v6378_v63 = vld [vmem:[#allocation14 + $0x704] ss:$16 sps:$4 sm:$0xff]  }
 0x32c   :  { %4279 = vmatprep.subr.bf16.mxu0 %v6306_v5  ;;  %4443 = vmatprep.subr.bf16.mxu1 %v6309_v42  ;;  %v6381_v5 = vld [vmem:[#allocation14 + $0x30c] ss:$16 sps:$4 sm:$0xff]   ;;  %v6376_v42 = vld [vmem:[#allocation14 + $0x700] ss:$16 sps:$4 sm:$0xff]  }
 0x32f   :  { %4280 = vmatpush1.bf16.msra.mxu0 %v6304_v39  ;;  %4444 = vmatpush1.bf16.msra.mxu1 %v6307_v7  ;;  %v6379_v39 = vld [vmem:[#allocation14 + $0x308] ss:$16 sps:$4 sm:$0xff]   ;;  %v6384_v7 = vld [vmem:[#allocation14 + $0x724] ss:$16 sps:$4 sm:$0xff]  }
 0x330   :  { %4281 = vmatprep.subr.bf16.mxu0 %v6312_v8  ;;  %4445 = vmatprep.subr.bf16.mxu1 %v6315_v9  ;;  %v6387_v8 = vld [vmem:[#allocation14 + $0x32c] ss:$16 sps:$4 sm:$0xff]   ;;  %v6382_v9 = vld [vmem:[#allocation14 + $0x720] ss:$16 sps:$4 sm:$0xff]  }
 0x333   :  { %4282 = vmatpush1.bf16.msra.mxu0 %v6310_v10  ;;  %4446 = vmatpush1.bf16.msra.mxu1 %v6313_v53  ;;  %v6385_v10 = vld [vmem:[#allocation14 + $0x328] ss:$16 sps:$4 sm:$0xff]   ;;  %v6390_v53 = vld [vmem:[#allocation14 + $0x744] ss:$16 sps:$4 sm:$0xff]  }
 0x334   :  { %4283 = vmatprep.subr.bf16.mxu0 %v6318_v54  ;;  %4447 = vmatprep.subr.bf16.mxu1 %v6321_v24  ;;  %v6393_v54 = vld [vmem:[#allocation14 + $0x34c] ss:$16 sps:$4 sm:$0xff]   ;;  %v6388_v24 = vld [vmem:[#allocation14 + $0x740] ss:$16 sps:$4 sm:$0xff]  }
 0x337   :  { %4284 = vmatpush1.bf16.msra.mxu0 %v6316_v22  ;;  %4448 = vmatpush1.bf16.msra.mxu1 %v6319_v58  ;;  %v6391_v22 = vld [vmem:[#allocation14 + $0x348] ss:$16 sps:$4 sm:$0xff]   ;;  %v6396_v58 = vld [vmem:[#allocation14 + $0x764] ss:$16 sps:$4 sm:$0xff]  }
 0x338   :  { %4285 = vmatprep.subr.bf16.mxu0 %v6324_v11  ;;  %4449 = vmatprep.subr.bf16.mxu1 %v6327_v13  ;;  %v6399_v11 = vld [vmem:[#allocation14 + $0x36c] ss:$16 sps:$4 sm:$0xff]   ;;  %v6394_v13 = vld [vmem:[#allocation14 + $0x760] ss:$16 sps:$4 sm:$0xff]  }
 0x33b   :  { %4286 = vmatpush1.bf16.msra.mxu0 %v6322_v32  ;;  %4450 = vmatpush1.bf16.msra.mxu1 %v6325_v57  ;;  %v6397_v32 = vld [vmem:[#allocation14 + $0x368] ss:$16 sps:$4 sm:$0xff]   ;;  %v6402_v57 = vld [vmem:[#allocation14 + $0x784] ss:$16 sps:$4 sm:$0xff]  }
 0x33c   :  { %4296 = vmatprep.subr.bf16.mxu0 %v6330_v16  ;;  %4460 = vmatprep.subr.bf16.mxu1 %v6333_v25  ;;  %v6405_v16 = vld [vmem:[#allocation14 + $0x38c] ss:$16 sps:$4 sm:$0xff]   ;;  %v6400_v25 = vld [vmem:[#allocation14 + $0x780] ss:$16 sps:$4 sm:$0xff]  }
 0x33e   :  { %4288 = vmatmul.mubr.bf16.vlgmr.msra.gmra.mrb[24].mxu0 %v7693_v17  ;;  %4452 = vmatmul.mubr.bf16.vlgmr.msra.gmra.mrb[28].mxu1 %v7665_v50  ;;  %v6351_v50 = vld [vmem:[#allocation14 + $0x26c] ss:$16 sps:$4 sm:$0xff]  }
 0x33f   :  { %4297 = vmatpush1.bf16.msra.mxu0 %v6328_v46  ;;  %4328 = vmatprep.mubr.bf16.mxu0 %v7697_v33  ;;  %v6403_v46 = vld [vmem:[#allocation14 + $0x388] ss:$16 sps:$4 sm:$0xff]  }
 0x340   :  { %4461 = vmatpush1.bf16.msra.mxu1 %v6331_v20  ;;  %4492 = vmatprep.mubr.bf16.mxu1 %v7663_v48  ;;  %v6357_v48 = vld [vmem:[#allocation14 + $0x28c] ss:$16 sps:$4 sm:$0xff]   ;;  %v6408_v20 = vld [vmem:[#allocation14 + $0x7a4] ss:$16 sps:$4 sm:$0xff]  }
 0x341   :  { %4298 = vmatprep.subr.bf16.mxu0 %v6336_v14  ;;  %4462 = vmatprep.subr.bf16.mxu1 %v6339_v21  ;;  %v6411_v14 = vld [vmem:[#allocation14 + $0x3ac] ss:$16 sps:$4 sm:$0xff]   ;;  %v6406_v21 = vld [vmem:[#allocation14 + $0x7a0] ss:$16 sps:$4 sm:$0xff]  }
 0x343   :  { %4299 = vmatpush1.bf16.msra.mxu0 %v6334_v4  ;;  %v6409_v4 = vld [vmem:[#allocation14 + $0x3a8] ss:$16 sps:$4 sm:$0xff]  }
 0x344   :  { %4463 = vmatpush1.bf16.msra.mxu1 %v6337_v43  ;;  %4300 = vmatprep.subr.bf16.mxu0 %v6342_v15  ;;  %v6414_v43 = vld [vmem:[#allocation14 + $0x7c4] ss:$16 sps:$4 sm:$0xff]   ;;  %v6417_v15 = vld [vmem:[#allocation14 + $0x3cc] ss:$16 sps:$4 sm:$0xff]  }
 0x345   :  { %4464 = vmatprep.subr.bf16.mxu1 %v6345_v23  ;;  %v1728_v23 = vrot.slane %v7621_v1, %v7505_v49 }
 0x347   :  { %4301 = vmatpush1.bf16.msra.mxu0 %v6340_v44  ;;  %v6412_v44 = vld [vmem:[#allocation14 + $0x7c0] ss:$16 sps:$4 sm:$0xff]  }
 0x348   :  { %4465 = vmatpush1.bf16.msra.mxu1 %v6343_v0  ;;  %4302 = vmatprep.subr.bf16.mxu0 %v6348_v59  ;;  %v6415_v0 = vld [vmem:[#allocation14 + $0x3c8] ss:$16 sps:$4 sm:$0xff]   ;;  %v6420_v59 = vld [vmem:[#allocation14 + $0x7e4] ss:$16 sps:$4 sm:$0xff]  }
 0x349   :  { %4466 = vmatprep.subr.bf16.mxu1 %v6351_v50  ;;  %v6423_v50 = vld [vmem:[#allocation14 + $0x3ec] ss:$16 sps:$4 sm:$0xff]  }
 0x34b   :  { %4303 = vmatpush1.bf16.msra.mxu0 %v6346_v26  ;;  %v1758_v26 = vmul.f32 %v1728_v23, %v7676_v2  ;;  %v6427_v2 = vld [vmem:[#allocation14 + $0x408] ss:$16 sps:$4 sm:$0xff]   ;;  %v6489_v23 = vld [vmem:[#allocation14 + $0x54c] ss:$16 sps:$4 sm:$0xff]  }
 0x34c   :  { %4467 = vmatpush1.bf16.msra.mxu1 %v6349_v27  ;;  %4304 = vmatprep.subr.bf16.mxu0 %v6354_v31  ;;  %v1802_v27 = vrot.slane %v7655_v40, %v7505_v49  ;;  %v6418_v31 = vld [vmem:[#allocation14 + $0x7e0] ss:$16 sps:$4 sm:$0xff]  }
 0x34d   :  { %4468 = vmatprep.subr.bf16.mxu1 %v6357_v48  ;;  %v6421_v48 = vld [vmem:[#allocation14 + $0x3e8] ss:$16 sps:$4 sm:$0xff]  }
 0x34f   :  { %4305 = vmatpush1.bf16.msra.mxu0 %v6352_v28  ;;  %v6426_v28 = vld [vmem:[#allocation14 + $0x804] ss:$16 sps:$4 sm:$0xff]  }
 0x350   :  { %4469 = vmatpush1.bf16.msra.mxu1 %v6355_v18  ;;  %4306 = vmatprep.subr.bf16.mxu0 %v6360_v29  ;;  %v6429_v18 = vld [vmem:[#allocation14 + $0x40c] ss:$16 sps:$4 sm:$0xff]   ;;  %v1832_v29 = vadd.f32 %v1802_v27, %v1758_v26  ;;  %v6490_v26 = vld [vmem:[#allocation14 + $0x960] ss:$16 sps:$4 sm:$0xff]   ;;  %v6493_v27 = vld [vmem:[#allocation14 + $0x568] ss:$16 sps:$4 sm:$0xff]  }
 0x351   :  { %4470 = vmatprep.subr.bf16.mxu1 %v6363_v19  ;;  %v6424_v19 = vld [vmem:[#allocation14 + $0x800] ss:$16 sps:$4 sm:$0xff]  }
 0x353   :  { %4307 = vmatpush1.bf16.msra.mxu0 %v6358_v30  ;;  %v7710_v30 = vpack.c.bf16 %v7661_v45, %v7661_v45  ;;  %v6441_v45 = vld [vmem:[#allocation14 + $0x44c] ss:$16 sps:$4 sm:$0xff]  }
 0x354   :  { %4471 = vmatpush1.bf16.msra.mxu1 %v6361_v36  ;;  %4308 = vmatprep.subr.bf16.mxu0 %v6366_v41  ;;  %v6432_v36 = vld [vmem:[#allocation14 + $0x824] ss:$16 sps:$4 sm:$0xff]   ;;  %v7713_v41 = vpack.c.bf16 %v1832_v29, %v1832_v29 }
 0x355   :  { %4472 = vmatprep.subr.bf16.mxu1 %v6369_v47  ;;  %v6435_v47 = vld [vmem:[#allocation14 + $0x42c] ss:$16 sps:$4 sm:$0xff]   ;;  %v6504_v29 = vld [vmem:[#allocation14 + $0x9a4] ss:$16 sps:$4 sm:$0xff]  }
 0x357   :  { %4309 = vmatpush1.bf16.msra.mxu0 %v6364_v34  ;;  %v6430_v34 = vld [vmem:[#allocation14 + $0x820] ss:$16 sps:$4 sm:$0xff]  }
 0x358   :  { %4473 = vmatpush1.bf16.msra.mxu1 %v6367_v38  ;;  %4310 = vmatprep.subr.bf16.mxu0 %v6372_v55  ;;  %v6433_v38 = vld [vmem:[#allocation14 + $0x428] ss:$16 sps:$4 sm:$0xff]   ;;  %v6438_v55 = vld [vmem:[#allocation14 + $0x844] ss:$16 sps:$4 sm:$0xff]  }
 0x359   :  { %4474 = vmatprep.subr.bf16.mxu1 %v6375_v56  ;;  %v6436_v56 = vld [vmem:[#allocation14 + $0x840] ss:$16 sps:$4 sm:$0xff]  }
 0x35b   :  { %4311 = vmatpush1.bf16.msra.mxu0 %v6370_v60  ;;  %v6439_v60 = vld [vmem:[#allocation14 + $0x448] ss:$16 sps:$4 sm:$0xff]  }
 0x35c   :  { %4475 = vmatpush1.bf16.msra.mxu1 %v6373_v62  ;;  %4312 = vmatprep.subr.bf16.mxu0 %v6378_v63  ;;  %v6444_v62 = vld [vmem:[#allocation14 + $0x864] ss:$16 sps:$4 sm:$0xff]   ;;  %v6442_v63 = vld [vmem:[#allocation14 + $0x860] ss:$16 sps:$4 sm:$0xff]  }
 0x35d   :  { %4476 = vmatprep.subr.bf16.mxu1 %v6381_v5  ;;  %v6445_v5 = vld [vmem:[#allocation14 + $0x468] ss:$16 sps:$4 sm:$0xff]  }
 0x35f   :  { %4313 = vmatpush1.bf16.msra.mxu0 %v6376_v42  ;;  %v6450_v42 = vld [vmem:[#allocation14 + $0x884] ss:$16 sps:$4 sm:$0xff]  }
 0x360   :  { %4477 = vmatpush1.bf16.msra.mxu1 %v6379_v39  ;;  %4314 = vmatprep.subr.bf16.mxu0 %v6384_v7  ;;  %v6453_v39 = vld [vmem:[#allocation14 + $0x48c] ss:$16 sps:$4 sm:$0xff]   ;;  %v6451_v7 = vld [vmem:[#allocation14 + $0x488] ss:$16 sps:$4 sm:$0xff]  }
 0x361   :  { %4478 = vmatprep.subr.bf16.mxu1 %v6387_v8  ;;  %v6456_v8 = vld [vmem:[#allocation14 + $0x8a4] ss:$16 sps:$4 sm:$0xff]  }
 0x363   :  { %4315 = vmatpush1.bf16.msra.mxu0 %v6382_v9  ;;  %v6459_v9 = vld [vmem:[#allocation14 + $0x4ac] ss:$16 sps:$4 sm:$0xff]  }
 0x364   :  { %4479 = vmatpush1.bf16.msra.mxu1 %v6385_v10  ;;  %4316 = vmatprep.subr.bf16.mxu0 %v6390_v53  ;;  %v6454_v10 = vld [vmem:[#allocation14 + $0x8a0] ss:$16 sps:$4 sm:$0xff]   ;;  %v6457_v53 = vld [vmem:[#allocation14 + $0x4a8] ss:$16 sps:$4 sm:$0xff]  }
 0x365   :  { %4480 = vmatprep.subr.bf16.mxu1 %v6393_v54  ;;  %v6462_v54 = vld [vmem:[#allocation14 + $0x8c4] ss:$16 sps:$4 sm:$0xff]  }
 0x367   :  { %4317 = vmatpush1.bf16.msra.mxu0 %v6388_v24  ;;  %v6465_v24 = vld [vmem:[#allocation14 + $0x4cc] ss:$16 sps:$4 sm:$0xff]  }
 0x368   :  { %4481 = vmatpush1.bf16.msra.mxu1 %v6391_v22  ;;  %4318 = vmatprep.subr.bf16.mxu0 %v6396_v58  ;;  %v6460_v22 = vld [vmem:[#allocation14 + $0x8c0] ss:$16 sps:$4 sm:$0xff]   ;;  %v6463_v58 = vld [vmem:[#allocation14 + $0x4c8] ss:$16 sps:$4 sm:$0xff]  }
 0x369   :  { %4482 = vmatprep.subr.bf16.mxu1 %v6399_v11  ;;  %v6468_v11 = vld [vmem:[#allocation14 + $0x8e4] ss:$16 sps:$4 sm:$0xff]  }
 0x36b   :  { %4319 = vmatpush1.bf16.msra.mxu0 %v6394_v13  ;;  %v6471_v13 = vld [vmem:[#allocation14 + $0x4ec] ss:$16 sps:$4 sm:$0xff]  }
 0x36c   :  { %4483 = vmatpush1.bf16.msra.mxu1 %v6397_v32  ;;  %4320 = vmatprep.subr.bf16.mxu0 %v6402_v57  ;;  %v6466_v32 = vld [vmem:[#allocation14 + $0x8e0] ss:$16 sps:$4 sm:$0xff]   ;;  %v6469_v57 = vld [vmem:[#allocation14 + $0x4e8] ss:$16 sps:$4 sm:$0xff]  }
 0x36d   :  { %4484 = vmatprep.subr.bf16.mxu1 %v6405_v16  ;;  %v6474_v16 = vld [vmem:[#allocation14 + $0x904] ss:$16 sps:$4 sm:$0xff]  }
 0x36f   :  { %4321 = vmatpush1.bf16.msra.mxu0 %v6400_v25  ;;  %v6477_v25 = vld [vmem:[#allocation14 + $0x50c] ss:$16 sps:$4 sm:$0xff]  }
 0x370   :  { %4485 = vmatpush1.bf16.msra.mxu1 %v6403_v46  ;;  %4322 = vmatprep.subr.bf16.mxu0 %v6408_v20  ;;  %v6472_v46 = vld [vmem:[#allocation14 + $0x900] ss:$16 sps:$4 sm:$0xff]   ;;  %v6475_v20 = vld [vmem:[#allocation14 + $0x508] ss:$16 sps:$4 sm:$0xff]  }
 0x371   :  { %4486 = vmatprep.subr.bf16.mxu1 %v6411_v14  ;;  %v6480_v14 = vld [vmem:[#allocation14 + $0x924] ss:$16 sps:$4 sm:$0xff]  }
 0x373   :  { %4323 = vmatpush1.bf16.msra.mxu0 %v6406_v21  ;;  %v6483_v21 = vld [vmem:[#allocation14 + $0x52c] ss:$16 sps:$4 sm:$0xff]  }
 0x374   :  { %4487 = vmatpush1.bf16.msra.mxu1 %v6409_v4  ;;  %4324 = vmatprep.subr.bf16.mxu0 %v6414_v43  ;;  %v6478_v4 = vld [vmem:[#allocation14 + $0x920] ss:$16 sps:$4 sm:$0xff]   ;;  %v6481_v43 = vld [vmem:[#allocation14 + $0x528] ss:$16 sps:$4 sm:$0xff]  }
 0x375   :  { %4488 = vmatprep.subr.bf16.mxu1 %v6417_v15  ;;  %v6486_v15 = vld [vmem:[#allocation14 + $0x944] ss:$16 sps:$4 sm:$0xff]  }
 0x377   :  { %4325 = vmatpush1.bf16.msra.mxu0 %v6412_v44  ;;  %v6484_v44 = vld [vmem:[#allocation14 + $0x940] ss:$16 sps:$4 sm:$0xff]  }
 0x378   :  { %4489 = vmatpush1.bf16.msra.mxu1 %v6415_v0  ;;  %4326 = vmatprep.subr.bf16.mxu0 %v6420_v59  ;;  %v6487_v0 = vld [vmem:[#allocation14 + $0x548] ss:$16 sps:$4 sm:$0xff]   ;;  %v6492_v59 = vld [vmem:[#allocation14 + $0x964] ss:$16 sps:$4 sm:$0xff]  }
 0x379   :  { %4490 = vmatprep.subr.bf16.mxu1 %v6423_v50  ;;  %v6495_v50 = vld [vmem:[#allocation14 + $0x56c] ss:$16 sps:$4 sm:$0xff]  }
 0x37b   :  { %4327 = vmatpush1.bf16.msra.mxu0 %v6418_v31  ;;  %v6498_v31 = vld [vmem:[#allocation14 + $0x984] ss:$16 sps:$4 sm:$0xff]  }
 0x37c   :  { %4491 = vmatpush1.bf16.msra.mxu1 %v6421_v48  ;;  %4337 = vmatprep.subr.bf16.mxu0 %v6426_v28  ;;  %v6501_v48 = vld [vmem:[#allocation14 + $0x58c] ss:$16 sps:$4 sm:$0xff]   ;;  %v6496_v28 = vld [vmem:[#allocation14 + $0x980] ss:$16 sps:$4 sm:$0xff]  }
 0x37d   :  { %4501 = vmatprep.subr.bf16.mxu1 %v6429_v18  ;;  %v6499_v18 = vld [vmem:[#allocation14 + $0x588] ss:$16 sps:$4 sm:$0xff]  }
 0x37e   :  { %4329 = vmatmul.mubr.bf16.vlgmr.msra.gmra.mrb[24].mxu0 %v7710_v30 }
 0x37f   :  { %4493 = vmatmul.mubr.bf16.vlgmr.msra.gmra.mrb[28].mxu1 %v7667_v51  ;;  %4338 = vmatpush1.bf16.msra.mxu0 %v6424_v19  ;;  %v6447_v51 = vld [vmem:[#allocation14 + $0x46c] ss:$16 sps:$4 sm:$0xff]  }
 0x380   :  { %4369 = vmatprep.mubr.bf16.mxu0 %v7713_v41  ;;  %4502 = vmatpush1.bf16.msra.mxu1 %v6427_v2  ;;  %v6507_v19 = vld [vmem:[#allocation14 + $0x5ac] ss:$16 sps:$4 sm:$0xff]   ;;  %v6502_v2 = vld [vmem:[#allocation14 + $0x9a0] ss:$16 sps:$4 sm:$0xff]  }
 0x381   :  { %4533 = vmatprep.mubr.bf16.mxu1 %v7682_v6  ;;  %4339 = vmatprep.subr.bf16.mxu0 %v6432_v36  ;;  %v6448_v6 = vld [vmem:[#allocation14 + $0x880] ss:$16 sps:$4 sm:$0xff]   ;;  %v6505_v36 = vld [vmem:[#allocation14 + $0x5a8] ss:$16 sps:$4 sm:$0xff]  }
 0x382   :  { %4503 = vmatprep.subr.bf16.mxu1 %v6435_v47  ;;  %v6510_v47 = vld [vmem:[#allocation14 + $0x9c4] ss:$16 sps:$4 sm:$0xff]  }
 0x383   :  { %4340 = vmatpush1.bf16.msra.mxu0 %v6430_v34  ;;  %v1724_v34 = vrot.slane %v7621_v1, %v7503_v35  ;;  %v6517_v1 = vld [vmem:[#allocation14 + $0x5e8] ss:$16 sps:$4 sm:$0xff]  }
 0x384   :  { %4504 = vmatpush1.bf16.msra.mxu1 %v6433_v38  ;;  %4341 = vmatprep.subr.bf16.mxu0 %v6438_v55  ;;  %v6513_v38 = vld [vmem:[#allocation14 + $0x5cc] ss:$16 sps:$4 sm:$0xff]   ;;  %v6508_v55 = vld [vmem:[#allocation14 + $0x9c0] ss:$16 sps:$4 sm:$0xff]  }
 0x385   :  { %4505 = vmatprep.subr.bf16.mxu1 %v6441_v45  ;;  %v6511_v45 = vld [vmem:[#allocation14 + $0x5c8] ss:$16 sps:$4 sm:$0xff]  }
 0x387   :  { %4342 = vmatpush1.bf16.msra.mxu0 %v6436_v56  ;;  %v6516_v56 = vld [vmem:[#allocation14 + $0x9e4] ss:$16 sps:$4 sm:$0xff]  }
 0x388   :  { %4506 = vmatpush1.bf16.msra.mxu1 %v6439_v60  ;;  %4343 = vmatprep.subr.bf16.mxu0 %v6444_v62  ;;  %v1757_v60 = vmul.f32 %v1724_v34, %v7678_v3  ;;  %v1798_v62 = vrot.slane %v7655_v40, %v7503_v35  ;;  %v6523_v3 = vld [vmem:[#allocation14 + $0x608] ss:$16 sps:$4 sm:$0xff]   ;;  %v6528_v40 = vld [vmem:[#allocation14 + $0xa24] ss:$16 sps:$4 sm:$0xff]  }
 0x389   :  { %4507 = vmatprep.subr.bf16.mxu1 %v6447_v51  ;;  %v6519_v51 = vld [vmem:[#allocation14 + $0x5ec] ss:$16 sps:$4 sm:$0xff]   ;;  %v6582_v34 = vld [vmem:[#allocation14 + $0xb44] ss:$16 sps:$4 sm:$0xff]  }
 0x38b   :  { %4344 = vmatpush1.bf16.msra.mxu0 %v6442_v63  ;;  %v6514_v63 = vld [vmem:[#allocation14 + $0x9e0] ss:$16 sps:$4 sm:$0xff]  }
 0x38c   :  { %4508 = vmatpush1.bf16.msra.mxu1 %v6445_v5  ;;  %4345 = vmatprep.subr.bf16.mxu0 %v6450_v42  ;;  %v1831_v5 = vadd.f32 %v1798_v62, %v1757_v60  ;;  %v6522_v42 = vld [vmem:[#allocation14 + $0xa04] ss:$16 sps:$4 sm:$0xff]   ;;  %v6591_v60 = vld [vmem:[#allocation14 + $0x76c] ss:$16 sps:$4 sm:$0xff]   ;;  %v6586_v62 = vld [vmem:[#allocation14 + $0xb60] ss:$16 sps:$4 sm:$0xff]  }
 0x38d   :  { %4509 = vmatprep.subr.bf16.mxu1 %v6453_v39  ;;  %v6525_v39 = vld [vmem:[#allocation14 + $0x60c] ss:$16 sps:$4 sm:$0xff]  }
 0x38f   :  { %4346 = vmatpush1.bf16.msra.mxu0 %v6448_v6  ;;  %v6520_v6 = vld [vmem:[#allocation14 + $0xa00] ss:$16 sps:$4 sm:$0xff]  }
 0x390   :  { %4510 = vmatpush1.bf16.msra.mxu1 %v6451_v7  ;;  %4347 = vmatprep.subr.bf16.mxu0 %v6456_v8  ;;  %v7723_v7 = vpack.c.bf16 %v1831_v5, %v1831_v5  ;;  %v7728_v8 = vpack.c.bf16 %v7687_v12, %v7687_v12  ;;  %v6535_v12 = vld [vmem:[#allocation14 + $0x648] ss:$16 sps:$4 sm:$0xff]   ;;  %v6592_v5 = vld [vmem:[#allocation14 + $0xb80] ss:$16 sps:$4 sm:$0xff]  }
 0x391   :  { %4511 = vmatprep.subr.bf16.mxu1 %v6459_v9  ;;  %v6531_v9 = vld [vmem:[#allocation14 + $0x62c] ss:$16 sps:$4 sm:$0xff]  }
 0x393   :  { %4348 = vmatpush1.bf16.msra.mxu0 %v6454_v10  ;;  %v6526_v10 = vld [vmem:[#allocation14 + $0xa20] ss:$16 sps:$4 sm:$0xff]  }
 0x394   :  { %4512 = vmatpush1.bf16.msra.mxu1 %v6457_v53  ;;  %4349 = vmatprep.subr.bf16.mxu0 %v6462_v54  ;;  %v6529_v53 = vld [vmem:[#allocation14 + $0x628] ss:$16 sps:$4 sm:$0xff]   ;;  %v6534_v54 = vld [vmem:[#allocation14 + $0xa44] ss:$16 sps:$4 sm:$0xff]  }
 0x395   :  { %4513 = vmatprep.subr.bf16.mxu1 %v6465_v24  ;;  %v6537_v24 = vld [vmem:[#allocation14 + $0x64c] ss:$16 sps:$4 sm:$0xff]  }
 0x397   :  { %4350 = vmatpush1.bf16.msra.mxu0 %v6460_v22  ;;  %v6532_v22 = vld [vmem:[#allocation14 + $0xa40] ss:$16 sps:$4 sm:$0xff]  }
 0x398   :  { %4514 = vmatpush1.bf16.msra.mxu1 %v6463_v58  ;;  %4351 = vmatprep.subr.bf16.mxu0 %v6468_v11  ;;  %v6540_v58 = vld [vmem:[#allocation14 + $0xa64] ss:$16 sps:$4 sm:$0xff]   ;;  %v6538_v11 = vld [vmem:[#allocation14 + $0xa60] ss:$16 sps:$4 sm:$0xff]  }
 0x399   :  { %4515 = vmatprep.subr.bf16.mxu1 %v6471_v13  ;;  %v6541_v13 = vld [vmem:[#allocation14 + $0x668] ss:$16 sps:$4 sm:$0xff]  }
 0x39b   :  { %4352 = vmatpush1.bf16.msra.mxu0 %v6466_v32  ;;  %v6546_v32 = vld [vmem:[#allocation14 + $0xa84] ss:$16 sps:$4 sm:$0xff]  }
 0x39c   :  { %4516 = vmatpush1.bf16.msra.mxu1 %v6469_v57  ;;  %4353 = vmatprep.subr.bf16.mxu0 %v6474_v16  ;;  %v6549_v57 = vld [vmem:[#allocation14 + $0x68c] ss:$16 sps:$4 sm:$0xff]   ;;  %v6547_v16 = vld [vmem:[#allocation14 + $0x688] ss:$16 sps:$4 sm:$0xff]  }
 0x39d   :  { %4517 = vmatprep.subr.bf16.mxu1 %v6477_v25  ;;  %v6552_v25 = vld [vmem:[#allocation14 + $0xaa4] ss:$16 sps:$4 sm:$0xff]  }
 0x39f   :  { %4354 = vmatpush1.bf16.msra.mxu0 %v6472_v46  ;;  %v6555_v46 = vld [vmem:[#allocation14 + $0x6ac] ss:$16 sps:$4 sm:$0xff]  }
 0x3a0   :  { %4518 = vmatpush1.bf16.msra.mxu1 %v6475_v20  ;;  %4355 = vmatprep.subr.bf16.mxu0 %v6480_v14  ;;  %v6550_v20 = vld [vmem:[#allocation14 + $0xaa0] ss:$16 sps:$4 sm:$0xff]   ;;  %v6553_v14 = vld [vmem:[#allocation14 + $0x6a8] ss:$16 sps:$4 sm:$0xff]  }
 0x3a1   :  { %4519 = vmatprep.subr.bf16.mxu1 %v6483_v21  ;;  %v6558_v21 = vld [vmem:[#allocation14 + $0xac4] ss:$16 sps:$4 sm:$0xff]  }
 0x3a3   :  { %4356 = vmatpush1.bf16.msra.mxu0 %v6478_v4 }
 0x3a4   :  { %4520 = vmatpush1.bf16.msra.mxu1 %v6481_v43  ;;  %4357 = vmatprep.subr.bf16.mxu0 %v6486_v15  ;;  %v6561_v43 = vld [vmem:[#allocation14 + $0x6cc] ss:$16 sps:$4 sm:$0xff]  }
 0x3a5   :  { %4521 = vmatprep.subr.bf16.mxu1 %v6489_v23 }
 0x3a7   :  { %4358 = vmatpush1.bf16.msra.mxu0 %v6484_v44  ;;  %v6556_v44 = vld [vmem:[#allocation14 + $0xac0] ss:$16 sps:$4 sm:$0xff]  }
 0x3a8   :  { %4522 = vmatpush1.bf16.msra.mxu1 %v6487_v0  ;;  %4359 = vmatprep.subr.bf16.mxu0 %v6492_v59  ;;  %v6559_v59 = vld [vmem:[#allocation14 + $0x6c8] ss:$16 sps:$4 sm:$0xff]  }
 0x3a9   :  { %4523 = vmatprep.subr.bf16.mxu1 %v6495_v50  ;;  %v6564_v50 = vld [vmem:[#allocation14 + $0xae4] ss:$16 sps:$4 sm:$0xff]  }
 0x3ab   :  { %4360 = vmatpush1.bf16.msra.mxu0 %v6490_v26  ;;  %v6567_v26 = vld [vmem:[#allocation14 + $0x6ec] ss:$16 sps:$4 sm:$0xff]  }
 0x3ac   :  { %4524 = vmatpush1.bf16.msra.mxu1 %v6493_v27  ;;  %4361 = vmatprep.subr.bf16.mxu0 %v6498_v31  ;;  %v6562_v27 = vld [vmem:[#allocation14 + $0xae0] ss:$16 sps:$4 sm:$0xff]   ;;  %v6565_v31 = vld [vmem:[#allocation14 + $0x6e8] ss:$16 sps:$4 sm:$0xff]  }
 0x3ad   :  { %4525 = vmatprep.subr.bf16.mxu1 %v6501_v48  ;;  %v6570_v48 = vld [vmem:[#allocation14 + $0xb04] ss:$16 sps:$4 sm:$0xff]  }
 0x3af   :  { %4362 = vmatpush1.bf16.msra.mxu0 %v6496_v28  ;;  %v6573_v28 = vld [vmem:[#allocation14 + $0x70c] ss:$16 sps:$4 sm:$0xff]  }
 0x3b0   :  { %4526 = vmatpush1.bf16.msra.mxu1 %v6499_v18  ;;  %4363 = vmatprep.subr.bf16.mxu0 %v6504_v29  ;;  %v6568_v18 = vld [vmem:[#allocation14 + $0xb00] ss:$16 sps:$4 sm:$0xff]   ;;  %v6571_v29 = vld [vmem:[#allocation14 + $0x708] ss:$16 sps:$4 sm:$0xff]  }
 0x3b1   :  { %4527 = vmatprep.subr.bf16.mxu1 %v6507_v19  ;;  %v6576_v19 = vld [vmem:[#allocation14 + $0xb24] ss:$16 sps:$4 sm:$0xff]  }
 0x3b3   :  { %4364 = vmatpush1.bf16.msra.mxu0 %v6502_v2  ;;  %v6579_v2 = vld [vmem:[#allocation14 + $0x72c] ss:$16 sps:$4 sm:$0xff]  }
 0x3b4   :  { %4528 = vmatpush1.bf16.msra.mxu1 %v6505_v36  ;;  %4365 = vmatprep.subr.bf16.mxu0 %v6510_v47  ;;  %v6574_v36 = vld [vmem:[#allocation14 + $0xb20] ss:$16 sps:$4 sm:$0xff]   ;;  %v6577_v47 = vld [vmem:[#allocation14 + $0x728] ss:$16 sps:$4 sm:$0xff]  }
 0x3b5   :  { %4529 = vmatprep.subr.bf16.mxu1 %v6513_v38  ;;  %v6585_v38 = vld [vmem:[#allocation14 + $0x74c] ss:$16 sps:$4 sm:$0xff]  }
 0x3b7   :  { %4366 = vmatpush1.bf16.msra.mxu0 %v6508_v55  ;;  %v6580_v55 = vld [vmem:[#allocation14 + $0xb40] ss:$16 sps:$4 sm:$0xff]  }
 0x3b8   :  { %4530 = vmatpush1.bf16.msra.mxu1 %v6511_v45  ;;  %4367 = vmatprep.subr.bf16.mxu0 %v6516_v56  ;;  %v6583_v45 = vld [vmem:[#allocation14 + $0x748] ss:$16 sps:$4 sm:$0xff]   ;;  %v6588_v56 = vld [vmem:[#allocation14 + $0xb64] ss:$16 sps:$4 sm:$0xff]  }
 0x3b9   :  { %4531 = vmatprep.subr.bf16.mxu1 %v6519_v51  ;;  %v6589_v51 = vld [vmem:[#allocation14 + $0x768] ss:$16 sps:$4 sm:$0xff]  }
 0x3bb   :  { %4368 = vmatpush1.bf16.msra.mxu0 %v6514_v63  ;;  %v6594_v63 = vld [vmem:[#allocation14 + $0xb84] ss:$16 sps:$4 sm:$0xff]  }
 0x3bc   :  { %4532 = vmatpush1.bf16.msra.mxu1 %v6517_v1  ;;  %4378 = vmatprep.subr.bf16.mxu0 %v6522_v42  ;;  %v6597_v1 = vld [vmem:[#allocation14 + $0x78c] ss:$16 sps:$4 sm:$0xff]   ;;  %v6595_v42 = vld [vmem:[#allocation14 + $0x788] ss:$16 sps:$4 sm:$0xff]  }
 0x3bd   :  { %4542 = vmatprep.subr.bf16.mxu1 %v6525_v39  ;;  %v6600_v39 = vld [vmem:[#allocation14 + $0xba4] ss:$16 sps:$4 sm:$0xff]  }
 0x3be   :  { %4370 = vmatmul.mubr.bf16.vlgmr.msra.gmra.mrb[24].mxu0 %v7723_v7 }
 0x3bf   :  { %4534 = vmatmul.mubr.bf16.vlgmr.msra.gmra.mrb[28].mxu1 %v7693_v17  ;;  %4379 = vmatpush1.bf16.msra.mxu0 %v6520_v6  ;;  %v6543_v17 = vld [vmem:[#allocation14 + $0x66c] ss:$16 sps:$4 sm:$0xff]  }
 0x3c0   :  { %4410 = vmatprep.mubr.bf16.mxu0 %v7728_v8  ;;  %4543 = vmatpush1.bf16.msra.mxu1 %v6523_v3  ;;  %v6603_v6 = vld [vmem:[#allocation14 + $0x7ac] ss:$16 sps:$4 sm:$0xff]   ;;  %v6598_v3 = vld [vmem:[#allocation14 + $0xba0] ss:$16 sps:$4 sm:$0xff]  }
 0x3c1   :  { %4574 = vmatprep.mubr.bf16.mxu1 %v7697_v33  ;;  %4380 = vmatprep.subr.bf16.mxu0 %v6528_v40  ;;  %v6544_v33 = vld [vmem:[#allocation14 + $0xa80] ss:$16 sps:$4 sm:$0xff]   ;;  %v6601_v40 = vld [vmem:[#allocation14 + $0x7a8] ss:$16 sps:$4 sm:$0xff]  }
 0x3c2   :  { %4544 = vmatprep.subr.bf16.mxu1 %v6531_v9  ;;  %v6606_v9 = vld [vmem:[#allocation14 + $0xbc4] ss:$16 sps:$4 sm:$0xff]  }
 0x3c3   :  { %4381 = vmatpush1.bf16.msra.mxu0 %v6526_v10  ;;  %v6609_v10 = vld [vmem:[#allocation14 + $0x7cc] ss:$16 sps:$4 sm:$0xff]  }
 0x3c4   :  { %4545 = vmatpush1.bf16.msra.mxu1 %v6529_v53  ;;  %4382 = vmatprep.subr.bf16.mxu0 %v6534_v54  ;;  %v6604_v53 = vld [vmem:[#allocation14 + $0xbc0] ss:$16 sps:$4 sm:$0xff]   ;;  %v6607_v54 = vld [vmem:[#allocation14 + $0x7c8] ss:$16 sps:$4 sm:$0xff]  }
 0x3c5   :  { %4546 = vmatprep.subr.bf16.mxu1 %v6537_v24  ;;  %v6612_v24 = vld [vmem:[#allocation14 + $0xbe4] ss:$16 sps:$4 sm:$0xff]  }
 0x3c7   :  { %4383 = vmatpush1.bf16.msra.mxu0 %v6532_v22  ;;  %v6615_v22 = vld [vmem:[#allocation14 + $0x7ec] ss:$16 sps:$4 sm:$0xff]  }
 0x3c8   :  { %4547 = vmatpush1.bf16.msra.mxu1 %v6535_v12  ;;  %4384 = vmatprep.subr.bf16.mxu0 %v6540_v58  ;;  %v6610_v12 = vld [vmem:[#allocation14 + $0xbe0] ss:$16 sps:$4 sm:$0xff]   ;;  %v6613_v58 = vld [vmem:[#allocation14 + $0x7e8] ss:$16 sps:$4 sm:$0xff]  }
 0x3c9   :  { %4548 = vmatprep.subr.bf16.mxu1 %v6543_v17  ;;  %v6618_v17 = vld [vmem:[#allocation14 + $0x80c] ss:$16 sps:$4 sm:$0xff]  }
 0x3cb   :  { %4385 = vmatpush1.bf16.msra.mxu0 %v6538_v11  ;;  %v7739_v11 = vpack.c.bf16 %v7689_v61, %v7689_v61  ;;  %v6625_v61 = vld [vmem:[#allocation14 + $0x868] ss:$16 sps:$4 sm:$0xff]  }
 0x3cc   :  { %4549 = vmatpush1.bf16.msra.mxu1 %v6541_v13  ;;  %4386 = vmatprep.subr.bf16.mxu0 %v6546_v32  ;;  %v6616_v13 = vld [vmem:[#allocation14 + $0x808] ss:$16 sps:$4 sm:$0xff]   ;;  %v6621_v32 = vld [vmem:[#allocation14 + $0x82c] ss:$16 sps:$4 sm:$0xff]  }
 0x3cd   :  { %4550 = vmatprep.subr.bf16.mxu1 %v6549_v57  ;;  %v6619_v57 = vld [vmem:[#allocation14 + $0x828] ss:$16 sps:$4 sm:$0xff]  }
 0x3cf   :  { %4387 = vmatpush1.bf16.msra.mxu0 %v6544_v33  ;;  %v6624_v33 = vld [vmem:[#allocation14 + $0x84c] ss:$16 sps:$4 sm:$0xff]  }
 0x3d0   :  { %4551 = vmatpush1.bf16.msra.mxu1 %v6547_v16  ;;  %4388 = vmatprep.subr.bf16.mxu0 %v6552_v25  ;;  %v6622_v16 = vld [vmem:[#allocation14 + $0x848] ss:$16 sps:$4 sm:$0xff]   ;;  %v6627_v25 = vld [vmem:[#allocation14 + $0x86c] ss:$16 sps:$4 sm:$0xff]  }
 0x3d1   :  { %v7733_v4 = vpop.f32.mrb[24].mxu1  ;;  %4552 = vmatprep.subr.bf16.mxu1 %v6555_v46  ;;  %v6630_v46 = vld [vmem:[#allocation14 + $0x88c] ss:$16 sps:$4 sm:$0xff]  }
 0x3d2   :  { %v7735_v15 = vpop.f32.mrb[25].mxu1 }
 0x3d3   :  { %4389 = vmatpush1.bf16.msra.mxu0 %v6550_v20  ;;  %v4211_v23 = vpop.f32.mrb[26].mxu1  ;;  %v6628_v20 = vld [vmem:[#allocation14 + $0x888] ss:$16 sps:$4 sm:$0xff]  }
 0x3d4   :  { %4553 = vmatpush1.bf16.msra.mxu1 %v6553_v14  ;;  %v4212_v0 = vpop.f32.mrb[27].mxu1  ;;  %4390 = vmatprep.subr.bf16.mxu0 %v6558_v21  ;;  %v6633_v14 = vld [vmem:[#allocation14 + $0x8ac] ss:$16 sps:$4 sm:$0xff]   ;;  %v6637_v23 = vld [vmem:[#allocation14 + $0x8e8] ss:$16 sps:$4 sm:$0xff]  }
 0x3d5   :  { %4554 = vmatprep.subr.bf16.mxu1 %v6561_v43  ;;  %v6636_v21 = vld [vmem:[#allocation14 + $0x8cc] ss:$16 sps:$4 sm:$0xff]   ;;  %v6640_v0 = vld [vmem:[#allocation14 + $0x908] ss:$16 sps:$4 sm:$0xff]  }
 0x3d6   :  { %v6639_v43 = vld [vmem:[#allocation14 + $0x8ec] ss:$16 sps:$4 sm:$0xff]  }
 0x3d7   :  { %4391 = vmatpush1.bf16.msra.mxu0 %v6556_v44  ;;  %v6642_v44 = vld [vmem:[#allocation14 + $0x90c] ss:$16 sps:$4 sm:$0xff]  }
 0x3d8   :  { %4555 = vmatpush1.bf16.msra.mxu1 %v6559_v59  ;;  %4392 = vmatprep.subr.bf16.mxu0 %v6564_v50  ;;  %v6645_v59 = vld [vmem:[#allocation14 + $0x92c] ss:$16 sps:$4 sm:$0xff]   ;;  %v6643_v50 = vld [vmem:[#allocation14 + $0x928] ss:$16 sps:$4 sm:$0xff]  }
 0x3d9   :  { %4556 = vmatprep.subr.bf16.mxu1 %v6567_v26  ;;  %v6648_v26 = vld [vmem:[#allocation14 + $0x94c] ss:$16 sps:$4 sm:$0xff]  }
 0x3db   :  { %4393 = vmatpush1.bf16.msra.mxu0 %v6562_v27  ;;  %v6646_v27 = vld [vmem:[#allocation14 + $0x948] ss:$16 sps:$4 sm:$0xff]  }
 0x3dc   :  { %4557 = vmatpush1.bf16.msra.mxu1 %v6565_v31  ;;  %4394 = vmatprep.subr.bf16.mxu0 %v6570_v48  ;;  %v6651_v31 = vld [vmem:[#allocation14 + $0x96c] ss:$16 sps:$4 sm:$0xff]   ;;  %v6649_v48 = vld [vmem:[#allocation14 + $0x968] ss:$16 sps:$4 sm:$0xff]  }
 0x3dd   :  { %4558 = vmatprep.subr.bf16.mxu1 %v6573_v28  ;;  %v6654_v28 = vld [vmem:[#allocation14 + $0x98c] ss:$16 sps:$4 sm:$0xff]  }
 0x3df   :  { %4395 = vmatpush1.bf16.msra.mxu0 %v6568_v18  ;;  %v6652_v18 = vld [vmem:[#allocation14 + $0x988] ss:$16 sps:$4 sm:$0xff]  }
 0x3e0   :  { %4559 = vmatpush1.bf16.msra.mxu1 %v6571_v29  ;;  %4396 = vmatprep.subr.bf16.mxu0 %v6576_v19  ;;  %v6657_v29 = vld [vmem:[#allocation14 + $0x9ac] ss:$16 sps:$4 sm:$0xff]   ;;  %v6655_v19 = vld [vmem:[#allocation14 + $0x9a8] ss:$16 sps:$4 sm:$0xff]  }
 0x3e1   :  { %4560 = vmatprep.subr.bf16.mxu1 %v6579_v2  ;;  %v6660_v2 = vld [vmem:[#allocation14 + $0x9cc] ss:$16 sps:$4 sm:$0xff]  }
 0x3e3   :  { %4397 = vmatpush1.bf16.msra.mxu0 %v6574_v36  ;;  %v6658_v36 = vld [vmem:[#allocation14 + $0x9c8] ss:$16 sps:$4 sm:$0xff]  }
 0x3e4   :  { %4561 = vmatpush1.bf16.msra.mxu1 %v6577_v47  ;;  %4398 = vmatprep.subr.bf16.mxu0 %v6582_v34  ;;  %v6663_v47 = vld [vmem:[#allocation14 + $0x9ec] ss:$16 sps:$4 sm:$0xff]   ;;  %v6661_v34 = vld [vmem:[#allocation14 + $0x9e8] ss:$16 sps:$4 sm:$0xff]  }
 0x3e5   :  { %4562 = vmatprep.subr.bf16.mxu1 %v6585_v38  ;;  %v6666_v38 = vld [vmem:[#allocation14 + $0xa0c] ss:$16 sps:$4 sm:$0xff]  }
 0x3e7   :  { %4399 = vmatpush1.bf16.msra.mxu0 %v6580_v55  ;;  %v6664_v55 = vld [vmem:[#allocation14 + $0xa08] ss:$16 sps:$4 sm:$0xff]  }
 0x3e8   :  { %4563 = vmatpush1.bf16.msra.mxu1 %v6583_v45  ;;  %4400 = vmatprep.subr.bf16.mxu0 %v6588_v56  ;;  %v6669_v45 = vld [vmem:[#allocation14 + $0xa2c] ss:$16 sps:$4 sm:$0xff]   ;;  %v6667_v56 = vld [vmem:[#allocation14 + $0xa28] ss:$16 sps:$4 sm:$0xff]  }
 0x3e9   :  { %4564 = vmatprep.subr.bf16.mxu1 %v6591_v60  ;;  %v6672_v60 = vld [vmem:[#allocation14 + $0xa4c] ss:$16 sps:$4 sm:$0xff]  }
 0x3eb   :  { %4401 = vmatpush1.bf16.msra.mxu0 %v6586_v62  ;;  %v6670_v62 = vld [vmem:[#allocation14 + $0xa48] ss:$16 sps:$4 sm:$0xff]  }
 0x3ec   :  { %4565 = vmatpush1.bf16.msra.mxu1 %v6589_v51  ;;  %4402 = vmatprep.subr.bf16.mxu0 %v6594_v63  ;;  %v6675_v51 = vld [vmem:[#allocation14 + $0xa6c] ss:$16 sps:$4 sm:$0xff]   ;;  %v6673_v63 = vld [vmem:[#allocation14 + $0xa68] ss:$16 sps:$4 sm:$0xff]  }
 0x3ed   :  { %4566 = vmatprep.subr.bf16.mxu1 %v6597_v1  ;;  %v6678_v1 = vld [vmem:[#allocation14 + $0xa8c] ss:$16 sps:$4 sm:$0xff]  }
 0x3ef   :  { %4403 = vmatpush1.bf16.msra.mxu0 %v6592_v5  ;;  %v6676_v5 = vld [vmem:[#allocation14 + $0xa88] ss:$16 sps:$4 sm:$0xff]  }
 0x3f0   :  { %4567 = vmatpush1.bf16.msra.mxu1 %v6595_v42  ;;  %4404 = vmatprep.subr.bf16.mxu0 %v6600_v39  ;;  %v6681_v42 = vld [vmem:[#allocation14 + $0xaac] ss:$16 sps:$4 sm:$0xff]  }
 0x3f1   :  { %4568 = vmatprep.subr.bf16.mxu1 %v6603_v6  ;;  %v6684_v39 = vld [vmem:[#allocation14 + $0xacc] ss:$16 sps:$4 sm:$0xff]  }
 0x3f2   :  { %v6687_v6 = vld [vmem:[#allocation14 + $0xaec] ss:$16 sps:$4 sm:$0xff]  }
 0x3f3   :  { %4405 = vmatpush1.bf16.msra.mxu0 %v6598_v3  ;;  %v6685_v3 = vld [vmem:[#allocation14 + $0xae8] ss:$16 sps:$4 sm:$0xff]  }
 0x3f4   :  { %4569 = vmatpush1.bf16.msra.mxu1 %v6601_v40  ;;  %4406 = vmatprep.subr.bf16.mxu0 %v6606_v9  ;;  %v6690_v40 = vld [vmem:[#allocation14 + $0xb0c] ss:$16 sps:$4 sm:$0xff]   ;;  %v6688_v9 = vld [vmem:[#allocation14 + $0xb08] ss:$16 sps:$4 sm:$0xff]  }
 0x3f5   :  { %4570 = vmatprep.subr.bf16.mxu1 %v6609_v10  ;;  %v6693_v10 = vld [vmem:[#allocation14 + $0xb2c] ss:$16 sps:$4 sm:$0xff]  }
 0x3f7   :  { %4407 = vmatpush1.bf16.msra.mxu0 %v6604_v53  ;;  %v6691_v53 = vld [vmem:[#allocation14 + $0xb28] ss:$16 sps:$4 sm:$0xff]  }
 0x3f8   :  { %4571 = vmatpush1.bf16.msra.mxu1 %v6607_v54  ;;  %4408 = vmatprep.subr.bf16.mxu0 %v6612_v24  ;;  %v6696_v54 = vld [vmem:[#allocation14 + $0xb4c] ss:$16 sps:$4 sm:$0xff]   ;;  %v6694_v24 = vld [vmem:[#allocation14 + $0xb48] ss:$16 sps:$4 sm:$0xff]  }
 0x3f9   :  { %4572 = vmatprep.subr.bf16.mxu1 %v6615_v22  ;;  %v6699_v22 = vld [vmem:[#allocation14 + $0xb6c] ss:$16 sps:$4 sm:$0xff]  }
 0x3fb   :  { %4409 = vmatpush1.bf16.msra.mxu0 %v6610_v12  ;;  %v6697_v12 = vld [vmem:[#allocation14 + $0xb68] ss:$16 sps:$4 sm:$0xff]  }
 0x3fc   :  { %4573 = vmatpush1.bf16.msra.mxu1 %v6613_v58  ;;  %v6702_v58 = vld [vmem:[#allocation14 + $0xb8c] ss:$16 sps:$4 sm:$0xff]  }
 0x3fd   :  { %4583 = vmatprep.subr.bf16.mxu1 %v6618_v17  ;;  %v6700_v17 = vld [vmem:[#allocation14 + $0xb88] ss:$16 sps:$4 sm:$0xff]  }
 0x3fe   :  { %4411 = vmatmul.mubr.bf16.vlgmr.msra.gmra.mrb[24].mxu0 %v7739_v11 }
 0x3ff   :  { %4575 = vmatmul.mubr.bf16.vlgmr.msra.gmra.mrb[28].mxu1 %v7710_v30  ;;  %v6631_v30 = vld [vmem:[#allocation14 + $0x8a8] ss:$16 sps:$4 sm:$0xff]  }
 0x400   :  { %4584 = vmatpush1.bf16.msra.mxu1 %v6616_v13  ;;  %4615 = vmatprep.mubr.bf16.mxu1 %v7713_v41  ;;  %v6634_v41 = vld [vmem:[#allocation14 + $0x8c8] ss:$16 sps:$4 sm:$0xff]   ;;  %v6705_v13 = vld [vmem:[#allocation14 + $0xbac] ss:$16 sps:$4 sm:$0xff]  }
 0x401   :  { %4585 = vmatprep.subr.bf16.mxu1 %v6621_v32  ;;  %v6703_v32 = vld [vmem:[#allocation14 + $0xba8] ss:$16 sps:$4 sm:$0xff]  }
 0x404   :  { %4586 = vmatpush1.bf16.msra.mxu1 %v6619_v57  ;;  %v6708_v57 = vld [vmem:[#allocation14 + $0xbcc] ss:$16 sps:$4 sm:$0xff]  }
 0x405   :  { %4587 = vmatprep.subr.bf16.mxu1 %v6624_v33  ;;  %v6706_v33 = vld [vmem:[#allocation14 + $0xbc8] ss:$16 sps:$4 sm:$0xff]  }
 0x408   :  { %4588 = vmatpush1.bf16.msra.mxu1 %v6622_v16  ;;  %v6711_v16 = vld [vmem:[#allocation14 + $0xbec] ss:$16 sps:$4 sm:$0xff]  }
 0x409   :  { %4589 = vmatprep.subr.bf16.mxu1 %v6627_v25  ;;  %v6709_v25 = vld [vmem:[#allocation14 + $0xbe8] ss:$16 sps:$4 sm:$0xff]  }
 0x40c   :  { %4590 = vmatpush1.bf16.msra.mxu1 %v6625_v61  ;;  %v2231_v61 = vld [vmem:[#allocation16] sm:$0xf] }
 0x40d   :  { %4591 = vmatprep.subr.bf16.mxu1 %v6630_v46  ;;  %v2236_v46 = vrot.slane %v2231_v61, %v7503_v35 }
 0x410   :  { %4592 = vmatpush1.bf16.msra.mxu1 %v6628_v20  ;;  %v2240_v20 = vrot.slane %v2231_v61, %v7505_v49 }
 0x411   :  { %4593 = vmatprep.subr.bf16.mxu1 %v6633_v14  ;;  %v4208_v14 = vadd.f32 %v7733_v4, %v2236_v46  ;;  %v6723_v4 = vld [vmem:[#allocation20 + $0x34] ss:$8 sps:$4 sm:$0xff]   ;;  %v6750_v46 = vld [vmem:[#allocation20 + $0xc4] ss:$8 sps:$4 sm:$0xff]  }
 0x414   :  { %4594 = vmatpush1.bf16.msra.mxu1 %v6631_v30  ;;  %v4210_v30 = vadd.f32 %v7735_v15, %v2240_v20  ;;  %v6721_v15 = vld [vmem:[#allocation20 + $0x30] ss:$8 sps:$4 sm:$0xff]   ;;  %v6748_v20 = vld [vmem:[#allocation20 + $0xc0] ss:$8 sps:$4 sm:$0xff]  }
 0x415   :  { %4595 = vmatprep.subr.bf16.mxu1 %v6636_v21 }
 0x418   :  { %4596 = vmatpush1.bf16.msra.mxu1 %v6634_v41 }
 0x419   :  { %4597 = vmatprep.subr.bf16.mxu1 %v6639_v43 }
 0x41c   :  { %4598 = vmatpush1.bf16.msra.mxu1 %v6637_v23 }
 0x41d   :  { %4599 = vmatprep.subr.bf16.mxu1 %v6642_v44 }
 0x420   :  { %4600 = vmatpush1.bf16.msra.mxu1 %v6640_v0 }
 0x421   :  { %4601 = vmatprep.subr.bf16.mxu1 %v6645_v59  ;;  %v6712_v59 = vld [vmem:[#allocation20] ss:$8 sps:$4 sm:$0xff]  }
 0x424   :  { %4602 = vmatpush1.bf16.msra.mxu1 %v6643_v50  ;;  %v6714_v50 = vld [vmem:[#allocation20 + $0x4] ss:$8 sps:$4 sm:$0xff]  }
 0x425   :  { %4603 = vmatprep.subr.bf16.mxu1 %v6648_v26  ;;  %v6717_v26 = vld [vmem:[#allocation20 + $0x14] ss:$8 sps:$4 sm:$0xff]   ;;  %5158 = vmatprep.subr.bf16.mxu0 %v6714_v50 }
 0x426   :  { %5159 = vmatpush1.bf16.msra.mxu0 %v6712_v59 }
 0x427   :  { %5160 = vmatprep.subr.bf16.mxu0 %v6717_v26 }
 0x428   :  { %4604 = vmatpush1.bf16.msra.mxu1 %v6646_v27  ;;  %v6720_v27 = vld [vmem:[#allocation20 + $0x24] ss:$8 sps:$4 sm:$0xff]  }
 0x429   :  { %4605 = vmatprep.subr.bf16.mxu1 %v6651_v31  ;;  %v6718_v31 = vld [vmem:[#allocation20 + $0x20] ss:$8 sps:$4 sm:$0xff]  }
 0x42c   :  { %4606 = vmatpush1.bf16.msra.mxu1 %v6649_v48  ;;  %v6726_v48 = vld [vmem:[#allocation20 + $0x44] ss:$8 sps:$4 sm:$0xff]  }
 0x42d   :  { %4607 = vmatprep.subr.bf16.mxu1 %v6654_v28  ;;  %v6724_v28 = vld [vmem:[#allocation20 + $0x40] ss:$8 sps:$4 sm:$0xff]  }
 0x430   :  { %4608 = vmatpush1.bf16.msra.mxu1 %v6652_v18  ;;  %v6729_v18 = vld [vmem:[#allocation20 + $0x54] ss:$8 sps:$4 sm:$0xff]  }
 0x431   :  { %4609 = vmatprep.subr.bf16.mxu1 %v6657_v29  ;;  %v6727_v29 = vld [vmem:[#allocation20 + $0x50] ss:$8 sps:$4 sm:$0xff]  }
 0x434   :  { %4610 = vmatpush1.bf16.msra.mxu1 %v6655_v19  ;;  %v6732_v19 = vld [vmem:[#allocation20 + $0x64] ss:$8 sps:$4 sm:$0xff]  }
 0x435   :  { %4611 = vmatprep.subr.bf16.mxu1 %v6660_v2  ;;  %v6730_v2 = vld [vmem:[#allocation20 + $0x60] ss:$8 sps:$4 sm:$0xff]  }
 0x438   :  { %4612 = vmatpush1.bf16.msra.mxu1 %v6658_v36  ;;  %v6735_v36 = vld [vmem:[#allocation20 + $0x74] ss:$8 sps:$4 sm:$0xff]  }
 0x439   :  { %4613 = vmatprep.subr.bf16.mxu1 %v6663_v47  ;;  %v6733_v47 = vld [vmem:[#allocation20 + $0x70] ss:$8 sps:$4 sm:$0xff]  }
 0x43c   :  { %4614 = vmatpush1.bf16.msra.mxu1 %v6661_v34  ;;  %v6738_v34 = vld [vmem:[#allocation20 + $0x84] ss:$8 sps:$4 sm:$0xff]  }
 0x43d   :  { %4624 = vmatprep.subr.bf16.mxu1 %v6666_v38  ;;  %v6736_v38 = vld [vmem:[#allocation20 + $0x80] ss:$8 sps:$4 sm:$0xff]  }
 0x43f   :  { %4616 = vmatmul.mubr.bf16.vlgmr.msra.gmra.mrb[28].mxu1 %v7723_v7  ;;  %v6679_v7 = vld [vmem:[#allocation14 + $0xaa8] ss:$16 sps:$4 sm:$0xff]  }
 0x440   :  { %4625 = vmatpush1.bf16.msra.mxu1 %v6664_v55  ;;  %4656 = vmatprep.mubr.bf16.mxu1 %v7728_v8  ;;  %v6682_v8 = vld [vmem:[#allocation14 + $0xac8] ss:$16 sps:$4 sm:$0xff]  }
 0x441   :  { %4626 = vmatprep.subr.bf16.mxu1 %v6669_v45 }
 0x444   :  { %4627 = vmatpush1.bf16.msra.mxu1 %v6667_v56  ;;  %v2244_v56 = vrot.slane %v2231_v61, %v7513_v37 }
 0x445   :  { %4628 = vmatprep.subr.bf16.mxu1 %v6672_v60  ;;  %v2248_v60 = vrot.slane %v2231_v61, %v7515_v52  ;;  %v6745_v61 = vld [vmem:[#allocation20 + $0xb0] ss:$8 sps:$4 sm:$0xff]  }
 0x448   :  { %4629 = vmatpush1.bf16.msra.mxu1 %v6670_v62 }
 0x449   :  { %4630 = vmatprep.subr.bf16.mxu1 %v6675_v51 }
 0x44c   :  { %4631 = vmatpush1.bf16.msra.mxu1 %v6673_v63 }
 0x44d   :  { %4632 = vmatprep.subr.bf16.mxu1 %v6678_v1 }
 0x450   :  { %4633 = vmatpush1.bf16.msra.mxu1 %v6676_v5 }
 0x451   :  { %4634 = vmatprep.subr.bf16.mxu1 %v6681_v42 }
 0x454   :  { %4635 = vmatpush1.bf16.msra.mxu1 %v6679_v7 }
 0x455   :  { %4636 = vmatprep.subr.bf16.mxu1 %v6684_v39 }
 0x458   :  { %4637 = vmatpush1.bf16.msra.mxu1 %v6682_v8 }
 0x459   :  { %4638 = vmatprep.subr.bf16.mxu1 %v6687_v6 }
 0x45c   :  { %4639 = vmatpush1.bf16.msra.mxu1 %v6685_v3 }
 0x45d   :  { %4640 = vmatprep.subr.bf16.mxu1 %v6690_v40 }
 0x460   :  { %4641 = vmatpush1.bf16.msra.mxu1 %v6688_v9 }
 0x461   :  { %4642 = vmatprep.subr.bf16.mxu1 %v6693_v10 }
 0x464   :  { %4643 = vmatpush1.bf16.msra.mxu1 %v6691_v53 }
 0x465   :  { %4644 = vmatprep.subr.bf16.mxu1 %v6696_v54 }
 0x468   :  { %4645 = vmatpush1.bf16.msra.mxu1 %v6694_v24 }
 0x469   :  { %4646 = vmatprep.subr.bf16.mxu1 %v6699_v22 }
 0x46c   :  { %4647 = vmatpush1.bf16.msra.mxu1 %v6697_v12 }
 0x46d   :  { %4648 = vmatprep.subr.bf16.mxu1 %v6702_v58 }
 0x470   :  { %4649 = vmatpush1.bf16.msra.mxu1 %v6700_v17 }
 0x471   :  { %4650 = vmatprep.subr.bf16.mxu1 %v6705_v13 }
 0x474   :  { %4651 = vmatpush1.bf16.msra.mxu1 %v6703_v32  ;;  %v6739_v32 = vld [vmem:[#allocation20 + $0x90] ss:$8 sps:$4 sm:$0xff]  }
 0x475   :  { %4652 = vmatprep.subr.bf16.mxu1 %v6708_v57  ;;  %v6741_v57 = vld [vmem:[#allocation20 + $0x94] ss:$8 sps:$4 sm:$0xff]  }
 0x478   :  { %4653 = vmatpush1.bf16.msra.mxu1 %v6706_v33  ;;  %v6742_v33 = vld [vmem:[#allocation20 + $0xa0] ss:$8 sps:$4 sm:$0xff]  }
 0x479   :  { %4654 = vmatprep.subr.bf16.mxu1 %v6711_v16  ;;  %v6744_v16 = vld [vmem:[#allocation20 + $0xa4] ss:$8 sps:$4 sm:$0xff]  }
 0x47c   :  { %4655 = vmatpush1.bf16.msra.mxu1 %v6709_v25  ;;  %v6747_v25 = vld [vmem:[#allocation20 + $0xb4] ss:$8 sps:$4 sm:$0xff]  }
 0x47f   :  { %4657 = vmatmul.mubr.bf16.vlgmr.msra.gmra.mrb[28].mxu1 %v7739_v11  ;;  %v6715_v11 = vld [vmem:[#allocation20 + $0x10] ss:$8 sps:$4 sm:$0xff]  }
 0x480   :  { %5161 = vmatpush1.bf16.msra.mxu0 %v6715_v11 }
 0x481   :  { %5162 = vmatprep.subr.bf16.mxu0 %v6720_v27 }
 0x484   :  { %5163 = vmatpush1.bf16.msra.mxu0 %v6718_v31 }
 0x485   :  { %5164 = vmatprep.subr.bf16.mxu0 %v6723_v4 }
 0x488   :  { %5165 = vmatpush1.bf16.msra.mxu0 %v6721_v15  ;;  %v4677_v15 = vld [vmem:[#allocation17] sm:$0xf] }
 0x489   :  { %5166 = vmatprep.subr.bf16.mxu0 %v6726_v48  ;;  %v4678_v48 = vld [vmem:[#allocation19] sm:$0xf] }
 0x48c   :  { %5167 = vmatpush1.bf16.msra.mxu0 %v6724_v28  ;;  %v4716_v28 = vrot.slane %v4677_v15, %v7505_v49 }
 0x48d   :  { %5168 = vmatprep.subr.bf16.mxu0 %v6729_v18  ;;  %v4712_v18 = vrot.slane %v4677_v15, %v7503_v35 }
 0x490   :  { %5169 = vmatpush1.bf16.msra.mxu0 %v6727_v29  ;;  %v4724_v29 = vrot.slane %v4677_v15, %v7515_v52 }
 0x491   :  { %5170 = vmatprep.subr.bf16.mxu0 %v6732_v19  ;;  %v4720_v19 = vrot.slane %v4677_v15, %v7513_v37  ;;  %v4826_v15 = vld [vmem:[#allocation22] sm:$0x3] }
 0x494   :  { %5171 = vmatpush1.bf16.msra.mxu0 %v6730_v2 }
 0x495   :  { %5172 = vmatprep.subr.bf16.mxu0 %v6735_v36 }
 0x498   :  { %5173 = vmatpush1.bf16.msra.mxu0 %v6733_v47 }
 0x499   :  { %5174 = vmatprep.subr.bf16.mxu0 %v6738_v34 }
 0x49c   :  { %5175 = vmatpush1.bf16.msra.mxu0 %v6736_v38 }
 0x49d   :  { %5176 = vmatprep.subr.bf16.mxu0 %v6741_v57  ;;  %v6775_v57 = vld [vmem:[#allocation20 + $0x150] ss:$8 sps:$4 sm:$0xff]  }
 0x4a0   :  { %5177 = vmatpush1.bf16.msra.mxu0 %v6739_v32  ;;  %v6777_v32 = vld [vmem:[#allocation20 + $0x154] ss:$8 sps:$4 sm:$0xff]  }
 0x4a1   :  { %5178 = vmatprep.subr.bf16.mxu0 %v6744_v16  ;;  %v6778_v16 = vld [vmem:[#allocation20 + $0x160] ss:$8 sps:$4 sm:$0xff]  }
 0x4a4   :  { %5179 = vmatpush1.bf16.msra.mxu0 %v6742_v33  ;;  %v6780_v33 = vld [vmem:[#allocation20 + $0x164] ss:$8 sps:$4 sm:$0xff]  }
 0x4a5   :  { %5180 = vmatprep.subr.bf16.mxu0 %v6747_v25  ;;  %v6783_v25 = vld [vmem:[#allocation20 + $0x174] ss:$8 sps:$4 sm:$0xff]  }
 0x4a8   :  { %5181 = vmatpush1.bf16.msra.mxu0 %v6745_v61  ;;  %v6781_v61 = vld [vmem:[#allocation20 + $0x170] ss:$8 sps:$4 sm:$0xff]  }
 0x4a9   :  { %5182 = vmatprep.subr.bf16.mxu0 %v6750_v46  ;;  %v6786_v46 = vld [vmem:[#allocation20 + $0x184] ss:$8 sps:$4 sm:$0xff]  }
 0x4ac   :  { %5183 = vmatpush1.bf16.msra.mxu0 %v6748_v20  ;;  %v6784_v20 = vld [vmem:[#allocation20 + $0x180] ss:$8 sps:$4 sm:$0xff]  }
 0x4d1   :  { %v4412_v21 = vpop.f32.mrb[24].mxu0 }
 0x4d2   :  { %v5882_v41 = vadd.f32 %v4412_v21, %v4208_v14  ;;  %v4414_v43 = vpop.f32.mrb[25].mxu0  ;;  %v6753_v14 = vld [vmem:[#allocation20 + $0xd4] ss:$8 sps:$4 sm:$0xff]   ;;  %v6756_v21 = vld [vmem:[#allocation20 + $0xe4] ss:$8 sps:$4 sm:$0xff]  }
 0x4d3   :  { %v5884_v23 = vadd.f32 %v4414_v43, %v4210_v30  ;;  %v4416_v44 = vpop.f32.mrb[26].mxu0  ;;  %v6751_v30 = vld [vmem:[#allocation20 + $0xd0] ss:$8 sps:$4 sm:$0xff]   ;;  %5184 = vmatprep.subr.bf16.mxu0 %v6753_v14  ;;  %v6759_v43 = vld [vmem:[#allocation20 + $0xf4] ss:$8 sps:$4 sm:$0xff]  }
 0x4d4   :  { %v4417_v0 = vpop.f32.mrb[27].mxu0  ;;  %v4669_v55 = vmul.f32 0.01, %v5882_v41  ;;  %vm4665_vm0 = vcmp.gt.f32.partialorder %v5882_v41, 0.0  ;;  %5185 = vmatpush1.bf16.msra.mxu0 %v6751_v30  ;;  %v6762_v44 = vld [vmem:[#allocation20 + $0x104] ss:$8 sps:$4 sm:$0xff]  }
 0x4d5   :  { %v4670_v45 = vmul.f32 0.01, %v5884_v23  ;;  %vm4666_vm1 = vcmp.gt.f32.partialorder %v5884_v23, 0.0  ;;  %5186 = vmatprep.subr.bf16.mxu0 %v6756_v21  ;;  %v6789_v14 = vld [vmem:[#allocation20 + $0x194] ss:$8 sps:$4 sm:$0xff]  }
 0x4d6   :  { %v7753_v62 = vsel %vm4665_vm0, %v5882_v41, %v4669_v55  ;;  %v6754_v41 = vld [vmem:[#allocation20 + $0xe0] ss:$8 sps:$4 sm:$0xff]   ;;  %v4741_v55 = vrot.slane %v4678_v48, %v7505_v49  ;;  %v6787_v30 = vld [vmem:[#allocation20 + $0x190] ss:$8 sps:$4 sm:$0xff]   ;;  %v6792_v21 = vld [vmem:[#allocation20 + $0x1a4] ss:$8 sps:$4 sm:$0xff]  }
 0x4d7   :  { %v7755_v51 = vsel %vm4666_vm1, %v5884_v23, %v4670_v45  ;;  %v4684_v42 = vmul.f32 %v7753_v62, %v7753_v62  ;;  %v6757_v23 = vld [vmem:[#allocation20 + $0xf0] ss:$8 sps:$4 sm:$0xff]   ;;  %v4737_v45 = vrot.slane %v4678_v48, %v7503_v35 }
 0x4d8   :  { %v4685_v7 = vmul.f32 %v7755_v51, %v7755_v51  ;;  %v4679_v9 = vadd.f32 %v7755_v51, %v7753_v62  ;;  %5187 = vmatpush1.bf16.msra.mxu0 %v6754_v41  ;;  %v6790_v41 = vld [vmem:[#allocation20 + $0x1a0] ss:$8 sps:$4 sm:$0xff]  }
 0x4d9   :  { %5188 = vmatprep.subr.bf16.mxu0 %v6759_v43  ;;  %v6795_v43 = vld [vmem:[#allocation20 + $0x1b4] ss:$8 sps:$4 sm:$0xff]  }
 0x4da   :  { %v4688_v22 = vadd.f32 %v4685_v7, %v4684_v42 }
 0x4dc   :  { %5189 = vmatpush1.bf16.msra.mxu0 %v6757_v23  ;;  %v6793_v23 = vld [vmem:[#allocation20 + $0x1b0] ss:$8 sps:$4 sm:$0xff]  }
 0x4dd   :  { %5199 = vmatprep.subr.bf16.mxu0 %v6762_v44  ;;  %v6798_v44 = vld [vmem:[#allocation20 + $0x1c4] ss:$8 sps:$4 sm:$0xff]  }
 0x552   :  { %v4658_v63 = vpop.f32.mrb[28].mxu1 }
 0x553   :  { %v5885_v1 = vadd.f32 %v4658_v63, %v2244_v56  ;;  %v4660_v5 = vpop.f32.mrb[29].mxu1  ;;  %v4749_v56 = vrot.slane %v4678_v48, %v7515_v52 }
 0x554   :  { %v5886_v39 = vadd.f32 %v4660_v5, %v2248_v60  ;;  %v4662_v8 = vpop.f32.mrb[30].mxu1  ;;  %v4745_v60 = vrot.slane %v4678_v48, %v7513_v37  ;;  %v6763_v37 = vld [vmem:[#allocation20 + $0x110] ss:$8 sps:$4 sm:$0xff]   ;;  %v4831_v48 = vrot.slane %v4826_v15, %v7503_v35 }
 0x555   :  { %vm4667_vm2 = vcmp.gt.f32.partialorder %v5885_v1, 0.0  ;;  %v4671_v6 = vmul.f32 0.01, %v5885_v1  ;;  %v4663_v3 = vpop.f32.mrb[31].mxu1 }
 0x556   :  { %v4672_v40 = vmul.f32 0.01, %v5886_v39  ;;  %vm4668_vm3 = vcmp.gt.f32.partialorder %v5886_v39, 0.0 }
 0x557   :  { %v7763_v10 = vsel %vm4667_vm2, %v5885_v1, %v4671_v6 }
 0x558   :  { %v7765_v53 = vsel %vm4668_vm3, %v5886_v39, %v4672_v40  ;;  %v4680_v54 = vadd.f32 %v4679_v9, %v7763_v10  ;;  %v4686_v24 = vmul.f32 %v7763_v10, %v7763_v10 }
 0x559   :  { %v4687_v58 = vmul.f32 %v7765_v53, %v7765_v53 }
 0x55a   :  { %v4681_v12 = vadd.f32 %v4680_v54, %v7765_v53  ;;  %v4689_v17 = vadd.f32 %v4688_v22, %v4686_v24  ;;  %v6765_v54 = vld [vmem:[#allocation20 + $0x114] ss:$8 sps:$4 sm:$0xff]   ;;  %v6768_v24 = vld [vmem:[#allocation20 + $0x124] ss:$8 sps:$4 sm:$0xff]   ;;  %v6766_v22 = vld [vmem:[#allocation20 + $0x120] ss:$8 sps:$4 sm:$0xff]  }
 0x55c   :  { %4682 = vadd.xlane.f32.xlu1 %v4681_v12  ;;  %v4690_v13 = vadd.f32 %v4689_v17, %v4687_v58  ;;  %v6771_v12 = vld [vmem:[#allocation20 + $0x134] ss:$8 sps:$4 sm:$0xff]   ;;  %v6769_v58 = vld [vmem:[#allocation20 + $0x130] ss:$8 sps:$4 sm:$0xff]   ;;  %v6774_v17 = vld [vmem:[#allocation20 + $0x144] ss:$8 sps:$4 sm:$0xff]  }
 0x560   :  { %4691 = vadd.xlane.f32.xlu1 %v4690_v13  ;;  %v6772_v13 = vld [vmem:[#allocation20 + $0x140] ss:$8 sps:$4 sm:$0xff]  }
 0x5e9   :  { %v4683_v0 = vpop.xlane.xlu1 %4682 }
 0x5ea   :  { %v4693_v59 = vmul.f32 0.002, %v4683_v0  ;;  %v6796_v0 = vld [vmem:[#allocation20 + $0x1c0] ss:$8 sps:$4 sm:$0xff]  }
 0x5ec   :  { %v4695_v26 = vmul.f32 %v4693_v59, %v4693_v59  ;;  %v4700_v2 = vsub.f32 %v7753_v62, %v4693_v59  ;;  %v4702_v36 = vsub.f32 %v7763_v10, %v4693_v59  ;;  %v4701_v47 = vsub.f32 %v7755_v51, %v4693_v59  ;;  %v6760_v10 = vld [vmem:[#allocation20 + $0x100] ss:$8 sps:$4 sm:$0xff]  }
 0x5ed   :  { %v4692_v50 = vpop.xlane.xlu1 %4691  ;;  %v4703_v34 = vsub.f32 %v7765_v53, %v4693_v59  ;;  %v6801_v59 = vld [vmem:[#allocation20 + $0x1d4] ss:$8 sps:$4 sm:$0xff]  }
 0x5ee   :  { %v4694_v11 = vmul.f32 0.002, %v4692_v50  ;;  %v6799_v50 = vld [vmem:[#allocation20 + $0x1d0] ss:$8 sps:$4 sm:$0xff]  }
 0x5f0   :  { %v4696_v27 = vsub.f32 %v4694_v11, %v4695_v26  ;;  %v6804_v26 = vld [vmem:[#allocation20 + $0x1e4] ss:$8 sps:$4 sm:$0xff]   ;;  %v6802_v11 = vld [vmem:[#allocation20 + $0x1e0] ss:$8 sps:$4 sm:$0xff]  }
 0x5f2   :  { %v4697_v31 = vmax.f32 %v4696_v27, 0.0  ;;  %v6807_v27 = vld [vmem:[#allocation20 + $0x1f4] ss:$8 sps:$4 sm:$0xff]  }
 0x5f4   :  { %v4698_v4 = vadd.f32 1e-05, %v4697_v31  ;;  %v6805_v31 = vld [vmem:[#allocation20 + $0x1f0] ss:$8 sps:$4 sm:$0xff]  }
 0x5f6   :  { %6810 = vrsqrt.f32 %v4698_v4 }
 0x600   :  { %v6811_v38 = vpop.eup %6810 }
 0x601   :  { %v4705_v63 = vmul.f32 %v6811_v38, %v4701_v47  ;;  %v4704_v1 = vmul.f32 %v6811_v38, %v4700_v2  ;;  %v4707_v5 = vmul.f32 %v6811_v38, %v4703_v34  ;;  %v4706_v42 = vmul.f32 %v6811_v38, %v4702_v36 }
 0x603   :  { %v4730_v62 = vmul.f32 %v4716_v28, %v4705_v63  ;;  %v4729_v7 = vmul.f32 %v4712_v18, %v4704_v1  ;;  %v4732_v39 = vmul.f32 %v4724_v29, %v4707_v5  ;;  %v4731_v8 = vmul.f32 %v4720_v19, %v4706_v42 }
 0x604   :  { %v4835_v28 = vrot.slane %v4826_v15, %v7505_v49 }
 0x605   :  { %v4755_v51 = vadd.f32 %v4741_v55, %v4730_v62  ;;  %v4754_v6 = vadd.f32 %v4737_v45, %v4729_v7  ;;  %v4757_v3 = vadd.f32 %v4749_v56, %v4732_v39  ;;  %v7785_v40 = vadd.f32 %v4745_v60, %v4731_v8 }
 0x607   :  { %v4759_v9 = vpack.c.bf16 %v4755_v51, %v4755_v51  ;;  %v4758_v53 = vpack.c.bf16 %v4754_v6, %v4754_v6  ;;  %v4761_v52 = vpack.c.bf16 %v4757_v3, %v4757_v3  ;;  %v4760_v4 = vpack.c.bf16 %v7785_v40, %v7785_v40 }
 0x609   :  { %5190 = vmatprep.mubr.bf16.mxu0 %v4759_v9 }
 0x60a   :  { %5191 = vmatmul.mubr.bf16.vlgmr.msra.gmra.mrb[28].mxu0 %v4758_v53 }
 0x60b   :  { %5200 = vmatpush1.bf16.msra.mxu0 %v6760_v10  ;;  %5231 = vmatprep.mubr.bf16.mxu0 %v4761_v52 }
 0x60c   :  { %5201 = vmatprep.subr.bf16.mxu0 %v6765_v54 }
 0x60f   :  { %5202 = vmatpush1.bf16.msra.mxu0 %v6763_v37 }
 0x610   :  { %5203 = vmatprep.subr.bf16.mxu0 %v6768_v24 }
 0x613   :  { %5204 = vmatpush1.bf16.msra.mxu0 %v6766_v22 }
 0x614   :  { %5205 = vmatprep.subr.bf16.mxu0 %v6771_v12 }
 0x617   :  { %5206 = vmatpush1.bf16.msra.mxu0 %v6769_v58 }
 0x618   :  { %5207 = vmatprep.subr.bf16.mxu0 %v6774_v17 }
 0x61b   :  { %5208 = vmatpush1.bf16.msra.mxu0 %v6772_v13 }
 0x61c   :  { %5209 = vmatprep.subr.bf16.mxu0 %v6777_v32 }
 0x61f   :  { %5210 = vmatpush1.bf16.msra.mxu0 %v6775_v57 }
 0x620   :  { %5211 = vmatprep.subr.bf16.mxu0 %v6780_v33 }
 0x623   :  { %5212 = vmatpush1.bf16.msra.mxu0 %v6778_v16 }
 0x624   :  { %5213 = vmatprep.subr.bf16.mxu0 %v6783_v25 }
 0x627   :  { %5214 = vmatpush1.bf16.msra.mxu0 %v6781_v61 }
 0x628   :  { %5215 = vmatprep.subr.bf16.mxu0 %v6786_v46 }
 0x62b   :  { %5216 = vmatpush1.bf16.msra.mxu0 %v6784_v20 }
 0x62c   :  { %5217 = vmatprep.subr.bf16.mxu0 %v6789_v14 }
 0x62f   :  { %5218 = vmatpush1.bf16.msra.mxu0 %v6787_v30 }
 0x630   :  { %5219 = vmatprep.subr.bf16.mxu0 %v6792_v21 }
 0x633   :  { %5220 = vmatpush1.bf16.msra.mxu0 %v6790_v41 }
 0x634   :  { %5221 = vmatprep.subr.bf16.mxu0 %v6795_v43 }
 0x637   :  { %5222 = vmatpush1.bf16.msra.mxu0 %v6793_v23 }
 0x638   :  { %5223 = vmatprep.subr.bf16.mxu0 %v6798_v44 }
 0x63b   :  { %5224 = vmatpush1.bf16.msra.mxu0 %v6796_v0 }
 0x63c   :  { %5225 = vmatprep.subr.bf16.mxu0 %v6801_v59 }
 0x63f   :  { %5226 = vmatpush1.bf16.msra.mxu0 %v6799_v50 }
 0x640   :  { %5227 = vmatprep.subr.bf16.mxu0 %v6804_v26 }
 0x643   :  { %5228 = vmatpush1.bf16.msra.mxu0 %v6802_v11 }
 0x644   :  { %5229 = vmatprep.subr.bf16.mxu0 %v6807_v27 }
 0x647   :  { %5230 = vmatpush1.bf16.msra.mxu0 %v6805_v31 }
 0x64a   :  { %5232 = vmatmul.mubr.bf16.vlgmr.msra.gmra.mrb[28].mxu0 %v4760_v4 }
 0x71d   :  { %v5233_v18 = vpop.f32.mrb[28].mxu0 }
 0x71e   :  { %v5887_v29 = vadd.f32 %v5233_v18, %v4831_v48  ;;  %v5235_v19 = vpop.f32.mrb[29].mxu0 }
 0x71f   :  { %v5888_v2 = vadd.f32 %v5235_v19, %v4835_v28  ;;  %v5237_v36 = vpop.f32.mrb[30].mxu0 }
 0x720   :  { %v5879_v47 = vmul.f32 -1.442695, %v5887_v29  ;;  %v5238_v34 = vpop.f32.mrb[31].mxu0 }
 0x721   :  { %v5880_v38 = vmul.f32 -1.442695, %v5888_v2 }
 0x722   :  { %6812 = vpow2.f32 %v5879_v47 }
 0x723   :  { %6814 = vpow2.f32 %v5880_v38 }
 0x72c   :  { %v6813_v55 = vpop.eup %6812 }
 0x72d   :  { %v6815_v45 = vpop.eup %6814  ;;  %v5246_v56 = vadd.f32 1.0, %v6813_v55 }
 0x72e   :  { %v5247_v60 = vadd.f32 1.0, %v6815_v45 }
 0x72f   :  { %6816 = vrcp.f32 %v5246_v56 }
 0x730   :  { %6818 = vrcp.f32 %v5247_v60 }
 0x739   :  { %v6817_v35 = vpop.eup %6816 }
 0x73a   :  { %v6819_v49 = vpop.eup %6818  ;;  %5252 = vst [vmem:[#allocation23] sm:$0xff] %v6817_v35 }
 0x73b   :  { %5253 = vst [vmem:[#allocation23 + $0x8] sm:$0xff] %v6819_v49 }
 0x73c   :  { %7117 = shalt.err (!%p7114_p10)
}
 0x73d   :  { %s7118_s6 = scalar_lea.hbm %s7816_s13, 256 }
 0x73e   :  { %p7119_p11 = scmp.ne.s32.totalorder %s7816_s13, %s7118_s6  ;;  %p7122_p12 = scmp.lt.u32.totalorder %s7118_s6, %s7816_s13 }
 0x740   :  { %p7124_p13 = pnand %p7122_p12, %p7119_p11 }
 0x742   :  { %7127 = shalt.err (!%p7124_p13)
}
 0x743   :  { %5263 = dma.vmem_to_hbm [thread:$0]  %s5261_s23, 256, %s7816_s13, [#allocation4]  }
 0x744   :  { %7142 = dma.done.wait [#allocation4], 256  }
 0x745   :  { %7143 = vsyncadd [#allocation4], 4294967040 }
 0x746   :  { %5267 = vsyncpa [#allocation3], 1 }
 0x747   :  { %5268 = vsyncpa [#allocation6], 1 }
 0x748   :  { %5269 = vsyncpa [#allocation9], 1 }
 0x749   :  { %5270 = vsyncpa [#allocation12], 1 }
 0x74a   :  { %5271 = vsyncpa [#allocation15], 1 }
 0x74b   :  { %5272 = vsyncpa [#allocation18], 1 }
 0x74c   :  { %5273 = vsyncpa [#allocation21], 1 }
 0x74d   :  { %5274 = vsyncpa [#allocation4], 1 }

</bundles_post_ra>
